<compile_context>
chip_gen: v5e
topology: v5e:2x2
jax: 0.10.0
libtpu: 0.0.40
codegen_flags: <defaults>
</compile_context>

<pallas_src>
import numpy as np
import jax
import jax.numpy as jnp
from jax import lax
from jax.experimental import pallas as pl
from jax.experimental.pallas import tpu as pltpu

VMEM_SPEC = pl.BlockSpec(memory_space=pltpu.MemorySpace.VMEM)


# --------------------------- Fused forward kernel ---------------------------
def make_fused_forward_kernel(cfg, n_conv, n_gru, n_dec):
    K = cfg["kernel_size"]
    stride = cfg["stride"]
    H = cfg["hidden"]

    def kernel(*refs):
        # ---- unpack refs (inputs..., out_ref) ----
        idx = 0
        audio_ref = refs[idx]; idx += 1
        conv_p = []
        for _ in range(n_conv):
            conv_p.append((refs[idx], refs[idx + 1])); idx += 2
        gru_p = []
        for _ in range(n_gru):
            gru_p.append(tuple(refs[idx:idx + 4])); idx += 4
        h0_ref = refs[idx]; idx += 1
        meta_ref = refs[idx]; idx += 1
        w1f_ref, w1m_ref, b1_ref = refs[idx], refs[idx + 1], refs[idx + 2]; idx += 3
        dec_rest = []
        for _ in range(n_dec - 1):
            dec_rest.append((refs[idx], refs[idx + 1])); idx += 2
        out_ref = refs[idx]

        # ---- CNN stack: im2col + single MXU matmul per layer, fused ReLU ----
        x = audio_ref[...]                                   # (B, S, Cin) channels-last
        B = x.shape[0]
        for w_ref, b_ref in conv_p:
            S, Cin = x.shape[1], x.shape[2]
            Cout = w_ref.shape[1]
            Lout = (S - K) // stride + 1
            cols = [lax.slice(x, (0, k, 0),
                              (B, k + (Lout - 1) * stride + 1, Cin),
                              (1, stride, 1)) for k in range(K)]
            im2col = jnp.concatenate(cols, axis=-1).reshape(B * Lout, K * Cin)
            y = jnp.dot(im2col, w_ref[...], preferred_element_type=jnp.float32) + b_ref[...]
            x = jnp.maximum(y, 0.0).reshape(B, Lout, Cout)

        # ---- GRU stack (PyTorch gate order [r, z, n]) ----
        outs = None
        for layer in range(n_gru):
            wih = gru_p[layer][0][...]                       # loads hoisted out of the loop
            whh = gru_p[layer][1][...]
            bih = gru_p[layer][2][...]
            bhh = gru_p[layer][3][...]
            L, In = x.shape[1], x.shape[2]
            # Hoisted input projection: one matmul for all timesteps.
            gi_all = (jnp.dot(x.reshape(B * L, In), wih,
                              preferred_element_type=jnp.float32) + bih).reshape(B, L, 3 * H)
            h = h0_ref[layer]                                # (B, H)
            outs = []
            for t in range(L):                               # fully unrolled (L is static)
                gi = gi_all[:, t, :]
                gh = jnp.dot(h, whh, preferred_element_type=jnp.float32) + bhh
                r = jax.nn.sigmoid(gi[:, 0:H] + gh[:, 0:H])
                z = jax.nn.sigmoid(gi[:, H:2 * H] + gh[:, H:2 * H])
                n = jnp.tanh(gi[:, 2 * H:3 * H] + r * gh[:, 2 * H:3 * H])
                h = (1.0 - z) * n + z * h
                outs.append(h)
            if layer + 1 < n_gru:
                x = jnp.stack(outs, axis=1)                  # (B, L, H) for next layer

        # Lane-dense flatten: (B, L*H), identical ordering to reshape(B, -1).
        flat = jnp.concatenate(outs, axis=1)

        # ---- Decoder (Linear stack, first layer split to skip the concat) + Softmax ----
        meta = meta_ref[...]                                 # metaDataModel never applied
        hdec = (jnp.dot(flat, w1f_ref[...], preferred_element_type=jnp.float32)
                + jnp.dot(meta, w1m_ref[...], preferred_element_type=jnp.float32)
                + b1_ref[...])
        for w_ref, b_ref in dec_rest:
            hdec = jnp.dot(hdec, w_ref[...], preferred_element_type=jnp.float32) + b_ref[...]
        m = jnp.max(hdec, axis=1, keepdims=True)
        e = jnp.exp(hdec - m)
        s = jnp.sum(e, axis=1, keepdims=True)
        out_ref[...] = e * pl.reciprocal(s, approx=True)     # divide on the EUP slot

    return kernel


def cnn_rnn_model_forward(params, audio, meta, h0, cfg):
    convs, gru, decoder = params["convs"], params["gru"], params["decoder"]
    n_conv, n_gru, n_dec = len(convs), len(gru), len(decoder)
    B = audio.shape[0]
    rnn_out = cfg["hidden"] * cfg["CNNOutputShape"]

    args = [audio]
    for w, b in convs:
        K, Cin, Cout = w.shape
        args += [w.reshape(K * Cin, Cout), b.reshape(1, Cout)]
    for wih, whh, bih, bhh in gru:
        args += [wih, whh, bih.reshape(1, -1), bhh.reshape(1, -1)]
    args += [h0, meta]
    w1, b1 = decoder[0]
    args += [w1[:rnn_out, :], w1[rnn_out:, :], b1.reshape(1, -1)]   # split first Linear
    for w, b in decoder[1:]:
        args += [w, b.reshape(1, -1)]

    out_dim = decoder[-1][0].shape[1]
    # TODO(synk): if B / numSequence ever scale up, add a leading grid axis over
    # batch with dimension_semantics=("parallel",) to use v7x's second TensorCore
    # and time-chunk BlockSpecs to respect its smaller VMEM.
    return pl.pallas_call(
        make_fused_forward_kernel(cfg, n_conv, n_gru, n_dec),
        out_shape=jax.ShapeDtypeStruct((B, out_dim), jnp.float32),
        in_specs=[VMEM_SPEC] * len(args),
        out_specs=VMEM_SPEC,
    )(*args)


# ------------------------------ Model plumbing ------------------------------
def make_config(numSequence, numAudioFeature, numMetaDataFeature, numTarget,
                numCNNLayer, numRNNLayer, numMetaDataLayer, numDecoderLayer,
                kernel_size, numStride):
    featureMapList = [int(numAudioFeature // i) for i in range(1, numCNNLayer + 2)]
    cnn_out = numSequence
    for _ in range(len(featureMapList) - 1):
        cnn_out = int((cnn_out - kernel_size) // numStride) + 1
    H = featureMapList[-1] // numRNNLayer
    rnn_out = H * cnn_out
    if numMetaDataLayer > 0:
        metaDataFeatureList = [numMetaDataFeature // int(i)
                               for i in reversed(np.linspace(1, numMetaDataFeature,
                                                             numMetaDataLayer + 1).tolist())]
    else:
        metaDataFeatureList = [0]
    rnn_plus_meta = rnn_out + metaDataFeatureList[-1]
    nodesList = [int(i // 1) for i in reversed(np.linspace(numTarget, rnn_plus_meta,
                                                           numDecoderLayer + 2).tolist())]
    return dict(featureMapList=featureMapList, kernel_size=kernel_size, stride=numStride,
                numRNNLayer=numRNNLayer, hidden=H, CNNOutputShape=cnn_out,
                nodesList=nodesList)


def init_params(key, cfg):
    keys = iter(jax.random.split(key, 64))
    fml, K = cfg["featureMapList"], cfg["kernel_size"]
    convs = []
    for i in range(len(fml) - 1):
        cin, cout = fml[i], fml[i + 1]
        bd = 1.0 / np.sqrt(cin * K)
        convs.append((jax.random.uniform(next(keys), (K, cin, cout), jnp.float32, -bd, bd),
                      jax.random.uniform(next(keys), (cout,), jnp.float32, -bd, bd)))
    H = cfg["hidden"]
    gru = []
    for layer in range(cfg["numRNNLayer"]):
        in_dim = fml[-1] if layer == 0 else H
        bd = 1.0 / np.sqrt(H)
        gru.append((jax.random.uniform(next(keys), (in_dim, 3 * H), jnp.float32, -bd, bd),
                    jax.random.uniform(next(keys), (H, 3 * H), jnp.float32, -bd, bd),
                    jax.random.uniform(next(keys), (3 * H,), jnp.float32, -bd, bd),
                    jax.random.uniform(next(keys), (3 * H,), jnp.float32, -bd, bd)))
    decoder = []
    nodes = cfg["nodesList"]
    for i in range(len(nodes) - 1):
        fin, fout = nodes[i], nodes[i + 1]
        bd = 1.0 / np.sqrt(fin)
        decoder.append((jax.random.uniform(next(keys), (fin, fout), jnp.float32, -bd, bd),
                        jax.random.uniform(next(keys), (fout,), jnp.float32, -bd, bd)))
    # NOTE: metaDataModel weights are intentionally not created — the PyTorch forward
    # never applies it ("'self.metaDataModel' in globals()" is always False), so
    # metaData passes through unchanged.
    return dict(convs=convs, gru=gru, decoder=decoder)


# ---------------------------- Pure-JAX reference ----------------------------
def reference_forward(params, audio, meta, h0, cfg):
    x = audio
    stride = cfg["stride"]
    for w, b in params["convs"]:
        B, S, Cin = x.shape
        K, _, Cout = w.shape
        Lout = (S - K) // stride + 1
        acc = jnp.zeros((B, Lout, Cout), jnp.float32)
        for k in range(K):
            xs = x[:, k:k + (Lout - 1) * stride + 1:stride, :]
            acc = acc + jnp.einsum("blc,co->blo", xs, w[k])
        x = jnp.maximum(acc + b, 0.0)
    y = x
    for layer, (wih, whh, bih, bhh) in enumerate(params["gru"]):
        H = h0.shape[-1]
        h = h0[layer]
        outs = []
        for t in range(y.shape[1]):
            gi = y[:, t, :] @ wih + bih
            gh = h @ whh + bhh
            r = jax.nn.sigmoid(gi[:, :H] + gh[:, :H])
            zg = jax.nn.sigmoid(gi[:, H:2 * H] + gh[:, H:2 * H])
            n = jnp.tanh(gi[:, 2 * H:] + r * gh[:, 2 * H:])
            h = (1.0 - zg) * n + zg * h
            outs.append(h)
        y = jnp.stack(outs, axis=1)
    flat = y.reshape(y.shape[0], -1)
    zcat = jnp.concatenate([flat, meta], axis=1)
    for w, b in params["decoder"]:
        zcat = zcat @ w + b
    return jax.nn.softmax(zcat, axis=1)


if __name__ == "__main__":
    B = 2
    numSequence, numAudioFeature = 16, 16
    numMetaDataFeature, numTarget = 8, 4
    numCNNLayer, numRNNLayer = 1, 2
    numMetaDataLayer, numDecoderLayer = 1, 1
    kernel_size, numStride = 3, 1

    cfg = make_config(numSequence, numAudioFeature, numMetaDataFeature, numTarget,
                      numCNNLayer, numRNNLayer, numMetaDataLayer, numDecoderLayer,
                      kernel_size, numStride)

    key = jax.random.PRNGKey(0)
    k_param, k_audio, k_meta, k_h0 = jax.random.split(key, 4)
    params = init_params(k_param, cfg)
    audio = jax.random.normal(k_audio, (B, numSequence, numAudioFeature), jnp.float32)
    meta = jax.random.normal(k_meta, (B, numMetaDataFeature), jnp.float32)
    # PyTorch forward draws a fresh torch.randn hidden state; we use a deterministic one.
    h0 = jax.random.normal(k_h0, (numRNNLayer, B, cfg["hidden"]), jnp.float32)

    out = jax.block_until_ready(cnn_rnn_model_forward(params, audio, meta, h0, cfg))

    ref = reference_forward(params, audio, meta, h0, cfg)
    np.testing.assert_allclose(np.asarray(out), np.asarray(ref), rtol=1e-3, atol=1e-3)
    assert out.shape == (B, numTarget)
    print("KERNEL_OK")
</pallas_src>

<mosaic_0001>
module attributes {stable_mosaic.version = 11 : i64} {
  func.func @kernel(%arg0: memref<2x16x16xf32, #tpu.memory_space<vmem>>, %arg1: memref<48x8xf32, #tpu.memory_space<vmem>>, %arg2: memref<1x8xf32, #tpu.memory_space<vmem>>, %arg3: memref<8x12xf32, #tpu.memory_space<vmem>>, %arg4: memref<4x12xf32, #tpu.memory_space<vmem>>, %arg5: memref<1x12xf32, #tpu.memory_space<vmem>>, %arg6: memref<1x12xf32, #tpu.memory_space<vmem>>, %arg7: memref<4x12xf32, #tpu.memory_space<vmem>>, %arg8: memref<4x12xf32, #tpu.memory_space<vmem>>, %arg9: memref<1x12xf32, #tpu.memory_space<vmem>>, %arg10: memref<1x12xf32, #tpu.memory_space<vmem>>, %arg11: memref<2x2x4xf32, #tpu.memory_space<vmem>>, %arg12: memref<2x8xf32, #tpu.memory_space<vmem>>, %arg13: memref<56x34xf32, #tpu.memory_space<vmem>>, %arg14: memref<8x34xf32, #tpu.memory_space<vmem>>, %arg15: memref<1x34xf32, #tpu.memory_space<vmem>>, %arg16: memref<34x4xf32, #tpu.memory_space<vmem>>, %arg17: memref<1x4xf32, #tpu.memory_space<vmem>>, %arg18: memref<2x4xf32, #tpu.memory_space<vmem>>) attributes {dimension_semantics = [], scalar_prefetch = 0 : i64, scratch_operands = 0 : i64, tpu.core_type = #tpu.core_type<tc>} {
    %c0 = arith.constant 0 : index
    %c0_0 = arith.constant 0 : index
    %c0_1 = arith.constant 0 : index
    %0 = vector.load %arg0[%c0, %c0_0, %c0_1] : memref<2x16x16xf32, #tpu.memory_space<vmem>>, vector<2x16x16xf32>
    %1 = vector.extract_strided_slice %0 {offsets = [0, 0, 0], sizes = [2, 14, 16], strides = [1, 1, 1]} : vector<2x16x16xf32> to vector<2x14x16xf32>
    %2 = vector.extract_strided_slice %0 {offsets = [0, 1, 0], sizes = [2, 14, 16], strides = [1, 1, 1]} : vector<2x16x16xf32> to vector<2x14x16xf32>
    %3 = vector.extract_strided_slice %0 {offsets = [0, 2, 0], sizes = [2, 14, 16], strides = [1, 1, 1]} : vector<2x16x16xf32> to vector<2x14x16xf32>
    %4 = tpu.concatenate %1, %2, %3 in 2 : vector<2x14x16xf32>, vector<2x14x16xf32>, vector<2x14x16xf32> -> vector<2x14x48xf32>
    %5 = vector.shape_cast %4 : vector<2x14x48xf32> to vector<28x48xf32>
    %c0_2 = arith.constant 0 : index
    %c0_3 = arith.constant 0 : index
    %6 = vector.load %arg1[%c0_2, %c0_3] : memref<48x8xf32, #tpu.memory_space<vmem>>, vector<48x8xf32>
    %cst = arith.constant dense<0.000000e+00> : vector<28x8xf32>
    %7 = tpu.matmul %5, %6, %cst {dimension_numbers = #tpu.dot_dimension_numbers<[1], [0], [0], [1], [0, 0, 1, 1], [], []>} : vector<28x48xf32>, vector<48x8xf32>, vector<28x8xf32> -> vector<28x8xf32>
    %c0_4 = arith.constant 0 : index
    %c0_5 = arith.constant 0 : index
    %8 = vector.load %arg2[%c0_4, %c0_5] : memref<1x8xf32, #tpu.memory_space<vmem>>, vector<1x8xf32>
    %9 = vector.broadcast %8 : vector<1x8xf32> to vector<28x8xf32>
    %10 = arith.addf %7, %9 : vector<28x8xf32>
    %cst_6 = arith.constant 0.000000e+00 : f32
    %11 = vector.broadcast %cst_6 : f32 to vector<28x8xf32>
    %12 = arith.maximumf %10, %11 : vector<28x8xf32>
    %13 = vector.shape_cast %12 : vector<28x8xf32> to vector<2x14x8xf32>
    %c0_7 = arith.constant 0 : index
    %c0_8 = arith.constant 0 : index
    %14 = vector.load %arg3[%c0_7, %c0_8] : memref<8x12xf32, #tpu.memory_space<vmem>>, vector<8x12xf32>
    %c0_9 = arith.constant 0 : index
    %c0_10 = arith.constant 0 : index
    %15 = vector.load %arg4[%c0_9, %c0_10] : memref<4x12xf32, #tpu.memory_space<vmem>>, vector<4x12xf32>
    %c0_11 = arith.constant 0 : index
    %c0_12 = arith.constant 0 : index
    %16 = vector.load %arg5[%c0_11, %c0_12] : memref<1x12xf32, #tpu.memory_space<vmem>>, vector<1x12xf32>
    %c0_13 = arith.constant 0 : index
    %c0_14 = arith.constant 0 : index
    %17 = vector.load %arg6[%c0_13, %c0_14] : memref<1x12xf32, #tpu.memory_space<vmem>>, vector<1x12xf32>
    %18 = vector.shape_cast %13 : vector<2x14x8xf32> to vector<28x8xf32>
    %cst_15 = arith.constant dense<0.000000e+00> : vector<28x12xf32>
    %19 = tpu.matmul %18, %14, %cst_15 {dimension_numbers = #tpu.dot_dimension_numbers<[1], [0], [0], [1], [0, 0, 1, 1], [], []>} : vector<28x8xf32>, vector<8x12xf32>, vector<28x12xf32> -> vector<28x12xf32>
    %20 = vector.broadcast %16 : vector<1x12xf32> to vector<28x12xf32>
    %21 = arith.addf %19, %20 : vector<28x12xf32>
    %22 = vector.shape_cast %21 : vector<28x12xf32> to vector<2x14x12xf32>
    %c0_16 = arith.constant 0 : index
    %c0_17 = arith.constant 0 : index
    %c0_18 = arith.constant 0 : index
    %23 = vector.load %arg11[%c0_16, %c0_17, %c0_18] : memref<2x2x4xf32, #tpu.memory_space<vmem>>, vector<1x2x4xf32>
    %24 = vector.shape_cast %23 : vector<1x2x4xf32> to vector<2x4xf32>
    %25 = vector.extract_strided_slice %22 {offsets = [0, 0, 0], sizes = [2, 1, 12], strides = [1, 1, 1]} : vector<2x14x12xf32> to vector<2x1x12xf32>
    %26 = vector.shape_cast %25 : vector<2x1x12xf32> to vector<2x12xf32>
    %cst_19 = arith.constant dense<0.000000e+00> : vector<2x12xf32>
    %27 = tpu.matmul %24, %15, %cst_19 {dimension_numbers = #tpu.dot_dimension_numbers<[1], [0], [0], [1], [0, 0, 1, 1], [], []>} : vector<2x4xf32>, vector<4x12xf32>, vector<2x12xf32> -> vector<2x12xf32>
    %28 = vector.broadcast %17 : vector<1x12xf32> to vector<2x12xf32>
    %29 = arith.addf %27, %28 : vector<2x12xf32>
    %30 = vector.extract_strided_slice %26 {offsets = [0, 0], sizes = [2, 4], strides = [1, 1]} : vector<2x12xf32> to vector<2x4xf32>
    %31 = vector.extract_strided_slice %29 {offsets = [0, 0], sizes = [2, 4], strides = [1, 1]} : vector<2x12xf32> to vector<2x4xf32>
    %32 = arith.addf %30, %31 : vector<2x4xf32>
    %33 = arith.negf %32 : vector<2x4xf32>
    %34 = math.exp %33 : vector<2x4xf32>
    %cst_20 = arith.constant 1.000000e+00 : f32
    %35 = vector.broadcast %cst_20 : f32 to vector<2x4xf32>
    %36 = arith.addf %35, %34 : vector<2x4xf32>
    %37 = arith.divf %35, %36 : vector<2x4xf32>
    %38 = vector.extract_strided_slice %26 {offsets = [0, 4], sizes = [2, 4], strides = [1, 1]} : vector<2x12xf32> to vector<2x4xf32>
    %39 = vector.extract_strided_slice %29 {offsets = [0, 4], sizes = [2, 4], strides = [1, 1]} : vector<2x12xf32> to vector<2x4xf32>
    %40 = arith.addf %38, %39 : vector<2x4xf32>
    %41 = arith.negf %40 : vector<2x4xf32>
    %42 = math.exp %41 : vector<2x4xf32>
    %cst_21 = arith.constant 1.000000e+00 : f32
    %43 = vector.broadcast %cst_21 : f32 to vector<2x4xf32>
    %44 = arith.addf %43, %42 : vector<2x4xf32>
    %45 = arith.divf %43, %44 : vector<2x4xf32>
    %46 = vector.extract_strided_slice %26 {offsets = [0, 8], sizes = [2, 4], strides = [1, 1]} : vector<2x12xf32> to vector<2x4xf32>
    %47 = vector.extract_strided_slice %29 {offsets = [0, 8], sizes = [2, 4], strides = [1, 1]} : vector<2x12xf32> to vector<2x4xf32>
    %48 = arith.mulf %37, %47 : vector<2x4xf32>
    %49 = arith.addf %46, %48 : vector<2x4xf32>
    %50 = math.tanh %49 : vector<2x4xf32>
    %cst_22 = arith.constant 1.000000e+00 : f32
    %51 = vector.broadcast %cst_22 : f32 to vector<2x4xf32>
    %52 = arith.subf %51, %45 : vector<2x4xf32>
    %53 = arith.mulf %52, %50 : vector<2x4xf32>
    %54 = arith.mulf %45, %24 : vector<2x4xf32>
    %55 = arith.addf %53, %54 : vector<2x4xf32>
    %56 = vector.extract_strided_slice %22 {offsets = [0, 1, 0], sizes = [2, 1, 12], strides = [1, 1, 1]} : vector<2x14x12xf32> to vector<2x1x12xf32>
    %57 = vector.shape_cast %56 : vector<2x1x12xf32> to vector<2x12xf32>
    %cst_23 = arith.constant dense<0.000000e+00> : vector<2x12xf32>
    %58 = tpu.matmul %55, %15, %cst_23 {dimension_numbers = #tpu.dot_dimension_numbers<[1], [0], [0], [1], [0, 0, 1, 1], [], []>} : vector<2x4xf32>, vector<4x12xf32>, vector<2x12xf32> -> vector<2x12xf32>
    %59 = vector.broadcast %17 : vector<1x12xf32> to vector<2x12xf32>
    %60 = arith.addf %58, %59 : vector<2x12xf32>
    %61 = vector.extract_strided_slice %57 {offsets = [0, 0], sizes = [2, 4], strides = [1, 1]} : vector<2x12xf32> to vector<2x4xf32>
    %62 = vector.extract_strided_slice %60 {offsets = [0, 0], sizes = [2, 4], strides = [1, 1]} : vector<2x12xf32> to vector<2x4xf32>
    %63 = arith.addf %61, %62 : vector<2x4xf32>
    %64 = arith.negf %63 : vector<2x4xf32>
    %65 = math.exp %64 : vector<2x4xf32>
    %cst_24 = arith.constant 1.000000e+00 : f32
    %66 = vector.broadcast %cst_24 : f32 to vector<2x4xf32>
    %67 = arith.addf %66, %65 : vector<2x4xf32>
    %68 = arith.divf %66, %67 : vector<2x4xf32>
    %69 = vector.extract_strided_slice %57 {offsets = [0, 4], sizes = [2, 4], strides = [1, 1]} : vector<2x12xf32> to vector<2x4xf32>
    %70 = vector.extract_strided_slice %60 {offsets = [0, 4], sizes = [2, 4], strides = [1, 1]} : vector<2x12xf32> to vector<2x4xf32>
    %71 = arith.addf %69, %70 : vector<2x4xf32>
    %72 = arith.negf %71 : vector<2x4xf32>
    %73 = math.exp %72 : vector<2x4xf32>
    %cst_25 = arith.constant 1.000000e+00 : f32
    %74 = vector.broadcast %cst_25 : f32 to vector<2x4xf32>
    %75 = arith.addf %74, %73 : vector<2x4xf32>
    %76 = arith.divf %74, %75 : vector<2x4xf32>
    %77 = vector.extract_strided_slice %57 {offsets = [0, 8], sizes = [2, 4], strides = [1, 1]} : vector<2x12xf32> to vector<2x4xf32>
    %78 = vector.extract_strided_slice %60 {offsets = [0, 8], sizes = [2, 4], strides = [1, 1]} : vector<2x12xf32> to vector<2x4xf32>
    %79 = arith.mulf %68, %78 : vector<2x4xf32>
    %80 = arith.addf %77, %79 : vector<2x4xf32>
    %81 = math.tanh %80 : vector<2x4xf32>
    %cst_26 = arith.constant 1.000000e+00 : f32
    %82 = vector.broadcast %cst_26 : f32 to vector<2x4xf32>
    %83 = arith.subf %82, %76 : vector<2x4xf32>
    %84 = arith.mulf %83, %81 : vector<2x4xf32>
    %85 = arith.mulf %76, %55 : vector<2x4xf32>
    %86 = arith.addf %84, %85 : vector<2x4xf32>
    %87 = vector.extract_strided_slice %22 {offsets = [0, 2, 0], sizes = [2, 1, 12], strides = [1, 1, 1]} : vector<2x14x12xf32> to vector<2x1x12xf32>
    %88 = vector.shape_cast %87 : vector<2x1x12xf32> to vector<2x12xf32>
    %cst_27 = arith.constant dense<0.000000e+00> : vector<2x12xf32>
    %89 = tpu.matmul %86, %15, %cst_27 {dimension_numbers = #tpu.dot_dimension_numbers<[1], [0], [0], [1], [0, 0, 1, 1], [], []>} : vector<2x4xf32>, vector<4x12xf32>, vector<2x12xf32> -> vector<2x12xf32>
    %90 = vector.broadcast %17 : vector<1x12xf32> to vector<2x12xf32>
    %91 = arith.addf %89, %90 : vector<2x12xf32>
    %92 = vector.extract_strided_slice %88 {offsets = [0, 0], sizes = [2, 4], strides = [1, 1]} : vector<2x12xf32> to vector<2x4xf32>
    %93 = vector.extract_strided_slice %91 {offsets = [0, 0], sizes = [2, 4], strides = [1, 1]} : vector<2x12xf32> to vector<2x4xf32>
    %94 = arith.addf %92, %93 : vector<2x4xf32>
    %95 = arith.negf %94 : vector<2x4xf32>
    %96 = math.exp %95 : vector<2x4xf32>
    %cst_28 = arith.constant 1.000000e+00 : f32
    %97 = vector.broadcast %cst_28 : f32 to vector<2x4xf32>
    %98 = arith.addf %97, %96 : vector<2x4xf32>
    %99 = arith.divf %97, %98 : vector<2x4xf32>
    %100 = vector.extract_strided_slice %88 {offsets = [0, 4], sizes = [2, 4], strides = [1, 1]} : vector<2x12xf32> to vector<2x4xf32>
    %101 = vector.extract_strided_slice %91 {offsets = [0, 4], sizes = [2, 4], strides = [1, 1]} : vector<2x12xf32> to vector<2x4xf32>
    %102 = arith.addf %100, %101 : vector<2x4xf32>
    %103 = arith.negf %102 : vector<2x4xf32>
    %104 = math.exp %103 : vector<2x4xf32>
    %cst_29 = arith.constant 1.000000e+00 : f32
    %105 = vector.broadcast %cst_29 : f32 to vector<2x4xf32>
    %106 = arith.addf %105, %104 : vector<2x4xf32>
    %107 = arith.divf %105, %106 : vector<2x4xf32>
    %108 = vector.extract_strided_slice %88 {offsets = [0, 8], sizes = [2, 4], strides = [1, 1]} : vector<2x12xf32> to vector<2x4xf32>
    %109 = vector.extract_strided_slice %91 {offsets = [0, 8], sizes = [2, 4], strides = [1, 1]} : vector<2x12xf32> to vector<2x4xf32>
    %110 = arith.mulf %99, %109 : vector<2x4xf32>
    %111 = arith.addf %108, %110 : vector<2x4xf32>
    %112 = math.tanh %111 : vector<2x4xf32>
    %cst_30 = arith.constant 1.000000e+00 : f32
    %113 = vector.broadcast %cst_30 : f32 to vector<2x4xf32>
    %114 = arith.subf %113, %107 : vector<2x4xf32>
    %115 = arith.mulf %114, %112 : vector<2x4xf32>
    %116 = arith.mulf %107, %86 : vector<2x4xf32>
    %117 = arith.addf %115, %116 : vector<2x4xf32>
    %118 = vector.extract_strided_slice %22 {offsets = [0, 3, 0], sizes = [2, 1, 12], strides = [1, 1, 1]} : vector<2x14x12xf32> to vector<2x1x12xf32>
    %119 = vector.shape_cast %118 : vector<2x1x12xf32> to vector<2x12xf32>
    %cst_31 = arith.constant dense<0.000000e+00> : vector<2x12xf32>
    %120 = tpu.matmul %117, %15, %cst_31 {dimension_numbers = #tpu.dot_dimension_numbers<[1], [0], [0], [1], [0, 0, 1, 1], [], []>} : vector<2x4xf32>, vector<4x12xf32>, vector<2x12xf32> -> vector<2x12xf32>
    %121 = vector.broadcast %17 : vector<1x12xf32> to vector<2x12xf32>
    %122 = arith.addf %120, %121 : vector<2x12xf32>
    %123 = vector.extract_strided_slice %119 {offsets = [0, 0], sizes = [2, 4], strides = [1, 1]} : vector<2x12xf32> to vector<2x4xf32>
    %124 = vector.extract_strided_slice %122 {offsets = [0, 0], sizes = [2, 4], strides = [1, 1]} : vector<2x12xf32> to vector<2x4xf32>
    %125 = arith.addf %123, %124 : vector<2x4xf32>
    %126 = arith.negf %125 : vector<2x4xf32>
    %127 = math.exp %126 : vector<2x4xf32>
    %cst_32 = arith.constant 1.000000e+00 : f32
    %128 = vector.broadcast %cst_32 : f32 to vector<2x4xf32>
    %129 = arith.addf %128, %127 : vector<2x4xf32>
    %130 = arith.divf %128, %129 : vector<2x4xf32>
    %131 = vector.extract_strided_slice %119 {offsets = [0, 4], sizes = [2, 4], strides = [1, 1]} : vector<2x12xf32> to vector<2x4xf32>
    %132 = vector.extract_strided_slice %122 {offsets = [0, 4], sizes = [2, 4], strides = [1, 1]} : vector<2x12xf32> to vector<2x4xf32>
    %133 = arith.addf %131, %132 : vector<2x4xf32>
    %134 = arith.negf %133 : vector<2x4xf32>
    %135 = math.exp %134 : vector<2x4xf32>
    %cst_33 = arith.constant 1.000000e+00 : f32
    %136 = vector.broadcast %cst_33 : f32 to vector<2x4xf32>
    %137 = arith.addf %136, %135 : vector<2x4xf32>
    %138 = arith.divf %136, %137 : vector<2x4xf32>
    %139 = vector.extract_strided_slice %119 {offsets = [0, 8], sizes = [2, 4], strides = [1, 1]} : vector<2x12xf32> to vector<2x4xf32>
    %140 = vector.extract_strided_slice %122 {offsets = [0, 8], sizes = [2, 4], strides = [1, 1]} : vector<2x12xf32> to vector<2x4xf32>
    %141 = arith.mulf %130, %140 : vector<2x4xf32>
    %142 = arith.addf %139, %141 : vector<2x4xf32>
    %143 = math.tanh %142 : vector<2x4xf32>
    %cst_34 = arith.constant 1.000000e+00 : f32
    %144 = vector.broadcast %cst_34 : f32 to vector<2x4xf32>
    %145 = arith.subf %144, %138 : vector<2x4xf32>
    %146 = arith.mulf %145, %143 : vector<2x4xf32>
    %147 = arith.mulf %138, %117 : vector<2x4xf32>
    %148 = arith.addf %146, %147 : vector<2x4xf32>
    %149 = vector.extract_strided_slice %22 {offsets = [0, 4, 0], sizes = [2, 1, 12], strides = [1, 1, 1]} : vector<2x14x12xf32> to vector<2x1x12xf32>
    %150 = vector.shape_cast %149 : vector<2x1x12xf32> to vector<2x12xf32>
    %cst_35 = arith.constant dense<0.000000e+00> : vector<2x12xf32>
    %151 = tpu.matmul %148, %15, %cst_35 {dimension_numbers = #tpu.dot_dimension_numbers<[1], [0], [0], [1], [0, 0, 1, 1], [], []>} : vector<2x4xf32>, vector<4x12xf32>, vector<2x12xf32> -> vector<2x12xf32>
    %152 = vector.broadcast %17 : vector<1x12xf32> to vector<2x12xf32>
    %153 = arith.addf %151, %152 : vector<2x12xf32>
    %154 = vector.extract_strided_slice %150 {offsets = [0, 0], sizes = [2, 4], strides = [1, 1]} : vector<2x12xf32> to vector<2x4xf32>
    %155 = vector.extract_strided_slice %153 {offsets = [0, 0], sizes = [2, 4], strides = [1, 1]} : vector<2x12xf32> to vector<2x4xf32>
    %156 = arith.addf %154, %155 : vector<2x4xf32>
    %157 = arith.negf %156 : vector<2x4xf32>
    %158 = math.exp %157 : vector<2x4xf32>
    %cst_36 = arith.constant 1.000000e+00 : f32
    %159 = vector.broadcast %cst_36 : f32 to vector<2x4xf32>
    %160 = arith.addf %159, %158 : vector<2x4xf32>
    %161 = arith.divf %159, %160 : vector<2x4xf32>
    %162 = vector.extract_strided_slice %150 {offsets = [0, 4], sizes = [2, 4], strides = [1, 1]} : vector<2x12xf32> to vector<2x4xf32>
    %163 = vector.extract_strided_slice %153 {offsets = [0, 4], sizes = [2, 4], strides = [1, 1]} : vector<2x12xf32> to vector<2x4xf32>
    %164 = arith.addf %162, %163 : vector<2x4xf32>
    %165 = arith.negf %164 : vector<2x4xf32>
    %166 = math.exp %165 : vector<2x4xf32>
    %cst_37 = arith.constant 1.000000e+00 : f32
    %167 = vector.broadcast %cst_37 : f32 to vector<2x4xf32>
    %168 = arith.addf %167, %166 : vector<2x4xf32>
    %169 = arith.divf %167, %168 : vector<2x4xf32>
    %170 = vector.extract_strided_slice %150 {offsets = [0, 8], sizes = [2, 4], strides = [1, 1]} : vector<2x12xf32> to vector<2x4xf32>
    %171 = vector.extract_strided_slice %153 {offsets = [0, 8], sizes = [2, 4], strides = [1, 1]} : vector<2x12xf32> to vector<2x4xf32>
    %172 = arith.mulf %161, %171 : vector<2x4xf32>
    %173 = arith.addf %170, %172 : vector<2x4xf32>
    %174 = math.tanh %173 : vector<2x4xf32>
    %cst_38 = arith.constant 1.000000e+00 : f32
    %175 = vector.broadcast %cst_38 : f32 to vector<2x4xf32>
    %176 = arith.subf %175, %169 : vector<2x4xf32>
    %177 = arith.mulf %176, %174 : vector<2x4xf32>
    %178 = arith.mulf %169, %148 : vector<2x4xf32>
    %179 = arith.addf %177, %178 : vector<2x4xf32>
    %180 = vector.extract_strided_slice %22 {offsets = [0, 5, 0], sizes = [2, 1, 12], strides = [1, 1, 1]} : vector<2x14x12xf32> to vector<2x1x12xf32>
    %181 = vector.shape_cast %180 : vector<2x1x12xf32> to vector<2x12xf32>
    %cst_39 = arith.constant dense<0.000000e+00> : vector<2x12xf32>
    %182 = tpu.matmul %179, %15, %cst_39 {dimension_numbers = #tpu.dot_dimension_numbers<[1], [0], [0], [1], [0, 0, 1, 1], [], []>} : vector<2x4xf32>, vector<4x12xf32>, vector<2x12xf32> -> vector<2x12xf32>
    %183 = vector.broadcast %17 : vector<1x12xf32> to vector<2x12xf32>
    %184 = arith.addf %182, %183 : vector<2x12xf32>
    %185 = vector.extract_strided_slice %181 {offsets = [0, 0], sizes = [2, 4], strides = [1, 1]} : vector<2x12xf32> to vector<2x4xf32>
    %186 = vector.extract_strided_slice %184 {offsets = [0, 0], sizes = [2, 4], strides = [1, 1]} : vector<2x12xf32> to vector<2x4xf32>
    %187 = arith.addf %185, %186 : vector<2x4xf32>
    %188 = arith.negf %187 : vector<2x4xf32>
    %189 = math.exp %188 : vector<2x4xf32>
    %cst_40 = arith.constant 1.000000e+00 : f32
    %190 = vector.broadcast %cst_40 : f32 to vector<2x4xf32>
    %191 = arith.addf %190, %189 : vector<2x4xf32>
    %192 = arith.divf %190, %191 : vector<2x4xf32>
    %193 = vector.extract_strided_slice %181 {offsets = [0, 4], sizes = [2, 4], strides = [1, 1]} : vector<2x12xf32> to vector<2x4xf32>
    %194 = vector.extract_strided_slice %184 {offsets = [0, 4], sizes = [2, 4], strides = [1, 1]} : vector<2x12xf32> to vector<2x4xf32>
    %195 = arith.addf %193, %194 : vector<2x4xf32>
    %196 = arith.negf %195 : vector<2x4xf32>
    %197 = math.exp %196 : vector<2x4xf32>
    %cst_41 = arith.constant 1.000000e+00 : f32
    %198 = vector.broadcast %cst_41 : f32 to vector<2x4xf32>
    %199 = arith.addf %198, %197 : vector<2x4xf32>
    %200 = arith.divf %198, %199 : vector<2x4xf32>
    %201 = vector.extract_strided_slice %181 {offsets = [0, 8], sizes = [2, 4], strides = [1, 1]} : vector<2x12xf32> to vector<2x4xf32>
    %202 = vector.extract_strided_slice %184 {offsets = [0, 8], sizes = [2, 4], strides = [1, 1]} : vector<2x12xf32> to vector<2x4xf32>
    %203 = arith.mulf %192, %202 : vector<2x4xf32>
    %204 = arith.addf %201, %203 : vector<2x4xf32>
    %205 = math.tanh %204 : vector<2x4xf32>
    %cst_42 = arith.constant 1.000000e+00 : f32
    %206 = vector.broadcast %cst_42 : f32 to vector<2x4xf32>
    %207 = arith.subf %206, %200 : vector<2x4xf32>
    %208 = arith.mulf %207, %205 : vector<2x4xf32>
    %209 = arith.mulf %200, %179 : vector<2x4xf32>
    %210 = arith.addf %208, %209 : vector<2x4xf32>
    %211 = vector.extract_strided_slice %22 {offsets = [0, 6, 0], sizes = [2, 1, 12], strides = [1, 1, 1]} : vector<2x14x12xf32> to vector<2x1x12xf32>
    %212 = vector.shape_cast %211 : vector<2x1x12xf32> to vector<2x12xf32>
    %cst_43 = arith.constant dense<0.000000e+00> : vector<2x12xf32>
    %213 = tpu.matmul %210, %15, %cst_43 {dimension_numbers = #tpu.dot_dimension_numbers<[1], [0], [0], [1], [0, 0, 1, 1], [], []>} : vector<2x4xf32>, vector<4x12xf32>, vector<2x12xf32> -> vector<2x12xf32>
    %214 = vector.broadcast %17 : vector<1x12xf32> to vector<2x12xf32>
    %215 = arith.addf %213, %214 : vector<2x12xf32>
    %216 = vector.extract_strided_slice %212 {offsets = [0, 0], sizes = [2, 4], strides = [1, 1]} : vector<2x12xf32> to vector<2x4xf32>
    %217 = vector.extract_strided_slice %215 {offsets = [0, 0], sizes = [2, 4], strides = [1, 1]} : vector<2x12xf32> to vector<2x4xf32>
    %218 = arith.addf %216, %217 : vector<2x4xf32>
    %219 = arith.negf %218 : vector<2x4xf32>
    %220 = math.exp %219 : vector<2x4xf32>
    %cst_44 = arith.constant 1.000000e+00 : f32
    %221 = vector.broadcast %cst_44 : f32 to vector<2x4xf32>
    %222 = arith.addf %221, %220 : vector<2x4xf32>
    %223 = arith.divf %221, %222 : vector<2x4xf32>
    %224 = vector.extract_strided_slice %212 {offsets = [0, 4], sizes = [2, 4], strides = [1, 1]} : vector<2x12xf32> to vector<2x4xf32>
    %225 = vector.extract_strided_slice %215 {offsets = [0, 4], sizes = [2, 4], strides = [1, 1]} : vector<2x12xf32> to vector<2x4xf32>
    %226 = arith.addf %224, %225 : vector<2x4xf32>
    %227 = arith.negf %226 : vector<2x4xf32>
    %228 = math.exp %227 : vector<2x4xf32>
    %cst_45 = arith.constant 1.000000e+00 : f32
    %229 = vector.broadcast %cst_45 : f32 to vector<2x4xf32>
    %230 = arith.addf %229, %228 : vector<2x4xf32>
    %231 = arith.divf %229, %230 : vector<2x4xf32>
    %232 = vector.extract_strided_slice %212 {offsets = [0, 8], sizes = [2, 4], strides = [1, 1]} : vector<2x12xf32> to vector<2x4xf32>
    %233 = vector.extract_strided_slice %215 {offsets = [0, 8], sizes = [2, 4], strides = [1, 1]} : vector<2x12xf32> to vector<2x4xf32>
    %234 = arith.mulf %223, %233 : vector<2x4xf32>
    %235 = arith.addf %232, %234 : vector<2x4xf32>
    %236 = math.tanh %235 : vector<2x4xf32>
    %cst_46 = arith.constant 1.000000e+00 : f32
    %237 = vector.broadcast %cst_46 : f32 to vector<2x4xf32>
    %238 = arith.subf %237, %231 : vector<2x4xf32>
    %239 = arith.mulf %238, %236 : vector<2x4xf32>
    %240 = arith.mulf %231, %210 : vector<2x4xf32>
    %241 = arith.addf %239, %240 : vector<2x4xf32>
    %242 = vector.extract_strided_slice %22 {offsets = [0, 7, 0], sizes = [2, 1, 12], strides = [1, 1, 1]} : vector<2x14x12xf32> to vector<2x1x12xf32>
    %243 = vector.shape_cast %242 : vector<2x1x12xf32> to vector<2x12xf32>
    %cst_47 = arith.constant dense<0.000000e+00> : vector<2x12xf32>
    %244 = tpu.matmul %241, %15, %cst_47 {dimension_numbers = #tpu.dot_dimension_numbers<[1], [0], [0], [1], [0, 0, 1, 1], [], []>} : vector<2x4xf32>, vector<4x12xf32>, vector<2x12xf32> -> vector<2x12xf32>
    %245 = vector.broadcast %17 : vector<1x12xf32> to vector<2x12xf32>
    %246 = arith.addf %244, %245 : vector<2x12xf32>
    %247 = vector.extract_strided_slice %243 {offsets = [0, 0], sizes = [2, 4], strides = [1, 1]} : vector<2x12xf32> to vector<2x4xf32>
    %248 = vector.extract_strided_slice %246 {offsets = [0, 0], sizes = [2, 4], strides = [1, 1]} : vector<2x12xf32> to vector<2x4xf32>
    %249 = arith.addf %247, %248 : vector<2x4xf32>
    %250 = arith.negf %249 : vector<2x4xf32>
    %251 = math.exp %250 : vector<2x4xf32>
    %cst_48 = arith.constant 1.000000e+00 : f32
    %252 = vector.broadcast %cst_48 : f32 to vector<2x4xf32>
    %253 = arith.addf %252, %251 : vector<2x4xf32>
    %254 = arith.divf %252, %253 : vector<2x4xf32>
    %255 = vector.extract_strided_slice %243 {offsets = [0, 4], sizes = [2, 4], strides = [1, 1]} : vector<2x12xf32> to vector<2x4xf32>
    %256 = vector.extract_strided_slice %246 {offsets = [0, 4], sizes = [2, 4], strides = [1, 1]} : vector<2x12xf32> to vector<2x4xf32>
    %257 = arith.addf %255, %256 : vector<2x4xf32>
    %258 = arith.negf %257 : vector<2x4xf32>
    %259 = math.exp %258 : vector<2x4xf32>
    %cst_49 = arith.constant 1.000000e+00 : f32
    %260 = vector.broadcast %cst_49 : f32 to vector<2x4xf32>
    %261 = arith.addf %260, %259 : vector<2x4xf32>
    %262 = arith.divf %260, %261 : vector<2x4xf32>
    %263 = vector.extract_strided_slice %243 {offsets = [0, 8], sizes = [2, 4], strides = [1, 1]} : vector<2x12xf32> to vector<2x4xf32>
    %264 = vector.extract_strided_slice %246 {offsets = [0, 8], sizes = [2, 4], strides = [1, 1]} : vector<2x12xf32> to vector<2x4xf32>
    %265 = arith.mulf %254, %264 : vector<2x4xf32>
    %266 = arith.addf %263, %265 : vector<2x4xf32>
    %267 = math.tanh %266 : vector<2x4xf32>
    %cst_50 = arith.constant 1.000000e+00 : f32
    %268 = vector.broadcast %cst_50 : f32 to vector<2x4xf32>
    %269 = arith.subf %268, %262 : vector<2x4xf32>
    %270 = arith.mulf %269, %267 : vector<2x4xf32>
    %271 = arith.mulf %262, %241 : vector<2x4xf32>
    %272 = arith.addf %270, %271 : vector<2x4xf32>
    %273 = vector.extract_strided_slice %22 {offsets = [0, 8, 0], sizes = [2, 1, 12], strides = [1, 1, 1]} : vector<2x14x12xf32> to vector<2x1x12xf32>
    %274 = vector.shape_cast %273 : vector<2x1x12xf32> to vector<2x12xf32>
    %cst_51 = arith.constant dense<0.000000e+00> : vector<2x12xf32>
    %275 = tpu.matmul %272, %15, %cst_51 {dimension_numbers = #tpu.dot_dimension_numbers<[1], [0], [0], [1], [0, 0, 1, 1], [], []>} : vector<2x4xf32>, vector<4x12xf32>, vector<2x12xf32> -> vector<2x12xf32>
    %276 = vector.broadcast %17 : vector<1x12xf32> to vector<2x12xf32>
    %277 = arith.addf %275, %276 : vector<2x12xf32>
    %278 = vector.extract_strided_slice %274 {offsets = [0, 0], sizes = [2, 4], strides = [1, 1]} : vector<2x12xf32> to vector<2x4xf32>
    %279 = vector.extract_strided_slice %277 {offsets = [0, 0], sizes = [2, 4], strides = [1, 1]} : vector<2x12xf32> to vector<2x4xf32>
    %280 = arith.addf %278, %279 : vector<2x4xf32>
    %281 = arith.negf %280 : vector<2x4xf32>
    %282 = math.exp %281 : vector<2x4xf32>
    %cst_52 = arith.constant 1.000000e+00 : f32
    %283 = vector.broadcast %cst_52 : f32 to vector<2x4xf32>
    %284 = arith.addf %283, %282 : vector<2x4xf32>
    %285 = arith.divf %283, %284 : vector<2x4xf32>
    %286 = vector.extract_strided_slice %274 {offsets = [0, 4], sizes = [2, 4], strides = [1, 1]} : vector<2x12xf32> to vector<2x4xf32>
    %287 = vector.extract_strided_slice %277 {offsets = [0, 4], sizes = [2, 4], strides = [1, 1]} : vector<2x12xf32> to vector<2x4xf32>
    %288 = arith.addf %286, %287 : vector<2x4xf32>
    %289 = arith.negf %288 : vector<2x4xf32>
    %290 = math.exp %289 : vector<2x4xf32>
    %cst_53 = arith.constant 1.000000e+00 : f32
    %291 = vector.broadcast %cst_53 : f32 to vector<2x4xf32>
    %292 = arith.addf %291, %290 : vector<2x4xf32>
    %293 = arith.divf %291, %292 : vector<2x4xf32>
    %294 = vector.extract_strided_slice %274 {offsets = [0, 8], sizes = [2, 4], strides = [1, 1]} : vector<2x12xf32> to vector<2x4xf32>
    %295 = vector.extract_strided_slice %277 {offsets = [0, 8], sizes = [2, 4], strides = [1, 1]} : vector<2x12xf32> to vector<2x4xf32>
    %296 = arith.mulf %285, %295 : vector<2x4xf32>
    %297 = arith.addf %294, %296 : vector<2x4xf32>
    %298 = math.tanh %297 : vector<2x4xf32>
    %cst_54 = arith.constant 1.000000e+00 : f32
    %299 = vector.broadcast %cst_54 : f32 to vector<2x4xf32>
    %300 = arith.subf %299, %293 : vector<2x4xf32>
    %301 = arith.mulf %300, %298 : vector<2x4xf32>
    %302 = arith.mulf %293, %272 : vector<2x4xf32>
    %303 = arith.addf %301, %302 : vector<2x4xf32>
    %304 = vector.extract_strided_slice %22 {offsets = [0, 9, 0], sizes = [2, 1, 12], strides = [1, 1, 1]} : vector<2x14x12xf32> to vector<2x1x12xf32>
    %305 = vector.shape_cast %304 : vector<2x1x12xf32> to vector<2x12xf32>
    %cst_55 = arith.constant dense<0.000000e+00> : vector<2x12xf32>
    %306 = tpu.matmul %303, %15, %cst_55 {dimension_numbers = #tpu.dot_dimension_numbers<[1], [0], [0], [1], [0, 0, 1, 1], [], []>} : vector<2x4xf32>, vector<4x12xf32>, vector<2x12xf32> -> vector<2x12xf32>
    %307 = vector.broadcast %17 : vector<1x12xf32> to vector<2x12xf32>
    %308 = arith.addf %306, %307 : vector<2x12xf32>
    %309 = vector.extract_strided_slice %305 {offsets = [0, 0], sizes = [2, 4], strides = [1, 1]} : vector<2x12xf32> to vector<2x4xf32>
    %310 = vector.extract_strided_slice %308 {offsets = [0, 0], sizes = [2, 4], strides = [1, 1]} : vector<2x12xf32> to vector<2x4xf32>
    %311 = arith.addf %309, %310 : vector<2x4xf32>
    %312 = arith.negf %311 : vector<2x4xf32>
    %313 = math.exp %312 : vector<2x4xf32>
    %cst_56 = arith.constant 1.000000e+00 : f32
    %314 = vector.broadcast %cst_56 : f32 to vector<2x4xf32>
    %315 = arith.addf %314, %313 : vector<2x4xf32>
    %316 = arith.divf %314, %315 : vector<2x4xf32>
    %317 = vector.extract_strided_slice %305 {offsets = [0, 4], sizes = [2, 4], strides = [1, 1]} : vector<2x12xf32> to vector<2x4xf32>
    %318 = vector.extract_strided_slice %308 {offsets = [0, 4], sizes = [2, 4], strides = [1, 1]} : vector<2x12xf32> to vector<2x4xf32>
    %319 = arith.addf %317, %318 : vector<2x4xf32>
    %320 = arith.negf %319 : vector<2x4xf32>
    %321 = math.exp %320 : vector<2x4xf32>
    %cst_57 = arith.constant 1.000000e+00 : f32
    %322 = vector.broadcast %cst_57 : f32 to vector<2x4xf32>
    %323 = arith.addf %322, %321 : vector<2x4xf32>
    %324 = arith.divf %322, %323 : vector<2x4xf32>
    %325 = vector.extract_strided_slice %305 {offsets = [0, 8], sizes = [2, 4], strides = [1, 1]} : vector<2x12xf32> to vector<2x4xf32>
    %326 = vector.extract_strided_slice %308 {offsets = [0, 8], sizes = [2, 4], strides = [1, 1]} : vector<2x12xf32> to vector<2x4xf32>
    %327 = arith.mulf %316, %326 : vector<2x4xf32>
    %328 = arith.addf %325, %327 : vector<2x4xf32>
    %329 = math.tanh %328 : vector<2x4xf32>
    %cst_58 = arith.constant 1.000000e+00 : f32
    %330 = vector.broadcast %cst_58 : f32 to vector<2x4xf32>
    %331 = arith.subf %330, %324 : vector<2x4xf32>
    %332 = arith.mulf %331, %329 : vector<2x4xf32>
    %333 = arith.mulf %324, %303 : vector<2x4xf32>
    %334 = arith.addf %332, %333 : vector<2x4xf32>
    %335 = vector.extract_strided_slice %22 {offsets = [0, 10, 0], sizes = [2, 1, 12], strides = [1, 1, 1]} : vector<2x14x12xf32> to vector<2x1x12xf32>
    %336 = vector.shape_cast %335 : vector<2x1x12xf32> to vector<2x12xf32>
    %cst_59 = arith.constant dense<0.000000e+00> : vector<2x12xf32>
    %337 = tpu.matmul %334, %15, %cst_59 {dimension_numbers = #tpu.dot_dimension_numbers<[1], [0], [0], [1], [0, 0, 1, 1], [], []>} : vector<2x4xf32>, vector<4x12xf32>, vector<2x12xf32> -> vector<2x12xf32>
    %338 = vector.broadcast %17 : vector<1x12xf32> to vector<2x12xf32>
    %339 = arith.addf %337, %338 : vector<2x12xf32>
    %340 = vector.extract_strided_slice %336 {offsets = [0, 0], sizes = [2, 4], strides = [1, 1]} : vector<2x12xf32> to vector<2x4xf32>
    %341 = vector.extract_strided_slice %339 {offsets = [0, 0], sizes = [2, 4], strides = [1, 1]} : vector<2x12xf32> to vector<2x4xf32>
    %342 = arith.addf %340, %341 : vector<2x4xf32>
    %343 = arith.negf %342 : vector<2x4xf32>
    %344 = math.exp %343 : vector<2x4xf32>
    %cst_60 = arith.constant 1.000000e+00 : f32
    %345 = vector.broadcast %cst_60 : f32 to vector<2x4xf32>
    %346 = arith.addf %345, %344 : vector<2x4xf32>
    %347 = arith.divf %345, %346 : vector<2x4xf32>
    %348 = vector.extract_strided_slice %336 {offsets = [0, 4], sizes = [2, 4], strides = [1, 1]} : vector<2x12xf32> to vector<2x4xf32>
    %349 = vector.extract_strided_slice %339 {offsets = [0, 4], sizes = [2, 4], strides = [1, 1]} : vector<2x12xf32> to vector<2x4xf32>
    %350 = arith.addf %348, %349 : vector<2x4xf32>
    %351 = arith.negf %350 : vector<2x4xf32>
    %352 = math.exp %351 : vector<2x4xf32>
    %cst_61 = arith.constant 1.000000e+00 : f32
    %353 = vector.broadcast %cst_61 : f32 to vector<2x4xf32>
    %354 = arith.addf %353, %352 : vector<2x4xf32>
    %355 = arith.divf %353, %354 : vector<2x4xf32>
    %356 = vector.extract_strided_slice %336 {offsets = [0, 8], sizes = [2, 4], strides = [1, 1]} : vector<2x12xf32> to vector<2x4xf32>
    %357 = vector.extract_strided_slice %339 {offsets = [0, 8], sizes = [2, 4], strides = [1, 1]} : vector<2x12xf32> to vector<2x4xf32>
    %358 = arith.mulf %347, %357 : vector<2x4xf32>
    %359 = arith.addf %356, %358 : vector<2x4xf32>
    %360 = math.tanh %359 : vector<2x4xf32>
    %cst_62 = arith.constant 1.000000e+00 : f32
    %361 = vector.broadcast %cst_62 : f32 to vector<2x4xf32>
    %362 = arith.subf %361, %355 : vector<2x4xf32>
    %363 = arith.mulf %362, %360 : vector<2x4xf32>
    %364 = arith.mulf %355, %334 : vector<2x4xf32>
    %365 = arith.addf %363, %364 : vector<2x4xf32>
    %366 = vector.extract_strided_slice %22 {offsets = [0, 11, 0], sizes = [2, 1, 12], strides = [1, 1, 1]} : vector<2x14x12xf32> to vector<2x1x12xf32>
    %367 = vector.shape_cast %366 : vector<2x1x12xf32> to vector<2x12xf32>
    %cst_63 = arith.constant dense<0.000000e+00> : vector<2x12xf32>
    %368 = tpu.matmul %365, %15, %cst_63 {dimension_numbers = #tpu.dot_dimension_numbers<[1], [0], [0], [1], [0, 0, 1, 1], [], []>} : vector<2x4xf32>, vector<4x12xf32>, vector<2x12xf32> -> vector<2x12xf32>
    %369 = vector.broadcast %17 : vector<1x12xf32> to vector<2x12xf32>
    %370 = arith.addf %368, %369 : vector<2x12xf32>
    %371 = vector.extract_strided_slice %367 {offsets = [0, 0], sizes = [2, 4], strides = [1, 1]} : vector<2x12xf32> to vector<2x4xf32>
    %372 = vector.extract_strided_slice %370 {offsets = [0, 0], sizes = [2, 4], strides = [1, 1]} : vector<2x12xf32> to vector<2x4xf32>
    %373 = arith.addf %371, %372 : vector<2x4xf32>
    %374 = arith.negf %373 : vector<2x4xf32>
    %375 = math.exp %374 : vector<2x4xf32>
    %cst_64 = arith.constant 1.000000e+00 : f32
    %376 = vector.broadcast %cst_64 : f32 to vector<2x4xf32>
    %377 = arith.addf %376, %375 : vector<2x4xf32>
    %378 = arith.divf %376, %377 : vector<2x4xf32>
    %379 = vector.extract_strided_slice %367 {offsets = [0, 4], sizes = [2, 4], strides = [1, 1]} : vector<2x12xf32> to vector<2x4xf32>
    %380 = vector.extract_strided_slice %370 {offsets = [0, 4], sizes = [2, 4], strides = [1, 1]} : vector<2x12xf32> to vector<2x4xf32>
    %381 = arith.addf %379, %380 : vector<2x4xf32>
    %382 = arith.negf %381 : vector<2x4xf32>
    %383 = math.exp %382 : vector<2x4xf32>
    %cst_65 = arith.constant 1.000000e+00 : f32
    %384 = vector.broadcast %cst_65 : f32 to vector<2x4xf32>
    %385 = arith.addf %384, %383 : vector<2x4xf32>
    %386 = arith.divf %384, %385 : vector<2x4xf32>
    %387 = vector.extract_strided_slice %367 {offsets = [0, 8], sizes = [2, 4], strides = [1, 1]} : vector<2x12xf32> to vector<2x4xf32>
    %388 = vector.extract_strided_slice %370 {offsets = [0, 8], sizes = [2, 4], strides = [1, 1]} : vector<2x12xf32> to vector<2x4xf32>
    %389 = arith.mulf %378, %388 : vector<2x4xf32>
    %390 = arith.addf %387, %389 : vector<2x4xf32>
    %391 = math.tanh %390 : vector<2x4xf32>
    %cst_66 = arith.constant 1.000000e+00 : f32
    %392 = vector.broadcast %cst_66 : f32 to vector<2x4xf32>
    %393 = arith.subf %392, %386 : vector<2x4xf32>
    %394 = arith.mulf %393, %391 : vector<2x4xf32>
    %395 = arith.mulf %386, %365 : vector<2x4xf32>
    %396 = arith.addf %394, %395 : vector<2x4xf32>
    %397 = vector.extract_strided_slice %22 {offsets = [0, 12, 0], sizes = [2, 1, 12], strides = [1, 1, 1]} : vector<2x14x12xf32> to vector<2x1x12xf32>
    %398 = vector.shape_cast %397 : vector<2x1x12xf32> to vector<2x12xf32>
    %cst_67 = arith.constant dense<0.000000e+00> : vector<2x12xf32>
    %399 = tpu.matmul %396, %15, %cst_67 {dimension_numbers = #tpu.dot_dimension_numbers<[1], [0], [0], [1], [0, 0, 1, 1], [], []>} : vector<2x4xf32>, vector<4x12xf32>, vector<2x12xf32> -> vector<2x12xf32>
    %400 = vector.broadcast %17 : vector<1x12xf32> to vector<2x12xf32>
    %401 = arith.addf %399, %400 : vector<2x12xf32>
    %402 = vector.extract_strided_slice %398 {offsets = [0, 0], sizes = [2, 4], strides = [1, 1]} : vector<2x12xf32> to vector<2x4xf32>
    %403 = vector.extract_strided_slice %401 {offsets = [0, 0], sizes = [2, 4], strides = [1, 1]} : vector<2x12xf32> to vector<2x4xf32>
    %404 = arith.addf %402, %403 : vector<2x4xf32>
    %405 = arith.negf %404 : vector<2x4xf32>
    %406 = math.exp %405 : vector<2x4xf32>
    %cst_68 = arith.constant 1.000000e+00 : f32
    %407 = vector.broadcast %cst_68 : f32 to vector<2x4xf32>
    %408 = arith.addf %407, %406 : vector<2x4xf32>
    %409 = arith.divf %407, %408 : vector<2x4xf32>
    %410 = vector.extract_strided_slice %398 {offsets = [0, 4], sizes = [2, 4], strides = [1, 1]} : vector<2x12xf32> to vector<2x4xf32>
    %411 = vector.extract_strided_slice %401 {offsets = [0, 4], sizes = [2, 4], strides = [1, 1]} : vector<2x12xf32> to vector<2x4xf32>
    %412 = arith.addf %410, %411 : vector<2x4xf32>
    %413 = arith.negf %412 : vector<2x4xf32>
    %414 = math.exp %413 : vector<2x4xf32>
    %cst_69 = arith.constant 1.000000e+00 : f32
    %415 = vector.broadcast %cst_69 : f32 to vector<2x4xf32>
    %416 = arith.addf %415, %414 : vector<2x4xf32>
    %417 = arith.divf %415, %416 : vector<2x4xf32>
    %418 = vector.extract_strided_slice %398 {offsets = [0, 8], sizes = [2, 4], strides = [1, 1]} : vector<2x12xf32> to vector<2x4xf32>
    %419 = vector.extract_strided_slice %401 {offsets = [0, 8], sizes = [2, 4], strides = [1, 1]} : vector<2x12xf32> to vector<2x4xf32>
    %420 = arith.mulf %409, %419 : vector<2x4xf32>
    %421 = arith.addf %418, %420 : vector<2x4xf32>
    %422 = math.tanh %421 : vector<2x4xf32>
    %cst_70 = arith.constant 1.000000e+00 : f32
    %423 = vector.broadcast %cst_70 : f32 to vector<2x4xf32>
    %424 = arith.subf %423, %417 : vector<2x4xf32>
    %425 = arith.mulf %424, %422 : vector<2x4xf32>
    %426 = arith.mulf %417, %396 : vector<2x4xf32>
    %427 = arith.addf %425, %426 : vector<2x4xf32>
    %428 = vector.extract_strided_slice %22 {offsets = [0, 13, 0], sizes = [2, 1, 12], strides = [1, 1, 1]} : vector<2x14x12xf32> to vector<2x1x12xf32>
    %429 = vector.shape_cast %428 : vector<2x1x12xf32> to vector<2x12xf32>
    %cst_71 = arith.constant dense<0.000000e+00> : vector<2x12xf32>
    %430 = tpu.matmul %427, %15, %cst_71 {dimension_numbers = #tpu.dot_dimension_numbers<[1], [0], [0], [1], [0, 0, 1, 1], [], []>} : vector<2x4xf32>, vector<4x12xf32>, vector<2x12xf32> -> vector<2x12xf32>
    %431 = vector.broadcast %17 : vector<1x12xf32> to vector<2x12xf32>
    %432 = arith.addf %430, %431 : vector<2x12xf32>
    %433 = vector.extract_strided_slice %429 {offsets = [0, 0], sizes = [2, 4], strides = [1, 1]} : vector<2x12xf32> to vector<2x4xf32>
    %434 = vector.extract_strided_slice %432 {offsets = [0, 0], sizes = [2, 4], strides = [1, 1]} : vector<2x12xf32> to vector<2x4xf32>
    %435 = arith.addf %433, %434 : vector<2x4xf32>
    %436 = arith.negf %435 : vector<2x4xf32>
    %437 = math.exp %436 : vector<2x4xf32>
    %cst_72 = arith.constant 1.000000e+00 : f32
    %438 = vector.broadcast %cst_72 : f32 to vector<2x4xf32>
    %439 = arith.addf %438, %437 : vector<2x4xf32>
    %440 = arith.divf %438, %439 : vector<2x4xf32>
    %441 = vector.extract_strided_slice %429 {offsets = [0, 4], sizes = [2, 4], strides = [1, 1]} : vector<2x12xf32> to vector<2x4xf32>
    %442 = vector.extract_strided_slice %432 {offsets = [0, 4], sizes = [2, 4], strides = [1, 1]} : vector<2x12xf32> to vector<2x4xf32>
    %443 = arith.addf %441, %442 : vector<2x4xf32>
    %444 = arith.negf %443 : vector<2x4xf32>
    %445 = math.exp %444 : vector<2x4xf32>
    %cst_73 = arith.constant 1.000000e+00 : f32
    %446 = vector.broadcast %cst_73 : f32 to vector<2x4xf32>
    %447 = arith.addf %446, %445 : vector<2x4xf32>
    %448 = arith.divf %446, %447 : vector<2x4xf32>
    %449 = vector.extract_strided_slice %429 {offsets = [0, 8], sizes = [2, 4], strides = [1, 1]} : vector<2x12xf32> to vector<2x4xf32>
    %450 = vector.extract_strided_slice %432 {offsets = [0, 8], sizes = [2, 4], strides = [1, 1]} : vector<2x12xf32> to vector<2x4xf32>
    %451 = arith.mulf %440, %450 : vector<2x4xf32>
    %452 = arith.addf %449, %451 : vector<2x4xf32>
    %453 = math.tanh %452 : vector<2x4xf32>
    %cst_74 = arith.constant 1.000000e+00 : f32
    %454 = vector.broadcast %cst_74 : f32 to vector<2x4xf32>
    %455 = arith.subf %454, %448 : vector<2x4xf32>
    %456 = arith.mulf %455, %453 : vector<2x4xf32>
    %457 = arith.mulf %448, %427 : vector<2x4xf32>
    %458 = arith.addf %456, %457 : vector<2x4xf32>
    %459 = vector.shape_cast %55 : vector<2x4xf32> to vector<2x1x4xf32>
    %460 = vector.shape_cast %86 : vector<2x4xf32> to vector<2x1x4xf32>
    %461 = vector.shape_cast %117 : vector<2x4xf32> to vector<2x1x4xf32>
    %462 = vector.shape_cast %148 : vector<2x4xf32> to vector<2x1x4xf32>
    %463 = vector.shape_cast %179 : vector<2x4xf32> to vector<2x1x4xf32>
    %464 = vector.shape_cast %210 : vector<2x4xf32> to vector<2x1x4xf32>
    %465 = vector.shape_cast %241 : vector<2x4xf32> to vector<2x1x4xf32>
    %466 = vector.shape_cast %272 : vector<2x4xf32> to vector<2x1x4xf32>
    %467 = vector.shape_cast %303 : vector<2x4xf32> to vector<2x1x4xf32>
    %468 = vector.shape_cast %334 : vector<2x4xf32> to vector<2x1x4xf32>
    %469 = vector.shape_cast %365 : vector<2x4xf32> to vector<2x1x4xf32>
    %470 = vector.shape_cast %396 : vector<2x4xf32> to vector<2x1x4xf32>
    %471 = vector.shape_cast %427 : vector<2x4xf32> to vector<2x1x4xf32>
    %472 = vector.shape_cast %458 : vector<2x4xf32> to vector<2x1x4xf32>
    %473 = tpu.concatenate %459, %460, %461, %462, %463, %464, %465, %466, %467, %468, %469, %470, %471, %472 in 1 : vector<2x1x4xf32>, vector<2x1x4xf32>, vector<2x1x4xf32>, vector<2x1x4xf32>, vector<2x1x4xf32>, vector<2x1x4xf32>, vector<2x1x4xf32>, vector<2x1x4xf32>, vector<2x1x4xf32>, vector<2x1x4xf32>, vector<2x1x4xf32>, vector<2x1x4xf32>, vector<2x1x4xf32>, vector<2x1x4xf32> -> vector<2x14x4xf32>
    %c0_75 = arith.constant 0 : index
    %c0_76 = arith.constant 0 : index
    %474 = vector.load %arg7[%c0_75, %c0_76] : memref<4x12xf32, #tpu.memory_space<vmem>>, vector<4x12xf32>
    %c0_77 = arith.constant 0 : index
    %c0_78 = arith.constant 0 : index
    %475 = vector.load %arg8[%c0_77, %c0_78] : memref<4x12xf32, #tpu.memory_space<vmem>>, vector<4x12xf32>
    %c0_79 = arith.constant 0 : index
    %c0_80 = arith.constant 0 : index
    %476 = vector.load %arg9[%c0_79, %c0_80] : memref<1x12xf32, #tpu.memory_space<vmem>>, vector<1x12xf32>
    %c0_81 = arith.constant 0 : index
    %c0_82 = arith.constant 0 : index
    %477 = vector.load %arg10[%c0_81, %c0_82] : memref<1x12xf32, #tpu.memory_space<vmem>>, vector<1x12xf32>
    %478 = vector.shape_cast %473 : vector<2x14x4xf32> to vector<28x4xf32>
    %cst_83 = arith.constant dense<0.000000e+00> : vector<28x12xf32>
    %479 = tpu.matmul %478, %474, %cst_83 {dimension_numbers = #tpu.dot_dimension_numbers<[1], [0], [0], [1], [0, 0, 1, 1], [], []>} : vector<28x4xf32>, vector<4x12xf32>, vector<28x12xf32> -> vector<28x12xf32>
    %480 = vector.broadcast %476 : vector<1x12xf32> to vector<28x12xf32>
    %481 = arith.addf %479, %480 : vector<28x12xf32>
    %482 = vector.shape_cast %481 : vector<28x12xf32> to vector<2x14x12xf32>
    %c1 = arith.constant 1 : index
    %c0_84 = arith.constant 0 : index
    %c0_85 = arith.constant 0 : index
    %483 = vector.load %arg11[%c1, %c0_84, %c0_85] : memref<2x2x4xf32, #tpu.memory_space<vmem>>, vector<1x2x4xf32>
    %484 = vector.shape_cast %483 : vector<1x2x4xf32> to vector<2x4xf32>
    %485 = vector.extract_strided_slice %482 {offsets = [0, 0, 0], sizes = [2, 1, 12], strides = [1, 1, 1]} : vector<2x14x12xf32> to vector<2x1x12xf32>
    %486 = vector.shape_cast %485 : vector<2x1x12xf32> to vector<2x12xf32>
    %cst_86 = arith.constant dense<0.000000e+00> : vector<2x12xf32>
    %487 = tpu.matmul %484, %475, %cst_86 {dimension_numbers = #tpu.dot_dimension_numbers<[1], [0], [0], [1], [0, 0, 1, 1], [], []>} : vector<2x4xf32>, vector<4x12xf32>, vector<2x12xf32> -> vector<2x12xf32>
    %488 = vector.broadcast %477 : vector<1x12xf32> to vector<2x12xf32>
    %489 = arith.addf %487, %488 : vector<2x12xf32>
    %490 = vector.extract_strided_slice %486 {offsets = [0, 0], sizes = [2, 4], strides = [1, 1]} : vector<2x12xf32> to vector<2x4xf32>
    %491 = vector.extract_strided_slice %489 {offsets = [0, 0], sizes = [2, 4], strides = [1, 1]} : vector<2x12xf32> to vector<2x4xf32>
    %492 = arith.addf %490, %491 : vector<2x4xf32>
    %493 = arith.negf %492 : vector<2x4xf32>
    %494 = math.exp %493 : vector<2x4xf32>
    %cst_87 = arith.constant 1.000000e+00 : f32
    %495 = vector.broadcast %cst_87 : f32 to vector<2x4xf32>
    %496 = arith.addf %495, %494 : vector<2x4xf32>
    %497 = arith.divf %495, %496 : vector<2x4xf32>
    %498 = vector.extract_strided_slice %486 {offsets = [0, 4], sizes = [2, 4], strides = [1, 1]} : vector<2x12xf32> to vector<2x4xf32>
    %499 = vector.extract_strided_slice %489 {offsets = [0, 4], sizes = [2, 4], strides = [1, 1]} : vector<2x12xf32> to vector<2x4xf32>
    %500 = arith.addf %498, %499 : vector<2x4xf32>
    %501 = arith.negf %500 : vector<2x4xf32>
    %502 = math.exp %501 : vector<2x4xf32>
    %cst_88 = arith.constant 1.000000e+00 : f32
    %503 = vector.broadcast %cst_88 : f32 to vector<2x4xf32>
    %504 = arith.addf %503, %502 : vector<2x4xf32>
    %505 = arith.divf %503, %504 : vector<2x4xf32>
    %506 = vector.extract_strided_slice %486 {offsets = [0, 8], sizes = [2, 4], strides = [1, 1]} : vector<2x12xf32> to vector<2x4xf32>
    %507 = vector.extract_strided_slice %489 {offsets = [0, 8], sizes = [2, 4], strides = [1, 1]} : vector<2x12xf32> to vector<2x4xf32>
    %508 = arith.mulf %497, %507 : vector<2x4xf32>
    %509 = arith.addf %506, %508 : vector<2x4xf32>
    %510 = math.tanh %509 : vector<2x4xf32>
    %cst_89 = arith.constant 1.000000e+00 : f32
    %511 = vector.broadcast %cst_89 : f32 to vector<2x4xf32>
    %512 = arith.subf %511, %505 : vector<2x4xf32>
    %513 = arith.mulf %512, %510 : vector<2x4xf32>
    %514 = arith.mulf %505, %484 : vector<2x4xf32>
    %515 = arith.addf %513, %514 : vector<2x4xf32>
    %516 = vector.extract_strided_slice %482 {offsets = [0, 1, 0], sizes = [2, 1, 12], strides = [1, 1, 1]} : vector<2x14x12xf32> to vector<2x1x12xf32>
    %517 = vector.shape_cast %516 : vector<2x1x12xf32> to vector<2x12xf32>
    %cst_90 = arith.constant dense<0.000000e+00> : vector<2x12xf32>
    %518 = tpu.matmul %515, %475, %cst_90 {dimension_numbers = #tpu.dot_dimension_numbers<[1], [0], [0], [1], [0, 0, 1, 1], [], []>} : vector<2x4xf32>, vector<4x12xf32>, vector<2x12xf32> -> vector<2x12xf32>
    %519 = vector.broadcast %477 : vector<1x12xf32> to vector<2x12xf32>
    %520 = arith.addf %518, %519 : vector<2x12xf32>
    %521 = vector.extract_strided_slice %517 {offsets = [0, 0], sizes = [2, 4], strides = [1, 1]} : vector<2x12xf32> to vector<2x4xf32>
    %522 = vector.extract_strided_slice %520 {offsets = [0, 0], sizes = [2, 4], strides = [1, 1]} : vector<2x12xf32> to vector<2x4xf32>
    %523 = arith.addf %521, %522 : vector<2x4xf32>
    %524 = arith.negf %523 : vector<2x4xf32>
    %525 = math.exp %524 : vector<2x4xf32>
    %cst_91 = arith.constant 1.000000e+00 : f32
    %526 = vector.broadcast %cst_91 : f32 to vector<2x4xf32>
    %527 = arith.addf %526, %525 : vector<2x4xf32>
    %528 = arith.divf %526, %527 : vector<2x4xf32>
    %529 = vector.extract_strided_slice %517 {offsets = [0, 4], sizes = [2, 4], strides = [1, 1]} : vector<2x12xf32> to vector<2x4xf32>
    %530 = vector.extract_strided_slice %520 {offsets = [0, 4], sizes = [2, 4], strides = [1, 1]} : vector<2x12xf32> to vector<2x4xf32>
    %531 = arith.addf %529, %530 : vector<2x4xf32>
    %532 = arith.negf %531 : vector<2x4xf32>
    %533 = math.exp %532 : vector<2x4xf32>
    %cst_92 = arith.constant 1.000000e+00 : f32
    %534 = vector.broadcast %cst_92 : f32 to vector<2x4xf32>
    %535 = arith.addf %534, %533 : vector<2x4xf32>
    %536 = arith.divf %534, %535 : vector<2x4xf32>
    %537 = vector.extract_strided_slice %517 {offsets = [0, 8], sizes = [2, 4], strides = [1, 1]} : vector<2x12xf32> to vector<2x4xf32>
    %538 = vector.extract_strided_slice %520 {offsets = [0, 8], sizes = [2, 4], strides = [1, 1]} : vector<2x12xf32> to vector<2x4xf32>
    %539 = arith.mulf %528, %538 : vector<2x4xf32>
    %540 = arith.addf %537, %539 : vector<2x4xf32>
    %541 = math.tanh %540 : vector<2x4xf32>
    %cst_93 = arith.constant 1.000000e+00 : f32
    %542 = vector.broadcast %cst_93 : f32 to vector<2x4xf32>
    %543 = arith.subf %542, %536 : vector<2x4xf32>
    %544 = arith.mulf %543, %541 : vector<2x4xf32>
    %545 = arith.mulf %536, %515 : vector<2x4xf32>
    %546 = arith.addf %544, %545 : vector<2x4xf32>
    %547 = vector.extract_strided_slice %482 {offsets = [0, 2, 0], sizes = [2, 1, 12], strides = [1, 1, 1]} : vector<2x14x12xf32> to vector<2x1x12xf32>
    %548 = vector.shape_cast %547 : vector<2x1x12xf32> to vector<2x12xf32>
    %cst_94 = arith.constant dense<0.000000e+00> : vector<2x12xf32>
    %549 = tpu.matmul %546, %475, %cst_94 {dimension_numbers = #tpu.dot_dimension_numbers<[1], [0], [0], [1], [0, 0, 1, 1], [], []>} : vector<2x4xf32>, vector<4x12xf32>, vector<2x12xf32> -> vector<2x12xf32>
    %550 = vector.broadcast %477 : vector<1x12xf32> to vector<2x12xf32>
    %551 = arith.addf %549, %550 : vector<2x12xf32>
    %552 = vector.extract_strided_slice %548 {offsets = [0, 0], sizes = [2, 4], strides = [1, 1]} : vector<2x12xf32> to vector<2x4xf32>
    %553 = vector.extract_strided_slice %551 {offsets = [0, 0], sizes = [2, 4], strides = [1, 1]} : vector<2x12xf32> to vector<2x4xf32>
    %554 = arith.addf %552, %553 : vector<2x4xf32>
    %555 = arith.negf %554 : vector<2x4xf32>
    %556 = math.exp %555 : vector<2x4xf32>
    %cst_95 = arith.constant 1.000000e+00 : f32
    %557 = vector.broadcast %cst_95 : f32 to vector<2x4xf32>
    %558 = arith.addf %557, %556 : vector<2x4xf32>
    %559 = arith.divf %557, %558 : vector<2x4xf32>
    %560 = vector.extract_strided_slice %548 {offsets = [0, 4], sizes = [2, 4], strides = [1, 1]} : vector<2x12xf32> to vector<2x4xf32>
    %561 = vector.extract_strided_slice %551 {offsets = [0, 4], sizes = [2, 4], strides = [1, 1]} : vector<2x12xf32> to vector<2x4xf32>
    %562 = arith.addf %560, %561 : vector<2x4xf32>
    %563 = arith.negf %562 : vector<2x4xf32>
    %564 = math.exp %563 : vector<2x4xf32>
    %cst_96 = arith.constant 1.000000e+00 : f32
    %565 = vector.broadcast %cst_96 : f32 to vector<2x4xf32>
    %566 = arith.addf %565, %564 : vector<2x4xf32>
    %567 = arith.divf %565, %566 : vector<2x4xf32>
    %568 = vector.extract_strided_slice %548 {offsets = [0, 8], sizes = [2, 4], strides = [1, 1]} : vector<2x12xf32> to vector<2x4xf32>
    %569 = vector.extract_strided_slice %551 {offsets = [0, 8], sizes = [2, 4], strides = [1, 1]} : vector<2x12xf32> to vector<2x4xf32>
    %570 = arith.mulf %559, %569 : vector<2x4xf32>
    %571 = arith.addf %568, %570 : vector<2x4xf32>
    %572 = math.tanh %571 : vector<2x4xf32>
    %cst_97 = arith.constant 1.000000e+00 : f32
    %573 = vector.broadcast %cst_97 : f32 to vector<2x4xf32>
    %574 = arith.subf %573, %567 : vector<2x4xf32>
    %575 = arith.mulf %574, %572 : vector<2x4xf32>
    %576 = arith.mulf %567, %546 : vector<2x4xf32>
    %577 = arith.addf %575, %576 : vector<2x4xf32>
    %578 = vector.extract_strided_slice %482 {offsets = [0, 3, 0], sizes = [2, 1, 12], strides = [1, 1, 1]} : vector<2x14x12xf32> to vector<2x1x12xf32>
    %579 = vector.shape_cast %578 : vector<2x1x12xf32> to vector<2x12xf32>
    %cst_98 = arith.constant dense<0.000000e+00> : vector<2x12xf32>
    %580 = tpu.matmul %577, %475, %cst_98 {dimension_numbers = #tpu.dot_dimension_numbers<[1], [0], [0], [1], [0, 0, 1, 1], [], []>} : vector<2x4xf32>, vector<4x12xf32>, vector<2x12xf32> -> vector<2x12xf32>
    %581 = vector.broadcast %477 : vector<1x12xf32> to vector<2x12xf32>
    %582 = arith.addf %580, %581 : vector<2x12xf32>
    %583 = vector.extract_strided_slice %579 {offsets = [0, 0], sizes = [2, 4], strides = [1, 1]} : vector<2x12xf32> to vector<2x4xf32>
    %584 = vector.extract_strided_slice %582 {offsets = [0, 0], sizes = [2, 4], strides = [1, 1]} : vector<2x12xf32> to vector<2x4xf32>
    %585 = arith.addf %583, %584 : vector<2x4xf32>
    %586 = arith.negf %585 : vector<2x4xf32>
    %587 = math.exp %586 : vector<2x4xf32>
    %cst_99 = arith.constant 1.000000e+00 : f32
    %588 = vector.broadcast %cst_99 : f32 to vector<2x4xf32>
    %589 = arith.addf %588, %587 : vector<2x4xf32>
    %590 = arith.divf %588, %589 : vector<2x4xf32>
    %591 = vector.extract_strided_slice %579 {offsets = [0, 4], sizes = [2, 4], strides = [1, 1]} : vector<2x12xf32> to vector<2x4xf32>
    %592 = vector.extract_strided_slice %582 {offsets = [0, 4], sizes = [2, 4], strides = [1, 1]} : vector<2x12xf32> to vector<2x4xf32>
    %593 = arith.addf %591, %592 : vector<2x4xf32>
    %594 = arith.negf %593 : vector<2x4xf32>
    %595 = math.exp %594 : vector<2x4xf32>
    %cst_100 = arith.constant 1.000000e+00 : f32
    %596 = vector.broadcast %cst_100 : f32 to vector<2x4xf32>
    %597 = arith.addf %596, %595 : vector<2x4xf32>
    %598 = arith.divf %596, %597 : vector<2x4xf32>
    %599 = vector.extract_strided_slice %579 {offsets = [0, 8], sizes = [2, 4], strides = [1, 1]} : vector<2x12xf32> to vector<2x4xf32>
    %600 = vector.extract_strided_slice %582 {offsets = [0, 8], sizes = [2, 4], strides = [1, 1]} : vector<2x12xf32> to vector<2x4xf32>
    %601 = arith.mulf %590, %600 : vector<2x4xf32>
    %602 = arith.addf %599, %601 : vector<2x4xf32>
    %603 = math.tanh %602 : vector<2x4xf32>
    %cst_101 = arith.constant 1.000000e+00 : f32
    %604 = vector.broadcast %cst_101 : f32 to vector<2x4xf32>
    %605 = arith.subf %604, %598 : vector<2x4xf32>
    %606 = arith.mulf %605, %603 : vector<2x4xf32>
    %607 = arith.mulf %598, %577 : vector<2x4xf32>
    %608 = arith.addf %606, %607 : vector<2x4xf32>
    %609 = vector.extract_strided_slice %482 {offsets = [0, 4, 0], sizes = [2, 1, 12], strides = [1, 1, 1]} : vector<2x14x12xf32> to vector<2x1x12xf32>
    %610 = vector.shape_cast %609 : vector<2x1x12xf32> to vector<2x12xf32>
    %cst_102 = arith.constant dense<0.000000e+00> : vector<2x12xf32>
    %611 = tpu.matmul %608, %475, %cst_102 {dimension_numbers = #tpu.dot_dimension_numbers<[1], [0], [0], [1], [0, 0, 1, 1], [], []>} : vector<2x4xf32>, vector<4x12xf32>, vector<2x12xf32> -> vector<2x12xf32>
    %612 = vector.broadcast %477 : vector<1x12xf32> to vector<2x12xf32>
    %613 = arith.addf %611, %612 : vector<2x12xf32>
    %614 = vector.extract_strided_slice %610 {offsets = [0, 0], sizes = [2, 4], strides = [1, 1]} : vector<2x12xf32> to vector<2x4xf32>
    %615 = vector.extract_strided_slice %613 {offsets = [0, 0], sizes = [2, 4], strides = [1, 1]} : vector<2x12xf32> to vector<2x4xf32>
    %616 = arith.addf %614, %615 : vector<2x4xf32>
    %617 = arith.negf %616 : vector<2x4xf32>
    %618 = math.exp %617 : vector<2x4xf32>
    %cst_103 = arith.constant 1.000000e+00 : f32
    %619 = vector.broadcast %cst_103 : f32 to vector<2x4xf32>
    %620 = arith.addf %619, %618 : vector<2x4xf32>
    %621 = arith.divf %619, %620 : vector<2x4xf32>
    %622 = vector.extract_strided_slice %610 {offsets = [0, 4], sizes = [2, 4], strides = [1, 1]} : vector<2x12xf32> to vector<2x4xf32>
    %623 = vector.extract_strided_slice %613 {offsets = [0, 4], sizes = [2, 4], strides = [1, 1]} : vector<2x12xf32> to vector<2x4xf32>
    %624 = arith.addf %622, %623 : vector<2x4xf32>
    %625 = arith.negf %624 : vector<2x4xf32>
    %626 = math.exp %625 : vector<2x4xf32>
    %cst_104 = arith.constant 1.000000e+00 : f32
    %627 = vector.broadcast %cst_104 : f32 to vector<2x4xf32>
    %628 = arith.addf %627, %626 : vector<2x4xf32>
    %629 = arith.divf %627, %628 : vector<2x4xf32>
    %630 = vector.extract_strided_slice %610 {offsets = [0, 8], sizes = [2, 4], strides = [1, 1]} : vector<2x12xf32> to vector<2x4xf32>
    %631 = vector.extract_strided_slice %613 {offsets = [0, 8], sizes = [2, 4], strides = [1, 1]} : vector<2x12xf32> to vector<2x4xf32>
    %632 = arith.mulf %621, %631 : vector<2x4xf32>
    %633 = arith.addf %630, %632 : vector<2x4xf32>
    %634 = math.tanh %633 : vector<2x4xf32>
    %cst_105 = arith.constant 1.000000e+00 : f32
    %635 = vector.broadcast %cst_105 : f32 to vector<2x4xf32>
    %636 = arith.subf %635, %629 : vector<2x4xf32>
    %637 = arith.mulf %636, %634 : vector<2x4xf32>
    %638 = arith.mulf %629, %608 : vector<2x4xf32>
    %639 = arith.addf %637, %638 : vector<2x4xf32>
    %640 = vector.extract_strided_slice %482 {offsets = [0, 5, 0], sizes = [2, 1, 12], strides = [1, 1, 1]} : vector<2x14x12xf32> to vector<2x1x12xf32>
    %641 = vector.shape_cast %640 : vector<2x1x12xf32> to vector<2x12xf32>
    %cst_106 = arith.constant dense<0.000000e+00> : vector<2x12xf32>
    %642 = tpu.matmul %639, %475, %cst_106 {dimension_numbers = #tpu.dot_dimension_numbers<[1], [0], [0], [1], [0, 0, 1, 1], [], []>} : vector<2x4xf32>, vector<4x12xf32>, vector<2x12xf32> -> vector<2x12xf32>
    %643 = vector.broadcast %477 : vector<1x12xf32> to vector<2x12xf32>
    %644 = arith.addf %642, %643 : vector<2x12xf32>
    %645 = vector.extract_strided_slice %641 {offsets = [0, 0], sizes = [2, 4], strides = [1, 1]} : vector<2x12xf32> to vector<2x4xf32>
    %646 = vector.extract_strided_slice %644 {offsets = [0, 0], sizes = [2, 4], strides = [1, 1]} : vector<2x12xf32> to vector<2x4xf32>
    %647 = arith.addf %645, %646 : vector<2x4xf32>
    %648 = arith.negf %647 : vector<2x4xf32>
    %649 = math.exp %648 : vector<2x4xf32>
    %cst_107 = arith.constant 1.000000e+00 : f32
    %650 = vector.broadcast %cst_107 : f32 to vector<2x4xf32>
    %651 = arith.addf %650, %649 : vector<2x4xf32>
    %652 = arith.divf %650, %651 : vector<2x4xf32>
    %653 = vector.extract_strided_slice %641 {offsets = [0, 4], sizes = [2, 4], strides = [1, 1]} : vector<2x12xf32> to vector<2x4xf32>
    %654 = vector.extract_strided_slice %644 {offsets = [0, 4], sizes = [2, 4], strides = [1, 1]} : vector<2x12xf32> to vector<2x4xf32>
    %655 = arith.addf %653, %654 : vector<2x4xf32>
    %656 = arith.negf %655 : vector<2x4xf32>
    %657 = math.exp %656 : vector<2x4xf32>
    %cst_108 = arith.constant 1.000000e+00 : f32
    %658 = vector.broadcast %cst_108 : f32 to vector<2x4xf32>
    %659 = arith.addf %658, %657 : vector<2x4xf32>
    %660 = arith.divf %658, %659 : vector<2x4xf32>
    %661 = vector.extract_strided_slice %641 {offsets = [0, 8], sizes = [2, 4], strides = [1, 1]} : vector<2x12xf32> to vector<2x4xf32>
    %662 = vector.extract_strided_slice %644 {offsets = [0, 8], sizes = [2, 4], strides = [1, 1]} : vector<2x12xf32> to vector<2x4xf32>
    %663 = arith.mulf %652, %662 : vector<2x4xf32>
    %664 = arith.addf %661, %663 : vector<2x4xf32>
    %665 = math.tanh %664 : vector<2x4xf32>
    %cst_109 = arith.constant 1.000000e+00 : f32
    %666 = vector.broadcast %cst_109 : f32 to vector<2x4xf32>
    %667 = arith.subf %666, %660 : vector<2x4xf32>
    %668 = arith.mulf %667, %665 : vector<2x4xf32>
    %669 = arith.mulf %660, %639 : vector<2x4xf32>
    %670 = arith.addf %668, %669 : vector<2x4xf32>
    %671 = vector.extract_strided_slice %482 {offsets = [0, 6, 0], sizes = [2, 1, 12], strides = [1, 1, 1]} : vector<2x14x12xf32> to vector<2x1x12xf32>
    %672 = vector.shape_cast %671 : vector<2x1x12xf32> to vector<2x12xf32>
    %cst_110 = arith.constant dense<0.000000e+00> : vector<2x12xf32>
    %673 = tpu.matmul %670, %475, %cst_110 {dimension_numbers = #tpu.dot_dimension_numbers<[1], [0], [0], [1], [0, 0, 1, 1], [], []>} : vector<2x4xf32>, vector<4x12xf32>, vector<2x12xf32> -> vector<2x12xf32>
    %674 = vector.broadcast %477 : vector<1x12xf32> to vector<2x12xf32>
    %675 = arith.addf %673, %674 : vector<2x12xf32>
    %676 = vector.extract_strided_slice %672 {offsets = [0, 0], sizes = [2, 4], strides = [1, 1]} : vector<2x12xf32> to vector<2x4xf32>
    %677 = vector.extract_strided_slice %675 {offsets = [0, 0], sizes = [2, 4], strides = [1, 1]} : vector<2x12xf32> to vector<2x4xf32>
    %678 = arith.addf %676, %677 : vector<2x4xf32>
    %679 = arith.negf %678 : vector<2x4xf32>
    %680 = math.exp %679 : vector<2x4xf32>
    %cst_111 = arith.constant 1.000000e+00 : f32
    %681 = vector.broadcast %cst_111 : f32 to vector<2x4xf32>
    %682 = arith.addf %681, %680 : vector<2x4xf32>
    %683 = arith.divf %681, %682 : vector<2x4xf32>
    %684 = vector.extract_strided_slice %672 {offsets = [0, 4], sizes = [2, 4], strides = [1, 1]} : vector<2x12xf32> to vector<2x4xf32>
    %685 = vector.extract_strided_slice %675 {offsets = [0, 4], sizes = [2, 4], strides = [1, 1]} : vector<2x12xf32> to vector<2x4xf32>
    %686 = arith.addf %684, %685 : vector<2x4xf32>
    %687 = arith.negf %686 : vector<2x4xf32>
    %688 = math.exp %687 : vector<2x4xf32>
    %cst_112 = arith.constant 1.000000e+00 : f32
    %689 = vector.broadcast %cst_112 : f32 to vector<2x4xf32>
    %690 = arith.addf %689, %688 : vector<2x4xf32>
    %691 = arith.divf %689, %690 : vector<2x4xf32>
    %692 = vector.extract_strided_slice %672 {offsets = [0, 8], sizes = [2, 4], strides = [1, 1]} : vector<2x12xf32> to vector<2x4xf32>
    %693 = vector.extract_strided_slice %675 {offsets = [0, 8], sizes = [2, 4], strides = [1, 1]} : vector<2x12xf32> to vector<2x4xf32>
    %694 = arith.mulf %683, %693 : vector<2x4xf32>
    %695 = arith.addf %692, %694 : vector<2x4xf32>
    %696 = math.tanh %695 : vector<2x4xf32>
    %cst_113 = arith.constant 1.000000e+00 : f32
    %697 = vector.broadcast %cst_113 : f32 to vector<2x4xf32>
    %698 = arith.subf %697, %691 : vector<2x4xf32>
    %699 = arith.mulf %698, %696 : vector<2x4xf32>
    %700 = arith.mulf %691, %670 : vector<2x4xf32>
    %701 = arith.addf %699, %700 : vector<2x4xf32>
    %702 = vector.extract_strided_slice %482 {offsets = [0, 7, 0], sizes = [2, 1, 12], strides = [1, 1, 1]} : vector<2x14x12xf32> to vector<2x1x12xf32>
    %703 = vector.shape_cast %702 : vector<2x1x12xf32> to vector<2x12xf32>
    %cst_114 = arith.constant dense<0.000000e+00> : vector<2x12xf32>
    %704 = tpu.matmul %701, %475, %cst_114 {dimension_numbers = #tpu.dot_dimension_numbers<[1], [0], [0], [1], [0, 0, 1, 1], [], []>} : vector<2x4xf32>, vector<4x12xf32>, vector<2x12xf32> -> vector<2x12xf32>
    %705 = vector.broadcast %477 : vector<1x12xf32> to vector<2x12xf32>
    %706 = arith.addf %704, %705 : vector<2x12xf32>
    %707 = vector.extract_strided_slice %703 {offsets = [0, 0], sizes = [2, 4], strides = [1, 1]} : vector<2x12xf32> to vector<2x4xf32>
    %708 = vector.extract_strided_slice %706 {offsets = [0, 0], sizes = [2, 4], strides = [1, 1]} : vector<2x12xf32> to vector<2x4xf32>
    %709 = arith.addf %707, %708 : vector<2x4xf32>
    %710 = arith.negf %709 : vector<2x4xf32>
    %711 = math.exp %710 : vector<2x4xf32>
    %cst_115 = arith.constant 1.000000e+00 : f32
    %712 = vector.broadcast %cst_115 : f32 to vector<2x4xf32>
    %713 = arith.addf %712, %711 : vector<2x4xf32>
    %714 = arith.divf %712, %713 : vector<2x4xf32>
    %715 = vector.extract_strided_slice %703 {offsets = [0, 4], sizes = [2, 4], strides = [1, 1]} : vector<2x12xf32> to vector<2x4xf32>
    %716 = vector.extract_strided_slice %706 {offsets = [0, 4], sizes = [2, 4], strides = [1, 1]} : vector<2x12xf32> to vector<2x4xf32>
    %717 = arith.addf %715, %716 : vector<2x4xf32>
    %718 = arith.negf %717 : vector<2x4xf32>
    %719 = math.exp %718 : vector<2x4xf32>
    %cst_116 = arith.constant 1.000000e+00 : f32
    %720 = vector.broadcast %cst_116 : f32 to vector<2x4xf32>
    %721 = arith.addf %720, %719 : vector<2x4xf32>
    %722 = arith.divf %720, %721 : vector<2x4xf32>
    %723 = vector.extract_strided_slice %703 {offsets = [0, 8], sizes = [2, 4], strides = [1, 1]} : vector<2x12xf32> to vector<2x4xf32>
    %724 = vector.extract_strided_slice %706 {offsets = [0, 8], sizes = [2, 4], strides = [1, 1]} : vector<2x12xf32> to vector<2x4xf32>
    %725 = arith.mulf %714, %724 : vector<2x4xf32>
    %726 = arith.addf %723, %725 : vector<2x4xf32>
    %727 = math.tanh %726 : vector<2x4xf32>
    %cst_117 = arith.constant 1.000000e+00 : f32
    %728 = vector.broadcast %cst_117 : f32 to vector<2x4xf32>
    %729 = arith.subf %728, %722 : vector<2x4xf32>
    %730 = arith.mulf %729, %727 : vector<2x4xf32>
    %731 = arith.mulf %722, %701 : vector<2x4xf32>
    %732 = arith.addf %730, %731 : vector<2x4xf32>
    %733 = vector.extract_strided_slice %482 {offsets = [0, 8, 0], sizes = [2, 1, 12], strides = [1, 1, 1]} : vector<2x14x12xf32> to vector<2x1x12xf32>
    %734 = vector.shape_cast %733 : vector<2x1x12xf32> to vector<2x12xf32>
    %cst_118 = arith.constant dense<0.000000e+00> : vector<2x12xf32>
    %735 = tpu.matmul %732, %475, %cst_118 {dimension_numbers = #tpu.dot_dimension_numbers<[1], [0], [0], [1], [0, 0, 1, 1], [], []>} : vector<2x4xf32>, vector<4x12xf32>, vector<2x12xf32> -> vector<2x12xf32>
    %736 = vector.broadcast %477 : vector<1x12xf32> to vector<2x12xf32>
    %737 = arith.addf %735, %736 : vector<2x12xf32>
    %738 = vector.extract_strided_slice %734 {offsets = [0, 0], sizes = [2, 4], strides = [1, 1]} : vector<2x12xf32> to vector<2x4xf32>
    %739 = vector.extract_strided_slice %737 {offsets = [0, 0], sizes = [2, 4], strides = [1, 1]} : vector<2x12xf32> to vector<2x4xf32>
    %740 = arith.addf %738, %739 : vector<2x4xf32>
    %741 = arith.negf %740 : vector<2x4xf32>
    %742 = math.exp %741 : vector<2x4xf32>
    %cst_119 = arith.constant 1.000000e+00 : f32
    %743 = vector.broadcast %cst_119 : f32 to vector<2x4xf32>
    %744 = arith.addf %743, %742 : vector<2x4xf32>
    %745 = arith.divf %743, %744 : vector<2x4xf32>
    %746 = vector.extract_strided_slice %734 {offsets = [0, 4], sizes = [2, 4], strides = [1, 1]} : vector<2x12xf32> to vector<2x4xf32>
    %747 = vector.extract_strided_slice %737 {offsets = [0, 4], sizes = [2, 4], strides = [1, 1]} : vector<2x12xf32> to vector<2x4xf32>
    %748 = arith.addf %746, %747 : vector<2x4xf32>
    %749 = arith.negf %748 : vector<2x4xf32>
    %750 = math.exp %749 : vector<2x4xf32>
    %cst_120 = arith.constant 1.000000e+00 : f32
    %751 = vector.broadcast %cst_120 : f32 to vector<2x4xf32>
    %752 = arith.addf %751, %750 : vector<2x4xf32>
    %753 = arith.divf %751, %752 : vector<2x4xf32>
    %754 = vector.extract_strided_slice %734 {offsets = [0, 8], sizes = [2, 4], strides = [1, 1]} : vector<2x12xf32> to vector<2x4xf32>
    %755 = vector.extract_strided_slice %737 {offsets = [0, 8], sizes = [2, 4], strides = [1, 1]} : vector<2x12xf32> to vector<2x4xf32>
    %756 = arith.mulf %745, %755 : vector<2x4xf32>
    %757 = arith.addf %754, %756 : vector<2x4xf32>
    %758 = math.tanh %757 : vector<2x4xf32>
    %cst_121 = arith.constant 1.000000e+00 : f32
    %759 = vector.broadcast %cst_121 : f32 to vector<2x4xf32>
    %760 = arith.subf %759, %753 : vector<2x4xf32>
    %761 = arith.mulf %760, %758 : vector<2x4xf32>
    %762 = arith.mulf %753, %732 : vector<2x4xf32>
    %763 = arith.addf %761, %762 : vector<2x4xf32>
    %764 = vector.extract_strided_slice %482 {offsets = [0, 9, 0], sizes = [2, 1, 12], strides = [1, 1, 1]} : vector<2x14x12xf32> to vector<2x1x12xf32>
    %765 = vector.shape_cast %764 : vector<2x1x12xf32> to vector<2x12xf32>
    %cst_122 = arith.constant dense<0.000000e+00> : vector<2x12xf32>
    %766 = tpu.matmul %763, %475, %cst_122 {dimension_numbers = #tpu.dot_dimension_numbers<[1], [0], [0], [1], [0, 0, 1, 1], [], []>} : vector<2x4xf32>, vector<4x12xf32>, vector<2x12xf32> -> vector<2x12xf32>
    %767 = vector.broadcast %477 : vector<1x12xf32> to vector<2x12xf32>
    %768 = arith.addf %766, %767 : vector<2x12xf32>
    %769 = vector.extract_strided_slice %765 {offsets = [0, 0], sizes = [2, 4], strides = [1, 1]} : vector<2x12xf32> to vector<2x4xf32>
    %770 = vector.extract_strided_slice %768 {offsets = [0, 0], sizes = [2, 4], strides = [1, 1]} : vector<2x12xf32> to vector<2x4xf32>
    %771 = arith.addf %769, %770 : vector<2x4xf32>
    %772 = arith.negf %771 : vector<2x4xf32>
    %773 = math.exp %772 : vector<2x4xf32>
    %cst_123 = arith.constant 1.000000e+00 : f32
    %774 = vector.broadcast %cst_123 : f32 to vector<2x4xf32>
    %775 = arith.addf %774, %773 : vector<2x4xf32>
    %776 = arith.divf %774, %775 : vector<2x4xf32>
    %777 = vector.extract_strided_slice %765 {offsets = [0, 4], sizes = [2, 4], strides = [1, 1]} : vector<2x12xf32> to vector<2x4xf32>
    %778 = vector.extract_strided_slice %768 {offsets = [0, 4], sizes = [2, 4], strides = [1, 1]} : vector<2x12xf32> to vector<2x4xf32>
    %779 = arith.addf %777, %778 : vector<2x4xf32>
    %780 = arith.negf %779 : vector<2x4xf32>
    %781 = math.exp %780 : vector<2x4xf32>
    %cst_124 = arith.constant 1.000000e+00 : f32
    %782 = vector.broadcast %cst_124 : f32 to vector<2x4xf32>
    %783 = arith.addf %782, %781 : vector<2x4xf32>
    %784 = arith.divf %782, %783 : vector<2x4xf32>
    %785 = vector.extract_strided_slice %765 {offsets = [0, 8], sizes = [2, 4], strides = [1, 1]} : vector<2x12xf32> to vector<2x4xf32>
    %786 = vector.extract_strided_slice %768 {offsets = [0, 8], sizes = [2, 4], strides = [1, 1]} : vector<2x12xf32> to vector<2x4xf32>
    %787 = arith.mulf %776, %786 : vector<2x4xf32>
    %788 = arith.addf %785, %787 : vector<2x4xf32>
    %789 = math.tanh %788 : vector<2x4xf32>
    %cst_125 = arith.constant 1.000000e+00 : f32
    %790 = vector.broadcast %cst_125 : f32 to vector<2x4xf32>
    %791 = arith.subf %790, %784 : vector<2x4xf32>
    %792 = arith.mulf %791, %789 : vector<2x4xf32>
    %793 = arith.mulf %784, %763 : vector<2x4xf32>
    %794 = arith.addf %792, %793 : vector<2x4xf32>
    %795 = vector.extract_strided_slice %482 {offsets = [0, 10, 0], sizes = [2, 1, 12], strides = [1, 1, 1]} : vector<2x14x12xf32> to vector<2x1x12xf32>
    %796 = vector.shape_cast %795 : vector<2x1x12xf32> to vector<2x12xf32>
    %cst_126 = arith.constant dense<0.000000e+00> : vector<2x12xf32>
    %797 = tpu.matmul %794, %475, %cst_126 {dimension_numbers = #tpu.dot_dimension_numbers<[1], [0], [0], [1], [0, 0, 1, 1], [], []>} : vector<2x4xf32>, vector<4x12xf32>, vector<2x12xf32> -> vector<2x12xf32>
    %798 = vector.broadcast %477 : vector<1x12xf32> to vector<2x12xf32>
    %799 = arith.addf %797, %798 : vector<2x12xf32>
    %800 = vector.extract_strided_slice %796 {offsets = [0, 0], sizes = [2, 4], strides = [1, 1]} : vector<2x12xf32> to vector<2x4xf32>
    %801 = vector.extract_strided_slice %799 {offsets = [0, 0], sizes = [2, 4], strides = [1, 1]} : vector<2x12xf32> to vector<2x4xf32>
    %802 = arith.addf %800, %801 : vector<2x4xf32>
    %803 = arith.negf %802 : vector<2x4xf32>
    %804 = math.exp %803 : vector<2x4xf32>
    %cst_127 = arith.constant 1.000000e+00 : f32
    %805 = vector.broadcast %cst_127 : f32 to vector<2x4xf32>
    %806 = arith.addf %805, %804 : vector<2x4xf32>
    %807 = arith.divf %805, %806 : vector<2x4xf32>
    %808 = vector.extract_strided_slice %796 {offsets = [0, 4], sizes = [2, 4], strides = [1, 1]} : vector<2x12xf32> to vector<2x4xf32>
    %809 = vector.extract_strided_slice %799 {offsets = [0, 4], sizes = [2, 4], strides = [1, 1]} : vector<2x12xf32> to vector<2x4xf32>
    %810 = arith.addf %808, %809 : vector<2x4xf32>
    %811 = arith.negf %810 : vector<2x4xf32>
    %812 = math.exp %811 : vector<2x4xf32>
    %cst_128 = arith.constant 1.000000e+00 : f32
    %813 = vector.broadcast %cst_128 : f32 to vector<2x4xf32>
    %814 = arith.addf %813, %812 : vector<2x4xf32>
    %815 = arith.divf %813, %814 : vector<2x4xf32>
    %816 = vector.extract_strided_slice %796 {offsets = [0, 8], sizes = [2, 4], strides = [1, 1]} : vector<2x12xf32> to vector<2x4xf32>
    %817 = vector.extract_strided_slice %799 {offsets = [0, 8], sizes = [2, 4], strides = [1, 1]} : vector<2x12xf32> to vector<2x4xf32>
    %818 = arith.mulf %807, %817 : vector<2x4xf32>
    %819 = arith.addf %816, %818 : vector<2x4xf32>
    %820 = math.tanh %819 : vector<2x4xf32>
    %cst_129 = arith.constant 1.000000e+00 : f32
    %821 = vector.broadcast %cst_129 : f32 to vector<2x4xf32>
    %822 = arith.subf %821, %815 : vector<2x4xf32>
    %823 = arith.mulf %822, %820 : vector<2x4xf32>
    %824 = arith.mulf %815, %794 : vector<2x4xf32>
    %825 = arith.addf %823, %824 : vector<2x4xf32>
    %826 = vector.extract_strided_slice %482 {offsets = [0, 11, 0], sizes = [2, 1, 12], strides = [1, 1, 1]} : vector<2x14x12xf32> to vector<2x1x12xf32>
    %827 = vector.shape_cast %826 : vector<2x1x12xf32> to vector<2x12xf32>
    %cst_130 = arith.constant dense<0.000000e+00> : vector<2x12xf32>
    %828 = tpu.matmul %825, %475, %cst_130 {dimension_numbers = #tpu.dot_dimension_numbers<[1], [0], [0], [1], [0, 0, 1, 1], [], []>} : vector<2x4xf32>, vector<4x12xf32>, vector<2x12xf32> -> vector<2x12xf32>
    %829 = vector.broadcast %477 : vector<1x12xf32> to vector<2x12xf32>
    %830 = arith.addf %828, %829 : vector<2x12xf32>
    %831 = vector.extract_strided_slice %827 {offsets = [0, 0], sizes = [2, 4], strides = [1, 1]} : vector<2x12xf32> to vector<2x4xf32>
    %832 = vector.extract_strided_slice %830 {offsets = [0, 0], sizes = [2, 4], strides = [1, 1]} : vector<2x12xf32> to vector<2x4xf32>
    %833 = arith.addf %831, %832 : vector<2x4xf32>
    %834 = arith.negf %833 : vector<2x4xf32>
    %835 = math.exp %834 : vector<2x4xf32>
    %cst_131 = arith.constant 1.000000e+00 : f32
    %836 = vector.broadcast %cst_131 : f32 to vector<2x4xf32>
    %837 = arith.addf %836, %835 : vector<2x4xf32>
    %838 = arith.divf %836, %837 : vector<2x4xf32>
    %839 = vector.extract_strided_slice %827 {offsets = [0, 4], sizes = [2, 4], strides = [1, 1]} : vector<2x12xf32> to vector<2x4xf32>
    %840 = vector.extract_strided_slice %830 {offsets = [0, 4], sizes = [2, 4], strides = [1, 1]} : vector<2x12xf32> to vector<2x4xf32>
    %841 = arith.addf %839, %840 : vector<2x4xf32>
    %842 = arith.negf %841 : vector<2x4xf32>
    %843 = math.exp %842 : vector<2x4xf32>
    %cst_132 = arith.constant 1.000000e+00 : f32
    %844 = vector.broadcast %cst_132 : f32 to vector<2x4xf32>
    %845 = arith.addf %844, %843 : vector<2x4xf32>
    %846 = arith.divf %844, %845 : vector<2x4xf32>
    %847 = vector.extract_strided_slice %827 {offsets = [0, 8], sizes = [2, 4], strides = [1, 1]} : vector<2x12xf32> to vector<2x4xf32>
    %848 = vector.extract_strided_slice %830 {offsets = [0, 8], sizes = [2, 4], strides = [1, 1]} : vector<2x12xf32> to vector<2x4xf32>
    %849 = arith.mulf %838, %848 : vector<2x4xf32>
    %850 = arith.addf %847, %849 : vector<2x4xf32>
    %851 = math.tanh %850 : vector<2x4xf32>
    %cst_133 = arith.constant 1.000000e+00 : f32
    %852 = vector.broadcast %cst_133 : f32 to vector<2x4xf32>
    %853 = arith.subf %852, %846 : vector<2x4xf32>
    %854 = arith.mulf %853, %851 : vector<2x4xf32>
    %855 = arith.mulf %846, %825 : vector<2x4xf32>
    %856 = arith.addf %854, %855 : vector<2x4xf32>
    %857 = vector.extract_strided_slice %482 {offsets = [0, 12, 0], sizes = [2, 1, 12], strides = [1, 1, 1]} : vector<2x14x12xf32> to vector<2x1x12xf32>
    %858 = vector.shape_cast %857 : vector<2x1x12xf32> to vector<2x12xf32>
    %cst_134 = arith.constant dense<0.000000e+00> : vector<2x12xf32>
    %859 = tpu.matmul %856, %475, %cst_134 {dimension_numbers = #tpu.dot_dimension_numbers<[1], [0], [0], [1], [0, 0, 1, 1], [], []>} : vector<2x4xf32>, vector<4x12xf32>, vector<2x12xf32> -> vector<2x12xf32>
    %860 = vector.broadcast %477 : vector<1x12xf32> to vector<2x12xf32>
    %861 = arith.addf %859, %860 : vector<2x12xf32>
    %862 = vector.extract_strided_slice %858 {offsets = [0, 0], sizes = [2, 4], strides = [1, 1]} : vector<2x12xf32> to vector<2x4xf32>
    %863 = vector.extract_strided_slice %861 {offsets = [0, 0], sizes = [2, 4], strides = [1, 1]} : vector<2x12xf32> to vector<2x4xf32>
    %864 = arith.addf %862, %863 : vector<2x4xf32>
    %865 = arith.negf %864 : vector<2x4xf32>
    %866 = math.exp %865 : vector<2x4xf32>
    %cst_135 = arith.constant 1.000000e+00 : f32
    %867 = vector.broadcast %cst_135 : f32 to vector<2x4xf32>
    %868 = arith.addf %867, %866 : vector<2x4xf32>
    %869 = arith.divf %867, %868 : vector<2x4xf32>
    %870 = vector.extract_strided_slice %858 {offsets = [0, 4], sizes = [2, 4], strides = [1, 1]} : vector<2x12xf32> to vector<2x4xf32>
    %871 = vector.extract_strided_slice %861 {offsets = [0, 4], sizes = [2, 4], strides = [1, 1]} : vector<2x12xf32> to vector<2x4xf32>
    %872 = arith.addf %870, %871 : vector<2x4xf32>
    %873 = arith.negf %872 : vector<2x4xf32>
    %874 = math.exp %873 : vector<2x4xf32>
    %cst_136 = arith.constant 1.000000e+00 : f32
    %875 = vector.broadcast %cst_136 : f32 to vector<2x4xf32>
    %876 = arith.addf %875, %874 : vector<2x4xf32>
    %877 = arith.divf %875, %876 : vector<2x4xf32>
    %878 = vector.extract_strided_slice %858 {offsets = [0, 8], sizes = [2, 4], strides = [1, 1]} : vector<2x12xf32> to vector<2x4xf32>
    %879 = vector.extract_strided_slice %861 {offsets = [0, 8], sizes = [2, 4], strides = [1, 1]} : vector<2x12xf32> to vector<2x4xf32>
    %880 = arith.mulf %869, %879 : vector<2x4xf32>
    %881 = arith.addf %878, %880 : vector<2x4xf32>
    %882 = math.tanh %881 : vector<2x4xf32>
    %cst_137 = arith.constant 1.000000e+00 : f32
    %883 = vector.broadcast %cst_137 : f32 to vector<2x4xf32>
    %884 = arith.subf %883, %877 : vector<2x4xf32>
    %885 = arith.mulf %884, %882 : vector<2x4xf32>
    %886 = arith.mulf %877, %856 : vector<2x4xf32>
    %887 = arith.addf %885, %886 : vector<2x4xf32>
    %888 = vector.extract_strided_slice %482 {offsets = [0, 13, 0], sizes = [2, 1, 12], strides = [1, 1, 1]} : vector<2x14x12xf32> to vector<2x1x12xf32>
    %889 = vector.shape_cast %888 : vector<2x1x12xf32> to vector<2x12xf32>
    %cst_138 = arith.constant dense<0.000000e+00> : vector<2x12xf32>
    %890 = tpu.matmul %887, %475, %cst_138 {dimension_numbers = #tpu.dot_dimension_numbers<[1], [0], [0], [1], [0, 0, 1, 1], [], []>} : vector<2x4xf32>, vector<4x12xf32>, vector<2x12xf32> -> vector<2x12xf32>
    %891 = vector.broadcast %477 : vector<1x12xf32> to vector<2x12xf32>
    %892 = arith.addf %890, %891 : vector<2x12xf32>
    %893 = vector.extract_strided_slice %889 {offsets = [0, 0], sizes = [2, 4], strides = [1, 1]} : vector<2x12xf32> to vector<2x4xf32>
    %894 = vector.extract_strided_slice %892 {offsets = [0, 0], sizes = [2, 4], strides = [1, 1]} : vector<2x12xf32> to vector<2x4xf32>
    %895 = arith.addf %893, %894 : vector<2x4xf32>
    %896 = arith.negf %895 : vector<2x4xf32>
    %897 = math.exp %896 : vector<2x4xf32>
    %cst_139 = arith.constant 1.000000e+00 : f32
    %898 = vector.broadcast %cst_139 : f32 to vector<2x4xf32>
    %899 = arith.addf %898, %897 : vector<2x4xf32>
    %900 = arith.divf %898, %899 : vector<2x4xf32>
    %901 = vector.extract_strided_slice %889 {offsets = [0, 4], sizes = [2, 4], strides = [1, 1]} : vector<2x12xf32> to vector<2x4xf32>
    %902 = vector.extract_strided_slice %892 {offsets = [0, 4], sizes = [2, 4], strides = [1, 1]} : vector<2x12xf32> to vector<2x4xf32>
    %903 = arith.addf %901, %902 : vector<2x4xf32>
    %904 = arith.negf %903 : vector<2x4xf32>
    %905 = math.exp %904 : vector<2x4xf32>
    %cst_140 = arith.constant 1.000000e+00 : f32
    %906 = vector.broadcast %cst_140 : f32 to vector<2x4xf32>
    %907 = arith.addf %906, %905 : vector<2x4xf32>
    %908 = arith.divf %906, %907 : vector<2x4xf32>
    %909 = vector.extract_strided_slice %889 {offsets = [0, 8], sizes = [2, 4], strides = [1, 1]} : vector<2x12xf32> to vector<2x4xf32>
    %910 = vector.extract_strided_slice %892 {offsets = [0, 8], sizes = [2, 4], strides = [1, 1]} : vector<2x12xf32> to vector<2x4xf32>
    %911 = arith.mulf %900, %910 : vector<2x4xf32>
    %912 = arith.addf %909, %911 : vector<2x4xf32>
    %913 = math.tanh %912 : vector<2x4xf32>
    %cst_141 = arith.constant 1.000000e+00 : f32
    %914 = vector.broadcast %cst_141 : f32 to vector<2x4xf32>
    %915 = arith.subf %914, %908 : vector<2x4xf32>
    %916 = arith.mulf %915, %913 : vector<2x4xf32>
    %917 = arith.mulf %908, %887 : vector<2x4xf32>
    %918 = arith.addf %916, %917 : vector<2x4xf32>
    %919 = tpu.concatenate %515, %546, %577, %608, %639, %670, %701, %732, %763, %794, %825, %856, %887, %918 in 1 : vector<2x4xf32>, vector<2x4xf32>, vector<2x4xf32>, vector<2x4xf32>, vector<2x4xf32>, vector<2x4xf32>, vector<2x4xf32>, vector<2x4xf32>, vector<2x4xf32>, vector<2x4xf32>, vector<2x4xf32>, vector<2x4xf32>, vector<2x4xf32>, vector<2x4xf32> -> vector<2x56xf32>
    %c0_142 = arith.constant 0 : index
    %c0_143 = arith.constant 0 : index
    %920 = vector.load %arg12[%c0_142, %c0_143] : memref<2x8xf32, #tpu.memory_space<vmem>>, vector<2x8xf32>
    %c0_144 = arith.constant 0 : index
    %c0_145 = arith.constant 0 : index
    %921 = vector.load %arg13[%c0_144, %c0_145] : memref<56x34xf32, #tpu.memory_space<vmem>>, vector<56x34xf32>
    %cst_146 = arith.constant dense<0.000000e+00> : vector<2x34xf32>
    %922 = tpu.matmul %919, %921, %cst_146 {dimension_numbers = #tpu.dot_dimension_numbers<[1], [0], [0], [1], [0, 0, 1, 1], [], []>} : vector<2x56xf32>, vector<56x34xf32>, vector<2x34xf32> -> vector<2x34xf32>
    %c0_147 = arith.constant 0 : index
    %c0_148 = arith.constant 0 : index
    %923 = vector.load %arg14[%c0_147, %c0_148] : memref<8x34xf32, #tpu.memory_space<vmem>>, vector<8x34xf32>
    %cst_149 = arith.constant dense<0.000000e+00> : vector<2x34xf32>
    %924 = tpu.matmul %920, %923, %cst_149 {dimension_numbers = #tpu.dot_dimension_numbers<[1], [0], [0], [1], [0, 0, 1, 1], [], []>} : vector<2x8xf32>, vector<8x34xf32>, vector<2x34xf32> -> vector<2x34xf32>
    %925 = arith.addf %922, %924 : vector<2x34xf32>
    %c0_150 = arith.constant 0 : index
    %c0_151 = arith.constant 0 : index
    %926 = vector.load %arg15[%c0_150, %c0_151] : memref<1x34xf32, #tpu.memory_space<vmem>>, vector<1x34xf32>
    %927 = vector.broadcast %926 : vector<1x34xf32> to vector<2x34xf32>
    %928 = arith.addf %925, %927 : vector<2x34xf32>
    %c0_152 = arith.constant 0 : index
    %c0_153 = arith.constant 0 : index
    %929 = vector.load %arg16[%c0_152, %c0_153] : memref<34x4xf32, #tpu.memory_space<vmem>>, vector<34x4xf32>
    %cst_154 = arith.constant dense<0.000000e+00> : vector<2x4xf32>
    %930 = tpu.matmul %928, %929, %cst_154 {dimension_numbers = #tpu.dot_dimension_numbers<[1], [0], [0], [1], [0, 0, 1, 1], [], []>} : vector<2x34xf32>, vector<34x4xf32>, vector<2x4xf32> -> vector<2x4xf32>
    %c0_155 = arith.constant 0 : index
    %c0_156 = arith.constant 0 : index
    %931 = vector.load %arg17[%c0_155, %c0_156] : memref<1x4xf32, #tpu.memory_space<vmem>>, vector<1x4xf32>
    %932 = vector.broadcast %931 : vector<1x4xf32> to vector<2x4xf32>
    %933 = arith.addf %930, %932 : vector<2x4xf32>
    %cst_157 = arith.constant dense<0xFF800000> : vector<2xf32>
    %934 = vector.multi_reduction <maximumf>, %933, %cst_157 [1] : vector<2x4xf32> to vector<2xf32>
    %935 = vector.shape_cast %934 : vector<2xf32> to vector<2x1xf32>
    %936 = vector.broadcast %935 : vector<2x1xf32> to vector<2x4xf32>
    %937 = arith.subf %933, %936 : vector<2x4xf32>
    %938 = math.exp %937 : vector<2x4xf32>
    %cst_158 = arith.constant dense<0.000000e+00> : vector<2xf32>
    %939 = vector.multi_reduction <add>, %938, %cst_158 [1] : vector<2x4xf32> to vector<2xf32>
    %940 = vector.shape_cast %939 : vector<2xf32> to vector<2x1xf32>
    %941 = tpu.reciprocal %940 {approx = true} : vector<2x1xf32> -> vector<2x1xf32>
    %942 = vector.broadcast %941 : vector<2x1xf32> to vector<2x4xf32>
    %943 = arith.mulf %938, %942 : vector<2x4xf32>
    %c0_159 = arith.constant 0 : index
    %c0_160 = arith.constant 0 : index
    %944 = vector.load %arg18[%c0_159, %c0_160] : memref<2x4xf32, #tpu.memory_space<vmem>>, vector<2x4xf32>
    tpu.vector_store %arg18[%c0_159, %c0_160], %943 {strides = array<i32>} : memref<2x4xf32, #tpu.memory_space<vmem>>, vector<2x4xf32>,
    return
  }
}

</mosaic_0001>

<bundles_post_ra>
// kernel: tpu_custom_call.1
= control target key start
LH: loop header
LB: loop body
LE: loop exit
PB: predicated region body
PF: predicated region fallthrough
CT: control target
= control target key end

     0   :  { %s5563_s0 = inlined_call_operand.vmem [shape: f32[2,16,16], index: 0, kind: input, shape index: {}]   ;;  %s5564_s1 = inlined_call_operand.vmem [shape: f32[48,8], index: 1, kind: input, shape index: {}]   ;;  %s5565_s2 = inlined_call_operand.vmem [shape: f32[1,8], index: 2, kind: input, shape index: {}]   ;;  %s5566_s3 = inlined_call_operand.vmem [shape: f32[8,12], index: 3, kind: input, shape index: {}]   ;;  %s5567_s4 = inlined_call_operand.vmem [shape: f32[4,12], index: 4, kind: input, shape index: {}]   ;;  %s5568_s5 = inlined_call_operand.vmem [shape: f32[1,12], index: 5, kind: input, shape index: {}]   ;;  %s5569_s6 = inlined_call_operand.vmem [shape: f32[1,12], index: 6, kind: input, shape index: {}]   ;;  %s5570_s7 = inlined_call_operand.vmem [shape: f32[4,12], index: 7, kind: input, shape index: {}]   ;;  %s5571_s8 = inlined_call_operand.vmem [shape: f32[4,12], index: 8, kind: input, shape index: {}]   ;;  %s5572_s9 = inlined_call_operand.vmem [shape: f32[1,12], index: 9, kind: input, shape index: {}]   ;;  %s5573_s10 = inlined_call_operand.vmem [shape: f32[1,12], index: 10, kind: input, shape index: {}]   ;;  %s5574_s11 = inlined_call_operand.vmem [shape: f32[2,2,4], index: 11, kind: input, shape index: {}]   ;;  %s5575_s12 = inlined_call_operand.vmem [shape: f32[2,8], index: 12, kind: input, shape index: {}]   ;;  %s5576_s13 = inlined_call_operand.vmem [shape: f32[56,34], index: 13, kind: input, shape index: {}]   ;;  %s5577_s14 = inlined_call_operand.vmem [shape: f32[8,34], index: 14, kind: input, shape index: {}]   ;;  %s5578_s15 = inlined_call_operand.vmem [shape: f32[1,34], index: 15, kind: input, shape index: {}]   ;;  %s5579_s16 = inlined_call_operand.vmem [shape: f32[34,4], index: 16, kind: input, shape index: {}]   ;;  %s5580_s17 = inlined_call_operand.vmem [shape: f32[1,4], index: 17, kind: input, shape index: {}]   ;;  %s5581_s18 = inlined_call_operand.hbm [shape: f32[2,4], index: 18, kind: output, shape index: {}]  }
   0x1   :  { %5588 = sst [smem:[#allocation5_spill]] %s5563_s0 }
   0x2   :  { %5589 = sst [smem:[#allocation6_spill]] %s5564_s1 }
   0x3   :  { %5590 = sst [smem:[#allocation7_spill]] %s5565_s2 }
   0x4   :  { %s5591_s29 = sld [smem:[#allocation5_spill]]  ;;  %vm5584_vm0 = vcmask 1046528   ;;  %s4390_s22 = smov 16  }
   0xa   :  { %v61_v0 = vld [vmem:[%s5591_s29 + $0x8] sm:$0xff]  ;;  %v60_v1 = vld [vmem:[%s5591_s29] sm:$0xff]  ;;  %v62_v4 = vld [vmem:[%s5591_s29 + $0x10] sm:$0xff] }
   0xb   :  { %v70_v2 = vrot.slane %v61_v0, 1  ;;  %v69_v3 = vrot.slane %v60_v1, 1  ;;  %v4512_v5 = vld [vmem:[%s5591_s29 + $0x18] sm:$0xff]  ;;  %v72_v6 = vrot.slane %v62_v4, 1  ;;  %v89_v10 = vrot.slane %v61_v0, 2 }
   0xc   :  { %v73_v7 = vrot.slane %v4512_v5, 1  ;;  %v88_v11 = vrot.slane %v60_v1, 2 }
   0xd   :  { %77 = vrot.lane.b32.xlu1 %v70_v2, %s4390_s22  ;;  %v71_v8 = vsel %vm5584_vm0, %v69_v3, %v70_v2 }
   0xe   :  { %75 = vrot.lane.b32.xlu0 %v71_v8, %s4390_s22  ;;  %v74_v9 = vsel %vm5584_vm0, %v72_v6, %v73_v7 }
   0xf   :  { %79 = vrot.lane.b32.xlu2 %v74_v9, %s4390_s22 }
  0x10   :  { %23 = vsyncpa [#allocation3], 0  ;;  %vm87_vm1 = vcmask 1045504   ;;  %v91_v12 = vrot.slane %v62_v4, 2  ;;  %v92_v13 = vrot.slane %v4512_v5, 2  ;;  %s4391_s2 = smov 32  }
  0x11   :  { %v90_v14 = vsel %vm87_vm1, %v88_v11, %v89_v10  ;;  %s5592_s25 = sld [smem:[#allocation6_spill]]  ;;  %vm5587_vm2 = vcmask 130048   ;;  %vm5586_vm3 = vcmask 261120   ;;  %v4553_v27 = vld [vmem:[%s5567_s4] sm:$0xf]  ;;  %vm288_vm4 = vcmask 1043456  }
  0x12   :  { %v93_v15 = vsel %vm87_vm1, %v91_v12, %v92_v13  ;;  %v4558_v28 = vld [vmem:[%s5574_s11] sm:$0x3]  ;;  %vm284_vm5 = vcmask 31744   ;;  %3848 = vmatpush.msk.msra.mxu2 %vm288_vm4, %v4553_v27  ;;  %3852 = vmatpush.msk.msra.mxu3 %vm288_vm4, %v4553_v27  ;;  %vm5585_vm6 = vcmask 392192   ;;  %s4392_s0 = smov 120   ;;  %s5593_s1 = sld [smem:[#allocation7_spill]] }
  0x13   :  { %3849 = vmatmul.msk.f32.vlgmr.msra.gmra.mxu2 %vm284_vm5, %v4558_v28  ;;  %v207_v46 = vld [vmem:[%s5566_s3] sm:$0xff]  ;;  %vm214_vm7 = vcmask 64512   ;;  %s4393_s23 = smov 8   ;;  %s4394_s24 = smov 4  }
  0x14   :  { %3862 = vmatpush.msk.msrb.mxu3 %vm288_vm4, %v4553_v27  ;;  %3856 = vmatpush.msk.msrb.mxu2 %vm288_vm4, %v4553_v27  ;;  %v4586_v47 = vld [vmem:[%s5569_s6] ss:$0 sm:$0xff]  ;;  %s4395_s26 = smov 124   ;;  %s4400_s3 = smov 44  }
  0x15   :  { %96 = vrot.lane.b32.xlu1 %v89_v10, %s4391_s2  ;;  %242 = vmatpush.msra.mxu1 %v207_v46  ;;  %v4605_v58 = vld [vmem:[%s5568_s5] ss:$0 sm:$0xff] }
  0x16   :  { %94 = vrot.lane.b32.xlu0 %v90_v14, %s4391_s2  ;;  %3866 = vmatpush.msk.msra.mxu2 %vm288_vm4, %v4553_v27 }
  0x17   :  { %98 = vrot.lane.b32.xlu2 %v93_v15, %s4391_s2  ;;  %v135_v17 = vld [vmem:[%s5592_s25 + $0x28] sm:$0xff]  ;;  %v134_v19 = vld [vmem:[%s5592_s25 + $0x20] sm:$0xff]  ;;  %v133_v21 = vld [vmem:[%s5592_s25 + $0x18] sm:$0xff]  ;;  %3886 = vmatpush.msk.msrb.mxu1 %vm288_vm4, %v4553_v27 }
  0x18   :  { %184 = vmatpush.msra.mxu0 %v135_v17  ;;  %v132_v23 = vld [vmem:[%s5592_s25 + $0x10] sm:$0xff]  ;;  %v131_v24 = vld [vmem:[%s5592_s25 + $0x8] sm:$0xff]  ;;  %v130_v25 = vld [vmem:[%s5592_s25] sm:$0xff]  ;;  %s3831_s25 = sshll.u32 %s5581_s18, 4  ;;  %s3832_s25 = int_to_ptr.hbm [resolvable:$true] %s3831_s25 }
  0x19   :  { %v4594_v51 = vld [vmem:[%s5593_s1] ss:$0 sm:$0xff]  ;;  %s4402_s1 = smov 36  }
  0x1a   :  { %185 = vmatpush.msra.mxu0 %v134_v19 }
  0x1c   :  { %186 = vmatpush.msra.mxu0 %v133_v21 }
  0x1e   :  { %187 = vmatpush.msra.mxu0 %v132_v23 }
  0x20   :  { %188 = vmatpush.msra.mxu0 %v131_v24 }
  0x22   :  { %189 = vmatpush.msra.mxu0 %v130_v25 }
  0x69   :  { %v80_v16 = vpop.permute.xlu2 %79 }
  0x6a   :  { %v109_v18 = vsel %vm5587_vm2, %v62_v4, %v80_v16 }
  0x71   :  { %v99_v20 = vpop.permute.xlu2 %98 }
  0x72   :  { %v114_v22 = vsel %vm5586_vm3, %v109_v18, %v99_v20 }
  0x73   :  { %154 = vst [vmem:[#allocation1 + $0x23] ss:$4 sm:$0xff] %v114_v22  ;;  %v125_v41 = vrot.slane %v114_v22, 2  ;;  %v126_v43 = vrot.slane %v114_v22, 4  ;;  %v127_v44 = vrot.slane %v114_v22, 6 }
  0x7f   :  { %v78_v26 = vpop.permute.xlu1 %77 }
  0x80   :  { %v76_v29 = vpop.permute.xlu0 %75  ;;  %v108_v30 = vsel %vm5587_vm2, %v61_v0, %v78_v26 }
  0x81   :  { %v107_v32 = vsel %vm5587_vm2, %v60_v1, %v76_v29 }
  0x87   :  { %v97_v31 = vpop.permute.xlu1 %96 }
  0x88   :  { %v113_v33 = vsel %vm5586_vm3, %v108_v30, %v97_v31  ;;  %v95_v34 = vpop.permute.xlu0 %94 }
  0x89   :  { %v123_v35 = vrot.slane %v113_v33, 2  ;;  %v124_v36 = vrot.slane %v113_v33, 4  ;;  %148 = vst [vmem:[#allocation1 + $0x20] ss:$4 sm:$0xff] %v113_v33  ;;  %v112_v37 = vsel %vm5586_vm3, %v107_v32, %v95_v34 }
  0x8a   :  { %v120_v38 = vrot.slane %v112_v37, 2  ;;  %v121_v39 = vrot.slane %v112_v37, 4  ;;  %140 = vst [vmem:[#allocation1] ss:$4 sm:$0xff] %v112_v37  ;;  %v122_v40 = vrot.slane %v112_v37, 6 }
  0x8b   :  { %150 = vst [vmem:[#allocation1 + $0x21] ss:$4 sm:$0xff] %v123_v35 }
  0x8c   :  { %152 = vst [vmem:[#allocation1 + $0x22] ss:$4 sm:$0xff] %v124_v36 }
  0x8d   :  { %142 = vst [vmem:[#allocation1 + $0x1] ss:$4 sm:$0xff] %v120_v38 }
  0x8e   :  { %144 = vst [vmem:[#allocation1 + $0x2] ss:$4 sm:$0xff] %v121_v39 }
  0x8f   :  { %146 = vst [vmem:[#allocation1 + $0x3] ss:$4 sm:$0xff] %v122_v40  ;;  %v388_v40 = vrot.slane %v4558_v28, 1 }
  0x93   :  { %v156_v45 = vld.sshfl [vmem:[#allocation1 + $0x20] sm:$0xff pattern:$0x73625140] }
  0x96   :  { %v155_v42 = vld.sshfl [vmem:[#allocation1] sm:$0xff pattern:$0x73625140]  ;;  %v309_v48 = vpop.f32.mrf.mxu2 }
  0x97   :  { %157 = vst [vmem:[#allocation1] ss:$4 sm:$0xff] %v125_v41  ;;  %3840 = vmatmul.msk.f32.vlgmr.msra.gmra.mxu0 %vm5585_vm6, %v155_v42  ;;  %v310_v49 = vadd.f32 %v4586_v47, %v309_v48 }
  0x98   :  { %158 = vst [vmem:[#allocation1 + $0x1] ss:$4 sm:$0xff] %v126_v43 }
  0x99   :  { %159 = vst [vmem:[#allocation1 + $0x2] ss:$4 sm:$0xff] %v127_v44  ;;  %356 = vrot.lane.b32.xlu0 %v310_v49, %s4392_s0  ;;  %v313_v50 = vrot.slane %v310_v49, 1 }
  0x9b   :  { %358 = vrot.lane.b32.xlu1 %v313_v50, %s4392_s0 }
  0x9f   :  { %3841 = vmatmul.msk.f32.gmra.mxu0 %vm5585_vm6, %v156_v45 }
 0x10b   :  { %v357_v19 = vpop.permute.xlu0 %356 }
 0x10d   :  { %v359_v34 = vpop.permute.xlu1 %358 }
 0x114   :  { %v191_v52 = vpop.f32.mrf.mxu0 }
 0x115   :  { %v192_v53 = vadd.f32 %v4594_v51, %v191_v52 }
 0x117   :  { %v203_v54 = vmax.f32 %v192_v53, 0.0 }
 0x119   :  { %3844 = vmatmul.msk.f32.vlgmr.msra.gmra.mxu1 %vm214_vm7, %v203_v54 }
 0x11a   :  { %3902 = vmatpush.msk.msra.mxu1 %vm288_vm4, %v4553_v27 }
 0x11c   :  { %v194_v55 = vpop.f32.mrf.mxu0 }
 0x11d   :  { %v195_v56 = vadd.f32 %v4594_v51, %v194_v55 }
 0x11f   :  { %v204_v57 = vmax.f32 %v195_v56, 0.0 }
 0x121   :  { %3845 = vmatmul.msk.f32.gmra.mxu1 %vm214_vm7, %v204_v57 }
 0x196   :  { %v244_v59 = vpop.f32.mrf.mxu1 }
 0x197   :  { %v4608_v60 = vadd.f32 %v4605_v58, %v244_v59 }
 0x199   :  { %v316_v61 = vadd.f32 %v310_v49, %v4608_v60 }
 0x19b   :  { %v3850_v62 = vmul.f32 -1.442695, %v316_v61 }
 0x19d   :  { %4016 = vpow2.f32 %v3850_v62 }
 0x19e   :  { %v247_v63 = vpop.f32.mrf.mxu1 }
 0x19f   :  { %v4612_v0 = vadd.f32 %v4605_v58, %v247_v63 }
 0x1a1   :  { %v4615_v1 = vrot.slane %v4612_v0, 6 }
 0x1a3   :  { %v4017_v2 = vpop.eup %4016  ;;  %v317_v3 = vadd.f32 %v313_v50, %v4615_v1 }
 0x1a4   :  { %v324_v4 = vadd.f32 1.0, %v4017_v2 }
 0x1a5   :  { %v3851_v6 = vmul.f32 -1.442695, %v317_v3 }
 0x1a6   :  { %4018 = vrcp.f32 %v324_v4  ;;  %v337_v14 = vand.u32 2147483648, %v324_v4  ;;  %v335_v16 = vand.u32 2147483647, %v324_v4  ;;  %vm331_vm9 = vweird.f32 %v324_v4 }
 0x1a7   :  { %4020 = vpow2.f32 %v3851_v6 }
 0x1a8   :  { %v338_v18 = vor.u32 1.1754944e-38, %v337_v14  ;;  %vm336_vm11 = vcmp.eq.f32.partialorder %v335_v16, 8.507059e+37 }
 0x1ac   :  { %v4019_v8 = vpop.eup %4018 }
 0x1ad   :  { %v4021_v9 = vpop.eup %4020  ;;  %v327_v10 = vmul.f32 %v4019_v8, %v324_v4  ;;  %vm332_vm8 = vweird.f32 %v4019_v8 }
 0x1ae   :  { %v325_v11 = vadd.f32 1.0, %v4021_v9  ;;  %vm333_vm10 = vmor %vm331_vm9, %vm332_vm8  ;;  %vm403_vm8 = vcmask 1041409  }
 0x1af   :  { %v328_v12 = vsub.f32 1.0, %v327_v10 }
 0x1b0   :  { %4022 = vrcp.f32 %v325_v11  ;;  %v352_v26 = vand.u32 2147483648, %v325_v11  ;;  %v350_v30 = vand.u32 2147483647, %v325_v11  ;;  %vm346_vm13 = vweird.f32 %v325_v11 }
 0x1b1   :  { %v329_v15 = vmul.f32 %v4019_v8, %v328_v12 }
 0x1b2   :  { %v353_v32 = vor.u32 1.1754944e-38, %v352_v26  ;;  %vm351_vm15 = vcmp.eq.f32.partialorder %v350_v30, 8.507059e+37 }
 0x1b3   :  { %v330_v17 = vadd.f32 %v4019_v8, %v329_v15 }
 0x1b5   :  { %v334_v20 = vsel %vm333_vm10, %v4019_v8, %v330_v17 }
 0x1b6   :  { %v4023_v21 = vpop.eup %4022  ;;  %v339_v22 = vsel %vm336_vm11, %v338_v18, %v334_v20 }
 0x1b7   :  { %v362_v23 = vmul.f32 %v357_v19, %v339_v22  ;;  %v342_v24 = vmul.f32 %v4023_v21, %v325_v11  ;;  %vm347_vm12 = vweird.f32 %v4023_v21  ;;  %v376_v45 = vsub.f32 1.0, %v339_v22 }
 0x1b8   :  { %vm348_vm14 = vmor %vm346_vm13, %vm347_vm12 }
 0x1b9   :  { %366 = vrot.lane.b32.xlu2 %v362_v23, %s4393_s23  ;;  %v343_v25 = vsub.f32 1.0, %v342_v24 }
 0x1bb   :  { %v344_v29 = vmul.f32 %v4023_v21, %v343_v25 }
 0x1bd   :  { %v345_v31 = vadd.f32 %v4023_v21, %v344_v29 }
 0x1bf   :  { %v349_v33 = vsel %vm348_vm14, %v4023_v21, %v345_v31 }
 0x1c0   :  { %v354_v35 = vsel %vm351_vm15, %v353_v32, %v349_v33 }
 0x1c1   :  { %v363_v36 = vmul.f32 %v359_v34, %v354_v35  ;;  %v377_v52 = vsub.f32 1.0, %v354_v35 }
 0x1c3   :  { %368 = vrot.lane.b32.xlu0 %v363_v36, %s4393_s23 }
 0x1cb   :  { %389 = vrot.lane.b32.xlu0 %v4558_v28, %s4394_s24 }
 0x213   :  { %v367_v37 = vpop.permute.xlu2 %366 }
 0x214   :  { %v372_v38 = vadd.f32 %v367_v37, %v4608_v60 }
 0x216   :  { %4024 = vtanh.f32 %v372_v38 }
 0x21c   :  { %v4025_v39 = vpop.eup %4024 }
 0x21d   :  { %380 = vrot.lane.b32.xlu1 %v4025_v39, %s4395_s26 }
 0x225   :  { %391 = vrot.lane.b32.xlu1 %v388_v40, %s4394_s24 }
 0x235   :  { %v369_v41 = vpop.permute.xlu0 %368 }
 0x236   :  { %v373_v42 = vadd.f32 %v369_v41, %v4615_v1 }
 0x238   :  { %4026 = vtanh.f32 %v373_v42 }
 0x23d   :  { %v390_v46 = vpop.permute.xlu0 %389 }
 0x23e   :  { %v4027_v43 = vpop.eup %4026  ;;  %v395_v50 = vmul.f32 %v390_v46, %v339_v22 }
 0x23f   :  { %382 = vrot.lane.b32.xlu2 %v4027_v43, %s4395_s26 }
 0x28f   :  { %v381_v44 = vpop.permute.xlu1 %380 }
 0x290   :  { %v386_v48 = vmul.f32 %v381_v44, %v376_v45 }
 0x292   :  { %v4628_v54 = vadd.f32 %v395_v50, %v386_v48 }
 0x294   :  { %v401_v57 = vperm.slane %v4628_v54, 0 }
 0x297   :  { %v392_v49 = vpop.permute.xlu1 %391 }
 0x298   :  { %v396_v28 = vmul.f32 %v392_v49, %v354_v35 }
 0x299   :  { %v383_v53 = vpop.permute.xlu2 %382 }
 0x29a   :  { %v387_v55 = vmul.f32 %v383_v53, %v377_v52 }
 0x29c   :  { %v4630_v56 = vadd.f32 %v396_v28, %v387_v55 }
 0x29e   :  { %v402_v59 = vperm.slane %v4630_v56, 0 }
 0x2a0   :  { %v404_v61 = vsel %vm403_vm8, %v402_v59, %v401_v57 }
 0x2a1   :  { %405 = vrot.lane.b32.xlu2 %v404_v61, %s4395_s26 }
 0x2a9   :  { %81 = vrot.lane.b32.xlu2 %v73_v7, %s4390_s22 }
 0x2fb   :  { %v406_v62 = vpop.permute.xlu2 %405 }
 0x2fc   :  { %3853 = vmatmul.msk.f32.vlgmr.msra.gmra.mxu3 %vm284_vm5, %v406_v62 }
 0x2fd   :  { %3872 = vmatpush.msk.msra.mxu3 %vm288_vm4, %v4553_v27 }
 0x303   :  { %v82_v39 = vpop.permute.xlu2 %81 }
 0x304   :  { %v110_v40 = vsel %vm5587_vm2, %v4512_v5, %v82_v39 }
 0x37f   :  { %v426_v63 = vpop.f32.mrf.mxu3 }
 0x380   :  { %v427_v2 = vadd.f32 %v4586_v47, %v426_v63 }
 0x382   :  { %475 = vrot.lane.b32.xlu1 %v427_v2, %s4392_s0  ;;  %v430_v3 = vrot.slane %v427_v2, 7  ;;  %v434_v7 = vadd.f32 %v427_v2, %v4615_v1  ;;  %v506_v2 = vrot.slane %v4630_v56, 7 }
 0x384   :  { %473 = vrot.lane.b32.xlu0 %v430_v3, %s4392_s0  ;;  %v433_v4 = vadd.f32 %v430_v3, %v4608_v60  ;;  %v3855_v6 = vmul.f32 -1.442695, %v434_v7 }
 0x386   :  { %v3854_v8 = vmul.f32 -1.442695, %v433_v4  ;;  %4028 = vpow2.f32 %v3855_v6  ;;  %v505_v6 = vrot.slane %v4628_v54, 7 }
 0x388   :  { %4030 = vpow2.f32 %v3854_v8 }
 0x38c   :  { %100 = vrot.lane.b32.xlu0 %v92_v13, %s4391_s2  ;;  %v4029_v9 = vpop.eup %4028 }
 0x38d   :  { %v442_v11 = vadd.f32 1.0, %v4029_v9 }
 0x38e   :  { %v4031_v10 = vpop.eup %4030 }
 0x38f   :  { %v441_v12 = vadd.f32 1.0, %v4031_v10  ;;  %4032 = vrcp.f32 %v442_v11  ;;  %v469_v22 = vand.u32 2147483648, %v442_v11  ;;  %vm463_vm10 = vweird.f32 %v442_v11 }
 0x390   :  { %v467_v23 = vand.u32 2147483647, %v442_v11 }
 0x391   :  { %4034 = vrcp.f32 %v441_v12  ;;  %v454_v25 = vand.u32 2147483648, %v441_v12  ;;  %vm448_vm13 = vweird.f32 %v441_v12  ;;  %v452_v29 = vand.u32 2147483647, %v441_v12 }
 0x392   :  { %v470_v30 = vor.u32 1.1754944e-38, %v469_v22  ;;  %vm468_vm15 = vcmp.eq.f32.partialorder %v467_v23, 8.507059e+37 }
 0x393   :  { %v455_v34 = vor.u32 1.1754944e-38, %v454_v25  ;;  %vm453_vm0 = vcmp.eq.f32.partialorder %v452_v29, 8.507059e+37 }
 0x395   :  { %v4033_v14 = vpop.eup %4032 }
 0x396   :  { %v459_v16 = vmul.f32 %v4033_v14, %v442_v11  ;;  %vm464_vm9 = vweird.f32 %v4033_v14 }
 0x397   :  { %v4035_v15 = vpop.eup %4034  ;;  %vm465_vm12 = vmor %vm463_vm10, %vm464_vm9 }
 0x398   :  { %v444_v17 = vmul.f32 %v4035_v15, %v441_v12  ;;  %v460_v18 = vsub.f32 1.0, %v459_v16  ;;  %vm449_vm11 = vweird.f32 %v4035_v15 }
 0x399   :  { %vm450_vm14 = vmor %vm448_vm13, %vm449_vm11 }
 0x39a   :  { %v445_v13 = vsub.f32 1.0, %v444_v17  ;;  %v461_v19 = vmul.f32 %v4033_v14, %v460_v18 }
 0x39c   :  { %v446_v20 = vmul.f32 %v4035_v15, %v445_v13  ;;  %v462_v21 = vadd.f32 %v4033_v14, %v461_v19 }
 0x39e   :  { %v447_v24 = vadd.f32 %v4035_v15, %v446_v20  ;;  %v466_v26 = vsel %vm465_vm12, %v4033_v14, %v462_v21  ;;  %v4682_v20 = vrot.slane %v4608_v60, 2 }
 0x39f   :  { %v471_v33 = vsel %vm468_vm15, %v470_v30, %v466_v26 }
 0x3a0   :  { %v451_v31 = vsel %vm450_vm14, %v4035_v15, %v447_v24  ;;  %v494_v63 = vsub.f32 1.0, %v471_v33  ;;  %v510_v7 = vmul.f32 %v506_v2, %v471_v33 }
 0x3a1   :  { %v456_v37 = vsel %vm453_vm0, %v455_v34, %v451_v31 }
 0x3a2   :  { %v493_v4 = vsub.f32 1.0, %v456_v37  ;;  %v509_v10 = vmul.f32 %v505_v6, %v456_v37 }
 0x3f4   :  { %v476_v32 = vpop.permute.xlu1 %475 }
 0x3f5   :  { %v480_v35 = vmul.f32 %v476_v32, %v471_v33 }
 0x3f6   :  { %v474_v36 = vpop.permute.xlu0 %473 }
 0x3f7   :  { %v479_v38 = vmul.f32 %v474_v36, %v456_v37  ;;  %485 = vrot.lane.b32.xlu2 %v480_v35, %s4393_s23 }
 0x3f9   :  { %483 = vrot.lane.b32.xlu1 %v479_v38, %s4393_s23 }
 0x3fe   :  { %v101_v41 = vpop.permute.xlu0 %100 }
 0x3ff   :  { %v115_v42 = vsel %vm5586_vm3, %v110_v40, %v101_v41 }
 0x400   :  { %v128_v43 = vrot.slane %v115_v42, 2  ;;  %v129_v44 = vrot.slane %v115_v42, 4  ;;  %160 = vst [vmem:[#allocation1 + $0x3] ss:$4 sm:$0xff] %v115_v42 }
 0x402   :  { %161 = vst [vmem:[#allocation1 + $0x20] ss:$4 sm:$0xff] %v128_v43 }
 0x403   :  { %162 = vst [vmem:[#allocation1 + $0x21] ss:$4 sm:$0xff] %v129_v44 }
 0x407   :  { %v163_v45 = vld.sshfl [vmem:[#allocation1] sm:$0xff pattern:$0x73625140] }
 0x408   :  { %3842 = vmatmul.msk.f32.gmra.mxu0 %vm5585_vm6, %v163_v45 }
 0x40a   :  { %v164_v46 = vld.sshfl [vmem:[#allocation1 + $0x20] sm:$0xff pattern:$0x73625140] }
 0x410   :  { %3843 = vmatmul.msk.f32.gmra.mxu0 %vm5585_vm6, %v164_v46 }
 0x451   :  { %v486_v48 = vpop.permute.xlu2 %485 }
 0x452   :  { %v490_v49 = vadd.f32 %v486_v48, %v4615_v1 }
 0x454   :  { %4036 = vtanh.f32 %v490_v49 }
 0x45a   :  { %v4037_v50 = vpop.eup %4036 }
 0x45b   :  { %499 = vrot.lane.b32.xlu1 %v4037_v50, %s4395_s26 }
 0x46b   :  { %v484_v5 = vpop.permute.xlu1 %483 }
 0x46c   :  { %v489_v52 = vadd.f32 %v484_v5, %v4608_v60 }
 0x46e   :  { %4038 = vtanh.f32 %v489_v52 }
 0x474   :  { %v4039_v53 = vpop.eup %4038 }
 0x475   :  { %497 = vrot.lane.b32.xlu0 %v4039_v53, %s4395_s26 }
 0x485   :  { %v197_v28 = vpop.f32.mrf.mxu0 }
 0x486   :  { %v198_v55 = vadd.f32 %v4594_v51, %v197_v28 }
 0x488   :  { %v205_v57 = vmax.f32 %v198_v55, 0.0 }
 0x48a   :  { %3846 = vmatmul.msk.f32.gmra.mxu1 %vm214_vm7, %v205_v57 }
 0x48d   :  { %v200_v59 = vpop.f32.mrf.mxu0 }
 0x48e   :  { %v201_v1 = vadd.f32 %v4594_v51, %v200_v59 }
 0x490   :  { %v206_v61 = vmax.f32 %v201_v1, 0.0 }
 0x492   :  { %3847 = vmatmul.msk.f32.gmra.mxu1 %vm214_vm7, %v206_v61 }
 0x4cd   :  { %v500_v62 = vpop.permute.xlu1 %499 }
 0x4ce   :  { %v504_v3 = vmul.f32 %v500_v62, %v494_v63 }
 0x4d0   :  { %v4667_v9 = vadd.f32 %v510_v7, %v504_v3 }
 0x4d2   :  { %v516_v14 = vperm.slane %v4667_v9, 1 }
 0x4e7   :  { %v498_v8 = vpop.permute.xlu0 %497 }
 0x4e8   :  { %v503_v11 = vmul.f32 %v498_v8, %v493_v4 }
 0x4ea   :  { %v4669_v12 = vadd.f32 %v509_v10, %v503_v11  ;;  %v3861_v10 = vrot.slane %v4667_v9, 9 }
 0x4ec   :  { %v515_v51 = vperm.slane %v4669_v12, 1  ;;  %v3860_v3 = vrot.slane %v4669_v12, 9 }
 0x4ee   :  { %v517_v15 = vsel %vm403_vm8, %v516_v14, %v515_v51 }
 0x4ef   :  { %518 = vrot.lane.b32.xlu2 %v517_v15, %s4395_s26 }
 0x507   :  { %v250_v19 = vpop.f32.mrf.mxu1 }
 0x508   :  { %v4685_v21 = vadd.f32 %v4605_v58, %v250_v19 }
 0x549   :  { %v519_v16 = vpop.permute.xlu2 %518 }
 0x54a   :  { %3857 = vmatmul.msk.f32.vlgmr.msrb.gmra.mxu2 %vm284_vm5, %v519_v16 }
 0x54b   :  { %3876 = vmatpush.msk.msrb.mxu2 %vm288_vm4, %v4553_v27 }
 0x5cd   :  { %v539_v17 = vpop.f32.mrf.mxu2 }
 0x5ce   :  { %v540_v18 = vadd.f32 %v4586_v47, %v539_v17 }
 0x5d0   :  { %586 = vrot.lane.b32.xlu0 %v540_v18, %s4392_s0  ;;  %v543_v13 = vrot.slane %v540_v18, 1  ;;  %v546_v22 = vadd.f32 %v540_v18, %v4682_v20 }
 0x5d2   :  { %588 = vrot.lane.b32.xlu1 %v543_v13, %s4392_s0  ;;  %v547_v23 = vadd.f32 %v543_v13, %v4685_v21  ;;  %v3858_v24 = vmul.f32 -1.442695, %v546_v22 }
 0x5d4   :  { %v3859_v25 = vmul.f32 -1.442695, %v547_v23  ;;  %4040 = vpow2.f32 %v3858_v24 }
 0x5d6   :  { %4042 = vpow2.f32 %v3859_v25 }
 0x5da   :  { %v4041_v26 = vpop.eup %4040 }
 0x5db   :  { %v554_v30 = vadd.f32 1.0, %v4041_v26 }
 0x5dc   :  { %v4043_v29 = vpop.eup %4042 }
 0x5dd   :  { %v555_v31 = vadd.f32 1.0, %v4043_v29  ;;  %4044 = vrcp.f32 %v554_v30  ;;  %v567_v40 = vand.u32 2147483648, %v554_v30  ;;  %vm561_vm9 = vweird.f32 %v554_v30 }
 0x5de   :  { %v565_v41 = vand.u32 2147483647, %v554_v30 }
 0x5df   :  { %4046 = vrcp.f32 %v555_v31  ;;  %v582_v43 = vand.u32 2147483648, %v555_v31  ;;  %vm576_vm12 = vweird.f32 %v555_v31  ;;  %v580_v45 = vand.u32 2147483647, %v555_v31 }
 0x5e0   :  { %v568_v46 = vor.u32 1.1754944e-38, %v567_v40  ;;  %vm566_vm14 = vcmp.eq.f32.partialorder %v565_v41, 8.507059e+37 }
 0x5e1   :  { %v583_v5 = vor.u32 1.1754944e-38, %v582_v43  ;;  %vm581_vm15 = vcmp.eq.f32.partialorder %v580_v45, 8.507059e+37 }
 0x5e3   :  { %v4045_v32 = vpop.eup %4044 }
 0x5e4   :  { %v557_v34 = vmul.f32 %v4045_v32, %v554_v30  ;;  %vm562_vm0 = vweird.f32 %v4045_v32 }
 0x5e5   :  { %v4047_v33 = vpop.eup %4046  ;;  %vm563_vm11 = vmor %vm561_vm9, %vm562_vm0  ;;  %vm1908_vm0 = vcmask 1041408   ;;  %vm1905_vm9 = vcmask 1040384  }
 0x5e6   :  { %v572_v35 = vmul.f32 %v4047_v33, %v555_v31  ;;  %v558_v58 = vsub.f32 1.0, %v557_v34  ;;  %vm577_vm10 = vweird.f32 %v4047_v33  ;;  %v1906_v18 = vsel %vm1905_vm9, %v4628_v54, %v4669_v12 }
 0x5e7   :  { %vm578_vm13 = vmor %vm576_vm12, %vm577_vm10  ;;  %v1907_v22 = vsel %vm1905_vm9, %v4630_v56, %v4667_v9 }
 0x5e8   :  { %v573_v36 = vsub.f32 1.0, %v572_v35  ;;  %v559_v37 = vmul.f32 %v4045_v32, %v558_v58 }
 0x5ea   :  { %v574_v38 = vmul.f32 %v4047_v33, %v573_v36  ;;  %v560_v39 = vadd.f32 %v4045_v32, %v559_v37 }
 0x5ec   :  { %v575_v42 = vadd.f32 %v4047_v33, %v574_v38  ;;  %v564_v44 = vsel %vm563_vm11, %v4045_v32, %v560_v39 }
 0x5ed   :  { %v569_v50 = vsel %vm566_vm14, %v568_v46, %v564_v44 }
 0x5ee   :  { %v579_v48 = vsel %vm578_vm13, %v4047_v33, %v575_v42  ;;  %v606_v2 = vsub.f32 1.0, %v569_v50  ;;  %v624_v4 = vmul.f32 %v3860_v3, %v569_v50 }
 0x5ef   :  { %v584_v28 = vsel %vm581_vm15, %v583_v5, %v579_v48 }
 0x5f0   :  { %v607_v8 = vsub.f32 1.0, %v584_v28  ;;  %v625_v14 = vmul.f32 %v3861_v10, %v584_v28 }
 0x642   :  { %v587_v49 = vpop.permute.xlu0 %586 }
 0x643   :  { %v592_v52 = vmul.f32 %v587_v49, %v569_v50 }
 0x644   :  { %v589_v53 = vpop.permute.xlu1 %588 }
 0x645   :  { %v593_v55 = vmul.f32 %v589_v53, %v584_v28  ;;  %596 = vrot.lane.b32.xlu2 %v592_v52, %s4393_s23 }
 0x647   :  { %598 = vrot.lane.b32.xlu0 %v593_v55, %s4393_s23 }
 0x69f   :  { %v597_v57 = vpop.permute.xlu2 %596 }
 0x6a0   :  { %v602_v59 = vadd.f32 %v597_v57, %v4682_v20 }
 0x6a2   :  { %4048 = vtanh.f32 %v602_v59 }
 0x6a8   :  { %v4049_v1 = vpop.eup %4048 }
 0x6a9   :  { %610 = vrot.lane.b32.xlu1 %v4049_v1, %s4395_s26 }
 0x6b9   :  { %v599_v61 = vpop.permute.xlu0 %598 }
 0x6ba   :  { %v603_v62 = vadd.f32 %v599_v61, %v4685_v21 }
 0x6bc   :  { %4050 = vtanh.f32 %v603_v62 }
 0x6c2   :  { %v4051_v63 = vpop.eup %4050 }
 0x6c3   :  { %612 = vrot.lane.b32.xlu2 %v4051_v63, %s4395_s26 }
 0x71b   :  { %v611_v7 = vpop.permute.xlu1 %610 }
 0x71c   :  { %v616_v6 = vmul.f32 %v611_v7, %v606_v2 }
 0x71d   :  { %v613_v11 = vpop.permute.xlu2 %612 }
 0x71e   :  { %v4697_v51 = vadd.f32 %v624_v4, %v616_v6  ;;  %v617_v15 = vmul.f32 %v613_v11, %v607_v8 }
 0x720   :  { %v630_v16 = vperm.slane %v4697_v51, 0  ;;  %v627_v17 = vadd.f32 %v625_v14, %v617_v15  ;;  %v733_v11 = vrot.slane %v4697_v51, 7 }
 0x722   :  { %v4704_v13 = vsel %vm1908_vm0, %v1906_v18, %v630_v16  ;;  %v631_v19 = vperm.slane %v627_v17, 0  ;;  %v734_v38 = vrot.slane %v627_v17, 7 }
 0x724   :  { %v4710_v23 = vsel %vm1908_vm0, %v1907_v22, %v631_v19  ;;  %v632_v24 = vsel %vm403_vm8, %v631_v19, %v630_v16 }
 0x725   :  { %633 = vrot.lane.b32.xlu0 %v632_v24, %s4395_s26 }
 0x797   :  { %v634_v25 = vpop.permute.xlu0 %633 }
 0x798   :  { %3863 = vmatmul.msk.f32.vlgmr.msrb.gmra.mxu3 %vm284_vm5, %v634_v25 }
 0x799   :  { %3882 = vmatpush.msk.msrb.mxu3 %vm288_vm4, %v4553_v27 }
 0x81b   :  { %v654_v54 = vpop.f32.mrf.mxu3 }
 0x81c   :  { %v655_v12 = vadd.f32 %v4586_v47, %v654_v54 }
 0x81e   :  { %v662_v26 = vadd.f32 %v655_v12, %v4685_v21  ;;  %703 = vrot.lane.b32.xlu2 %v655_v12, %s4392_s0  ;;  %v658_v56 = vrot.slane %v655_v12, 7 }
 0x820   :  { %v3865_v9 = vmul.f32 -1.442695, %v662_v26  ;;  %701 = vrot.lane.b32.xlu1 %v658_v56, %s4392_s0  ;;  %v661_v42 = vadd.f32 %v658_v56, %v4682_v20  ;;  %v4746_v56 = vrot.slane %v4608_v60, 4 }
 0x822   :  { %4052 = vpow2.f32 %v3865_v9  ;;  %v3864_v43 = vmul.f32 -1.442695, %v661_v42 }
 0x828   :  { %v4053_v29 = vpop.eup %4052 }
 0x829   :  { %v670_v30 = vadd.f32 1.0, %v4053_v29 }
 0x82b   :  { %4054 = vrcp.f32 %v670_v30  ;;  %v697_v34 = vand.u32 2147483648, %v670_v30  ;;  %v695_v58 = vand.u32 2147483647, %v670_v30  ;;  %vm691_vm11 = vweird.f32 %v670_v30 }
 0x82c   :  { %4056 = vpow2.f32 %v3864_v43  ;;  %v4753_v43 = vrot.slane %v4685_v21, 2 }
 0x82d   :  { %v698_v37 = vor.u32 1.1754944e-38, %v697_v34  ;;  %vm696_vm13 = vcmp.eq.f32.partialorder %v695_v58, 8.507059e+37 }
 0x831   :  { %v4055_v31 = vpop.eup %4054 }
 0x832   :  { %v687_v32 = vmul.f32 %v4055_v31, %v670_v30  ;;  %vm692_vm10 = vweird.f32 %v4055_v31  ;;  %v4057_v44 = vpop.eup %4056 }
 0x833   :  { %vm693_vm12 = vmor %vm691_vm11, %vm692_vm10  ;;  %v669_v45 = vadd.f32 1.0, %v4057_v44 }
 0x834   :  { %v688_v33 = vsub.f32 1.0, %v687_v32 }
 0x835   :  { %4058 = vrcp.f32 %v669_v45  ;;  %v682_v28 = vand.u32 2147483648, %v669_v45  ;;  %vm676_vm15 = vweird.f32 %v669_v45  ;;  %v680_v55 = vand.u32 2147483647, %v669_v45 }
 0x836   :  { %v689_v35 = vmul.f32 %v4055_v31, %v688_v33 }
 0x837   :  { %v683_v59 = vor.u32 1.1754944e-38, %v682_v28  ;;  %vm681_vm11 = vcmp.eq.f32.partialorder %v680_v55, 8.507059e+37 }
 0x838   :  { %v690_v36 = vadd.f32 %v4055_v31, %v689_v35 }
 0x83a   :  { %v694_v39 = vsel %vm693_vm12, %v4055_v31, %v690_v36  ;;  %vm1911_vm12 = vcmask 1042432  }
 0x83b   :  { %v699_v40 = vsel %vm696_vm13, %v698_v37, %v694_v39  ;;  %v4059_v49 = vpop.eup %4058 }
 0x83c   :  { %v738_v41 = vmul.f32 %v734_v38, %v699_v40  ;;  %v672_v50 = vmul.f32 %v4059_v49, %v669_v45  ;;  %vm677_vm14 = vweird.f32 %v4059_v49  ;;  %v722_v8 = vsub.f32 1.0, %v699_v40 }
 0x83d   :  { %vm678_vm10 = vmor %vm676_vm15, %vm677_vm14 }
 0x83e   :  { %v673_v5 = vsub.f32 1.0, %v672_v50 }
 0x840   :  { %v674_v52 = vmul.f32 %v4059_v49, %v673_v5 }
 0x842   :  { %v675_v53 = vadd.f32 %v4059_v49, %v674_v52 }
 0x844   :  { %v679_v57 = vsel %vm678_vm10, %v4059_v49, %v675_v53 }
 0x845   :  { %v684_v61 = vsel %vm681_vm11, %v683_v59, %v679_v57 }
 0x846   :  { %v721_v15 = vsub.f32 1.0, %v684_v61  ;;  %v737_v18 = vmul.f32 %v733_v11, %v684_v61 }
 0x878   :  { %v704_v46 = vpop.permute.xlu2 %703 }
 0x879   :  { %v708_v48 = vmul.f32 %v704_v46, %v699_v40 }
 0x87b   :  { %713 = vrot.lane.b32.xlu1 %v708_v48, %s4393_s23 }
 0x892   :  { %v702_v1 = vpop.permute.xlu1 %701 }
 0x893   :  { %v707_v62 = vmul.f32 %v702_v1, %v684_v61 }
 0x895   :  { %711 = vrot.lane.b32.xlu0 %v707_v62, %s4393_s23 }
 0x8ed   :  { %v714_v63 = vpop.permute.xlu1 %713 }
 0x8ee   :  { %v718_v2 = vadd.f32 %v714_v63, %v4685_v21 }
 0x8f0   :  { %4060 = vtanh.f32 %v718_v2 }
 0x8f6   :  { %v4061_v3 = vpop.eup %4060 }
 0x8f7   :  { %727 = vrot.lane.b32.xlu0 %v4061_v3, %s4395_s26 }
 0x907   :  { %v712_v7 = vpop.permute.xlu0 %711 }
 0x908   :  { %v717_v4 = vadd.f32 %v712_v7, %v4682_v20 }
 0x90a   :  { %4062 = vtanh.f32 %v717_v4 }
 0x910   :  { %v4063_v6 = vpop.eup %4062 }
 0x911   :  { %725 = vrot.lane.b32.xlu2 %v4063_v6, %s4395_s26 }
 0x969   :  { %v728_v10 = vpop.permute.xlu0 %727 }
 0x96a   :  { %v732_v14 = vmul.f32 %v728_v10, %v722_v8 }
 0x96b   :  { %v726_v16 = vpop.permute.xlu2 %725 }
 0x96c   :  { %v4729_v17 = vadd.f32 %v738_v41, %v732_v14  ;;  %v731_v19 = vmul.f32 %v726_v16, %v721_v15 }
 0x96e   :  { %v744_v22 = vperm.slane %v4729_v17, 1  ;;  %v739_v24 = vadd.f32 %v737_v18, %v731_v19  ;;  %v3871_v15 = vrot.slane %v4729_v17, 9 }
 0x970   :  { %v4734_v20 = vsel %vm1911_vm12, %v4710_v23, %v744_v22  ;;  %v743_v25 = vperm.slane %v739_v24, 1  ;;  %v3870_v39 = vrot.slane %v739_v24, 9 }
 0x972   :  { %v4738_v54 = vsel %vm1911_vm12, %v4704_v13, %v743_v25  ;;  %v745_v51 = vsel %vm403_vm8, %v744_v22, %v743_v25 }
 0x973   :  { %746 = vrot.lane.b32.xlu1 %v745_v51, %s4395_s26 }
 0x9e5   :  { %v747_v12 = vpop.permute.xlu1 %746 }
 0x9e6   :  { %3867 = vmatmul.msk.f32.vlgmr.msra.gmra.mxu2 %vm284_vm5, %v747_v12 }
 0x9e7   :  { %3892 = vmatpush.msk.msra.mxu2 %vm288_vm4, %v4553_v27 }
 0xa69   :  { %v767_v26 = vpop.f32.mrf.mxu2 }
 0xa6a   :  { %v768_v23 = vadd.f32 %v4586_v47, %v767_v26 }
 0xa6c   :  { %v774_v9 = vadd.f32 %v768_v23, %v4746_v56  ;;  %814 = vrot.lane.b32.xlu2 %v768_v23, %s4392_s0  ;;  %v771_v13 = vrot.slane %v768_v23, 1 }
 0xa6e   :  { %v3868_v29 = vmul.f32 -1.442695, %v774_v9  ;;  %816 = vrot.lane.b32.xlu0 %v771_v13, %s4392_s0  ;;  %v775_v44 = vadd.f32 %v771_v13, %v4753_v43 }
 0xa70   :  { %4064 = vpow2.f32 %v3868_v29  ;;  %v3869_v45 = vmul.f32 -1.442695, %v775_v44 }
 0xa76   :  { %v4065_v30 = vpop.eup %4064 }
 0xa77   :  { %v782_v31 = vadd.f32 1.0, %v4065_v30 }
 0xa79   :  { %4066 = vrcp.f32 %v782_v31  ;;  %v795_v35 = vand.u32 2147483648, %v782_v31  ;;  %v793_v36 = vand.u32 2147483647, %v782_v31  ;;  %vm789_vm14 = vweird.f32 %v782_v31 }
 0xa7a   :  { %4068 = vpow2.f32 %v3869_v45 }
 0xa7b   :  { %v796_v38 = vor.u32 1.1754944e-38, %v795_v35  ;;  %vm794_vm10 = vcmp.eq.f32.partialorder %v793_v36, 8.507059e+37 }
 0xa7f   :  { %v4067_v32 = vpop.eup %4066 }
 0xa80   :  { %v785_v33 = vmul.f32 %v4067_v32, %v782_v31  ;;  %vm790_vm13 = vweird.f32 %v4067_v32  ;;  %v4069_v46 = vpop.eup %4068 }
 0xa81   :  { %vm791_vm15 = vmor %vm789_vm14, %vm790_vm13  ;;  %v783_v48 = vadd.f32 1.0, %v4069_v46 }
 0xa82   :  { %v786_v34 = vsub.f32 1.0, %v785_v33 }
 0xa83   :  { %4070 = vrcp.f32 %v783_v48  ;;  %v810_v57 = vand.u32 2147483648, %v783_v48  ;;  %vm804_vm13 = vweird.f32 %v783_v48  ;;  %v808_v59 = vand.u32 2147483647, %v783_v48 }
 0xa84   :  { %v787_v58 = vmul.f32 %v4067_v32, %v786_v34 }
 0xa85   :  { %v811_v61 = vor.u32 1.1754944e-38, %v810_v57 }
 0xa86   :  { %v788_v37 = vadd.f32 %v4067_v32, %v787_v58 }
 0xa88   :  { %v792_v40 = vsel %vm791_vm15, %v4067_v32, %v788_v37  ;;  %vm809_vm15 = vcmp.eq.f32.partialorder %v808_v59, 8.507059e+37 }
 0xa89   :  { %v797_v41 = vsel %vm794_vm10, %v796_v38, %v792_v40  ;;  %v4071_v5 = vpop.eup %4070 }
 0xa8a   :  { %v852_v42 = vmul.f32 %v3870_v39, %v797_v41  ;;  %v800_v52 = vmul.f32 %v4071_v5, %v783_v48  ;;  %vm805_vm11 = vweird.f32 %v4071_v5  ;;  %v834_v11 = vsub.f32 1.0, %v797_v41 }
 0xa8b   :  { %vm806_vm14 = vmor %vm804_vm13, %vm805_vm11 }
 0xa8c   :  { %v801_v53 = vsub.f32 1.0, %v800_v52 }
 0xa8e   :  { %v802_v28 = vmul.f32 %v4071_v5, %v801_v53 }
 0xa90   :  { %v803_v55 = vadd.f32 %v4071_v5, %v802_v28 }
 0xa92   :  { %v807_v1 = vsel %vm806_vm14, %v4071_v5, %v803_v55 }
 0xa93   :  { %v812_v63 = vsel %vm809_vm15, %v811_v61, %v807_v1 }
 0xa94   :  { %v835_v18 = vsub.f32 1.0, %v812_v63  ;;  %v853_v24 = vmul.f32 %v3871_v15, %v812_v63 }
 0xac6   :  { %v815_v49 = vpop.permute.xlu2 %814 }
 0xac7   :  { %v820_v50 = vmul.f32 %v815_v49, %v797_v41 }
 0xac9   :  { %824 = vrot.lane.b32.xlu1 %v820_v50, %s4393_s23 }
 0xae0   :  { %v817_v62 = vpop.permute.xlu0 %816 }
 0xae1   :  { %v821_v2 = vmul.f32 %v817_v62, %v812_v63 }
 0xae3   :  { %826 = vrot.lane.b32.xlu2 %v821_v2, %s4393_s23 }
 0xb3b   :  { %v825_v3 = vpop.permute.xlu1 %824 }
 0xb3c   :  { %v830_v7 = vadd.f32 %v825_v3, %v4746_v56 }
 0xb3d   :  { %v827_v4 = vpop.permute.xlu2 %826 }
 0xb3e   :  { %4072 = vtanh.f32 %v830_v7  ;;  %v831_v6 = vadd.f32 %v827_v4, %v4753_v43 }
 0xb40   :  { %4074 = vtanh.f32 %v831_v6 }
 0xb44   :  { %v4073_v8 = vpop.eup %4072 }
 0xb45   :  { %838 = vrot.lane.b32.xlu0 %v4073_v8, %s4395_s26 }
 0xb46   :  { %v4075_v10 = vpop.eup %4074 }
 0xb47   :  { %840 = vrot.lane.b32.xlu1 %v4075_v10, %s4395_s26 }
 0xbb7   :  { %v839_v14 = vpop.permute.xlu0 %838 }
 0xbb8   :  { %v844_v16 = vmul.f32 %v839_v14, %v834_v11 }
 0xbb9   :  { %v841_v19 = vpop.permute.xlu1 %840 }
 0xbba   :  { %v4763_v22 = vadd.f32 %v852_v42, %v844_v16  ;;  %v845_v25 = vmul.f32 %v841_v19, %v835_v18 }
 0xbbc   :  { %v858_v51 = vperm.slane %v4763_v22, 0  ;;  %v4766_v12 = vadd.f32 %v853_v24, %v845_v25  ;;  %v961_v14 = vrot.slane %v4763_v22, 7 }
 0xbbe   :  { %v4770_v26 = vsel %vm288_vm4, %v4738_v54, %v858_v51  ;;  %v859_v23 = vperm.slane %v4766_v12, 0  ;;  %v962_v8 = vrot.slane %v4766_v12, 7 }
 0xbc0   :  { %v4775_v17 = vsel %vm288_vm4, %v4734_v20, %v859_v23  ;;  %v860_v9 = vsel %vm403_vm8, %v859_v23, %v858_v51 }
 0xbc1   :  { %861 = vrot.lane.b32.xlu2 %v860_v9, %s4395_s26 }
 0xc1b   :  { %v862_v13 = vpop.permute.xlu2 %861 }
 0xc1c   :  { %3873 = vmatmul.msk.f32.vlgmr.msra.gmra.mxu3 %vm284_vm5, %v862_v13 }
 0xc1d   :  { %3896 = vmatpush.msk.msra.mxu3 %vm288_vm4, %v4553_v27 }
 0xc9f   :  { %v882_v29 = vpop.f32.mrf.mxu3 }
 0xca0   :  { %v883_v54 = vadd.f32 %v4586_v47, %v882_v29  ;;  %v4812_v29 = vld [vmem:[%s5567_s4] sm:$0xf] }
 0xca2   :  { %931 = vrot.lane.b32.xlu1 %v883_v54, %s4392_s0  ;;  %v886_v30 = vrot.slane %v883_v54, 7  ;;  %v890_v20 = vadd.f32 %v883_v54, %v4753_v43 }
 0xca4   :  { %929 = vrot.lane.b32.xlu0 %v886_v30, %s4392_s0  ;;  %v889_v31 = vadd.f32 %v886_v30, %v4746_v56  ;;  %v3875_v32 = vmul.f32 -1.442695, %v890_v20  ;;  %v4824_v30 = vrot.slane %v4685_v21, 4 }
 0xca6   :  { %v3874_v33 = vmul.f32 -1.442695, %v889_v31  ;;  %4076 = vpow2.f32 %v3875_v32 }
 0xca8   :  { %4078 = vpow2.f32 %v3874_v33 }
 0xcac   :  { %v4077_v34 = vpop.eup %4076 }
 0xcad   :  { %v898_v58 = vadd.f32 1.0, %v4077_v34 }
 0xcae   :  { %v4079_v35 = vpop.eup %4078 }
 0xcaf   :  { %v897_v27 = vadd.f32 1.0, %v4079_v35  ;;  %4080 = vrcp.f32 %v898_v58  ;;  %v925_v45 = vand.u32 2147483648, %v898_v58  ;;  %vm919_vm11 = vweird.f32 %v898_v58 }
 0xcb0   :  { %v923_v46 = vand.u32 2147483647, %v898_v58 }
 0xcb1   :  { %4082 = vrcp.f32 %v897_v27  ;;  %v910_v49 = vand.u32 2147483648, %v897_v27  ;;  %vm904_vm15 = vweird.f32 %v897_v27  ;;  %v908_v5 = vand.u32 2147483647, %v897_v27 }
 0xcb2   :  { %v926_v52 = vor.u32 1.1754944e-38, %v925_v45  ;;  %vm924_vm3 = vcmp.eq.f32.partialorder %v923_v46, 8.507059e+37  ;;  %v4829_v45 = vrot.slane %v4608_v60, 6 }
 0xcb3   :  { %v911_v57 = vor.u32 1.1754944e-38, %v910_v49  ;;  %vm909_vm2 = vcmp.eq.f32.partialorder %v908_v5, 8.507059e+37 }
 0xcb5   :  { %v4081_v47 = vpop.eup %4080 }
 0xcb6   :  { %v915_v37 = vmul.f32 %v4081_v47, %v898_v58  ;;  %vm920_vm10 = vweird.f32 %v4081_v47 }
 0xcb7   :  { %v4083_v36 = vpop.eup %4082  ;;  %vm921_vm14 = vmor %vm919_vm11, %vm920_vm10 }
 0xcb8   :  { %v900_v38 = vmul.f32 %v4083_v36, %v897_v27  ;;  %v916_v39 = vsub.f32 1.0, %v915_v37  ;;  %vm905_vm13 = vweird.f32 %v4083_v36 }
 0xcb9   :  { %vm906_vm6 = vmor %vm904_vm15, %vm905_vm13 }
 0xcba   :  { %v901_v40 = vsub.f32 1.0, %v900_v38  ;;  %v917_v41 = vmul.f32 %v4081_v47, %v916_v39 }
 0xcbc   :  { %v902_v42 = vmul.f32 %v4083_v36, %v901_v40  ;;  %v918_v44 = vadd.f32 %v4081_v47, %v917_v41 }
 0xcbe   :  { %v903_v48 = vadd.f32 %v4083_v36, %v902_v42  ;;  %v922_v50 = vsel %vm921_vm14, %v4081_v47, %v918_v44 }
 0xcbf   :  { %v927_v55 = vsel %vm924_vm3, %v926_v52, %v922_v50 }
 0xcc0   :  { %v907_v53 = vsel %vm906_vm6, %v4083_v36, %v903_v48  ;;  %v950_v10 = vsub.f32 1.0, %v927_v55  ;;  %v966_v15 = vmul.f32 %v962_v8, %v927_v55 }
 0xcc1   :  { %v912_v61 = vsel %vm909_vm2, %v911_v57, %v907_v53  ;;  %vm1916_vm2 = vcmask 1044480  }
 0xcc2   :  { %v965_v24 = vmul.f32 %v961_v14, %v912_v61 }
 0xd14   :  { %v932_v28 = vpop.permute.xlu1 %931 }
 0xd15   :  { %v936_v59 = vmul.f32 %v932_v28, %v927_v55 }
 0xd16   :  { %v930_v1 = vpop.permute.xlu0 %929 }
 0xd17   :  { %v935_v62 = vmul.f32 %v930_v1, %v912_v61  ;;  %941 = vrot.lane.b32.xlu0 %v936_v59, %s4393_s23 }
 0xd19   :  { %939 = vrot.lane.b32.xlu2 %v935_v62, %s4393_s23 }
 0xd73   :  { %v940_v63 = vpop.permute.xlu2 %939 }
 0xd74   :  { %v945_v2 = vadd.f32 %v940_v63, %v4746_v56  ;;  %v949_v56 = vsub.f32 1.0, %v912_v61 }
 0xd76   :  { %4084 = vtanh.f32 %v945_v2 }
 0xd7c   :  { %v4085_v3 = vpop.eup %4084 }
 0xd7d   :  { %953 = vrot.lane.b32.xlu1 %v4085_v3, %s4395_s26 }
 0xd89   :  { %v942_v7 = vpop.permute.xlu0 %941 }
 0xd8a   :  { %v946_v4 = vadd.f32 %v942_v7, %v4753_v43 }
 0xd8c   :  { %4086 = vtanh.f32 %v946_v4 }
 0xd92   :  { %v4087_v6 = vpop.eup %4086 }
 0xd93   :  { %955 = vrot.lane.b32.xlu2 %v4087_v6, %s4395_s26 }
 0xded   :  { %v956_v11 = vpop.permute.xlu2 %955 }
 0xdee   :  { %v960_v16 = vmul.f32 %v956_v11, %v950_v10 }
 0xdef   :  { %v954_v18 = vpop.permute.xlu1 %953 }
 0xdf0   :  { %v968_v19 = vadd.f32 %v966_v15, %v960_v16  ;;  %v959_v25 = vmul.f32 %v954_v18, %v949_v56 }
 0xdf2   :  { %v972_v51 = vperm.slane %v968_v19, 1  ;;  %v4795_v43 = vadd.f32 %v965_v24, %v959_v25  ;;  %v3881_v40 = vrot.slane %v968_v19, 9 }
 0xdf4   :  { %v4799_v23 = vsel %vm1916_vm2, %v4775_v17, %v972_v51  ;;  %v971_v12 = vperm.slane %v4795_v43, 1  ;;  %v3880_v14 = vrot.slane %v4795_v43, 9 }
 0xdf6   :  { %v4804_v22 = vsel %vm1916_vm2, %v4770_v26, %v971_v12  ;;  %v973_v9 = vsel %vm403_vm8, %v972_v51, %v971_v12  ;;  %v4819_v26 = vld [vmem:[%s5569_s6] ss:$0 sm:$0xff] }
 0xdf7   :  { %974 = vrot.lane.b32.xlu0 %v973_v9, %s4395_s26 }
 0xe69   :  { %v975_v13 = vpop.permute.xlu0 %974 }
 0xe6a   :  { %3877 = vmatmul.msk.f32.vlgmr.msrb.gmra.mxu2 %vm284_vm5, %v975_v13 }
 0xe6b   :  { %3906 = vmatpush.msk.msrb.mxu2 %vm288_vm4, %v4812_v29 }
 0xeed   :  { %v995_v17 = vpop.f32.mrf.mxu2 }
 0xeee   :  { %v996_v54 = vadd.f32 %v4819_v26, %v995_v17 }
 0xef0   :  { %1042 = vrot.lane.b32.xlu1 %v996_v54, %s4392_s0  ;;  %v999_v20 = vrot.slane %v996_v54, 1  ;;  %v1002_v46 = vadd.f32 %v996_v54, %v4829_v45 }
 0xef2   :  { %1044 = vrot.lane.b32.xlu2 %v999_v20, %s4392_s0  ;;  %v1003_v31 = vadd.f32 %v999_v20, %v4824_v30  ;;  %v3878_v48 = vmul.f32 -1.442695, %v1002_v46 }
 0xef4   :  { %v3879_v32 = vmul.f32 -1.442695, %v1003_v31 }
 0xef6   :  { %4088 = vpow2.f32 %v3879_v32 }
 0xefc   :  { %v4089_v33 = vpop.eup %4088 }
 0xefd   :  { %v1011_v34 = vadd.f32 1.0, %v4089_v33 }
 0xeff   :  { %4090 = vrcp.f32 %v1011_v34  ;;  %v1038_v47 = vand.u32 2147483648, %v1011_v34  ;;  %v1036_v37 = vand.u32 2147483647, %v1011_v34  ;;  %vm1032_vm6 = vweird.f32 %v1011_v34 }
 0xf00   :  { %4092 = vpow2.f32 %v3878_v48 }
 0xf01   :  { %v1039_v39 = vor.u32 1.1754944e-38, %v1038_v47  ;;  %vm1037_vm11 = vcmp.eq.f32.partialorder %v1036_v37, 8.507059e+37 }
 0xf05   :  { %v4091_v35 = vpop.eup %4090 }
 0xf06   :  { %v1028_v58 = vmul.f32 %v4091_v35, %v1011_v34  ;;  %vm1033_vm3 = vweird.f32 %v4091_v35  ;;  %v4093_v49 = vpop.eup %4092 }
 0xf07   :  { %vm1034_vm10 = vmor %vm1032_vm6, %vm1033_vm3  ;;  %v1010_v50 = vadd.f32 1.0, %v4093_v49 }
 0xf08   :  { %v1029_v27 = vsub.f32 1.0, %v1028_v58 }
 0xf09   :  { %4094 = vrcp.f32 %v1010_v50  ;;  %v1023_v1 = vand.u32 2147483648, %v1010_v50  ;;  %vm1017_vm14 = vweird.f32 %v1010_v50  ;;  %v1021_v60 = vand.u32 2147483647, %v1010_v50 }
 0xf0a   :  { %v1030_v36 = vmul.f32 %v4091_v35, %v1029_v27 }
 0xf0b   :  { %v1024_v62 = vor.u32 1.1754944e-38, %v1023_v1  ;;  %vm1022_vm3 = vcmp.eq.f32.partialorder %v1021_v60, 8.507059e+37 }
 0xf0c   :  { %v1031_v38 = vadd.f32 %v4091_v35, %v1030_v36 }
 0xf0e   :  { %v1035_v41 = vsel %vm1034_vm10, %v4091_v35, %v1031_v38 }
 0xf0f   :  { %v1040_v42 = vsel %vm1037_vm11, %v1039_v39, %v1035_v41  ;;  %v4095_v5 = vpop.eup %4094 }
 0xf10   :  { %v1081_v44 = vmul.f32 %v3881_v40, %v1040_v42  ;;  %v1013_v28 = vmul.f32 %v4095_v5, %v1010_v50  ;;  %vm1018_vm13 = vweird.f32 %v4095_v5  ;;  %v1063_v19 = vsub.f32 1.0, %v1040_v42 }
 0xf11   :  { %vm1019_vm15 = vmor %vm1017_vm14, %vm1018_vm13 }
 0xf12   :  { %v1014_v55 = vsub.f32 1.0, %v1013_v28 }
 0xf14   :  { %v1015_v57 = vmul.f32 %v4095_v5, %v1014_v55 }
 0xf16   :  { %v1016_v59 = vadd.f32 %v4095_v5, %v1015_v57 }
 0xf18   :  { %v1020_v61 = vsel %vm1019_vm15, %v4095_v5, %v1016_v59 }
 0xf19   :  { %v1025_v2 = vsel %vm1022_vm3, %v1024_v62, %v1020_v61 }
 0xf1a   :  { %v1062_v15 = vsub.f32 1.0, %v1025_v2  ;;  %v1080_v56 = vmul.f32 %v3880_v14, %v1025_v2 }
 0xf4c   :  { %v1045_v52 = vpop.permute.xlu2 %1044 }
 0xf4d   :  { %v1049_v53 = vmul.f32 %v1045_v52, %v1040_v42 }
 0xf4f   :  { %1054 = vrot.lane.b32.xlu1 %v1049_v53, %s4393_s23 }
 0xf62   :  { %v1043_v63 = vpop.permute.xlu1 %1042 }
 0xf63   :  { %v1048_v3 = vmul.f32 %v1043_v63, %v1025_v2 }
 0xf65   :  { %1052 = vrot.lane.b32.xlu0 %v1048_v3, %s4393_s23 }
 0xfc1   :  { %v1055_v7 = vpop.permute.xlu1 %1054 }
 0xfc2   :  { %v1059_v4 = vadd.f32 %v1055_v7, %v4824_v30 }
 0xfc4   :  { %4096 = vtanh.f32 %v1059_v4 }
 0xfca   :  { %v4097_v6 = vpop.eup %4096 }
 0xfcb   :  { %1068 = vrot.lane.b32.xlu0 %v4097_v6, %s4395_s26 }
 0xfd7   :  { %v1053_v8 = vpop.permute.xlu0 %1052 }
 0xfd8   :  { %v1058_v10 = vadd.f32 %v1053_v8, %v4829_v45 }
 0xfda   :  { %4098 = vtanh.f32 %v1058_v10 }
 0xfe0   :  { %v4099_v11 = vpop.eup %4098 }
 0xfe1   :  { %1066 = vrot.lane.b32.xlu2 %v4099_v11, %s4395_s26 }
0x103b   :  { %v1067_v16 = vpop.permute.xlu2 %1066 }
0x103c   :  { %v1072_v18 = vmul.f32 %v1067_v16, %v1062_v15 }
0x103d   :  { %v1069_v24 = vpop.permute.xlu0 %1068 }
0x103e   :  { %v1082_v25 = vadd.f32 %v1080_v56, %v1072_v18  ;;  %v1073_v51 = vmul.f32 %v1069_v24, %v1063_v19 }
0x1040   :  { %v1086_v12 = vperm.slane %v1082_v25, 0  ;;  %v4839_v9 = vadd.f32 %v1081_v44, %v1073_v51  ;;  %v1189_v40 = vrot.slane %v1082_v25, 7 }
0x1042   :  { %v4843_v13 = vsel %vm87_vm1, %v4804_v22, %v1086_v12  ;;  %v1087_v17 = vperm.slane %v4839_v9, 0  ;;  %v1190_v14 = vrot.slane %v4839_v9, 7 }
0x1044   :  { %v4848_v43 = vsel %vm87_vm1, %v4799_v23, %v1087_v17  ;;  %v1088_v54 = vsel %vm403_vm8, %v1087_v17, %v1086_v12 }
0x1045   :  { %1089 = vrot.lane.b32.xlu1 %v1088_v54, %s4395_s26 }
0x10b7   :  { %v1090_v20 = vpop.permute.xlu1 %1089 }
0x10b8   :  { %3883 = vmatmul.msk.f32.vlgmr.msrb.gmra.mxu3 %vm284_vm5, %v1090_v20 }
0x10b9   :  { %3912 = vmatpush.msk.msrb.mxu3 %vm288_vm4, %v4812_v29 }
0x113b   :  { %v1110_v31 = vpop.f32.mrf.mxu3 }
0x113c   :  { %v1111_v22 = vadd.f32 %v4819_v26, %v1110_v31 }
0x113e   :  { %1159 = vrot.lane.b32.xlu0 %v1111_v22, %s4392_s0  ;;  %v1114_v32 = vrot.slane %v1111_v22, 7  ;;  %v1118_v46 = vadd.f32 %v1111_v22, %v4824_v30 }
0x1140   :  { %1157 = vrot.lane.b32.xlu2 %v1114_v32, %s4392_s0  ;;  %v1117_v23 = vadd.f32 %v1114_v32, %v4829_v45  ;;  %v3885_v48 = vmul.f32 -1.442695, %v1118_v46 }
0x1142   :  { %v3884_v33 = vmul.f32 -1.442695, %v1117_v23 }
0x1144   :  { %4100 = vpow2.f32 %v3884_v33 }
0x114a   :  { %v4101_v34 = vpop.eup %4100 }
0x114b   :  { %v1125_v35 = vadd.f32 1.0, %v4101_v34  ;;  %v4882_v34 = vpop.f32.mrf.mxu1 }
0x114d   :  { %4102 = vrcp.f32 %v1125_v35  ;;  %v1138_v36 = vand.u32 2147483648, %v1125_v35  ;;  %v1136_v37 = vand.u32 2147483647, %v1125_v35  ;;  %vm1132_vm6 = vweird.f32 %v1125_v35 }
0x114e   :  { %4104 = vpow2.f32 %v3885_v48 }
0x114f   :  { %v1139_v39 = vor.u32 1.1754944e-38, %v1138_v36  ;;  %vm1137_vm11 = vcmp.eq.f32.partialorder %v1136_v37, 8.507059e+37  ;;  %v4889_v36 = vrot.slane %v4685_v21, 6 }
0x1153   :  { %v4103_v58 = vpop.eup %4102 }
0x1154   :  { %v1128_v27 = vmul.f32 %v4103_v58, %v1125_v35  ;;  %vm1133_vm1 = vweird.f32 %v4103_v58  ;;  %v4105_v49 = vpop.eup %4104 }
0x1155   :  { %vm1134_vm10 = vmor %vm1132_vm6, %vm1133_vm1  ;;  %v1126_v50 = vadd.f32 1.0, %v4105_v49  ;;  %vm5594_vm1 = vcmask 1046528  }
0x1156   :  { %v1129_v47 = vsub.f32 1.0, %v1128_v27  ;;  %vm5595_vm6 = vmmov %vm5594_vm1 }
0x1157   :  { %4106 = vrcp.f32 %v1126_v50  ;;  %v1153_v1 = vand.u32 2147483648, %v1126_v50  ;;  %vm1147_vm14 = vweird.f32 %v1126_v50  ;;  %v1151_v60 = vand.u32 2147483647, %v1126_v50 }
0x1158   :  { %v1130_v29 = vmul.f32 %v4103_v58, %v1129_v47 }
0x1159   :  { %v1154_v62 = vor.u32 1.1754944e-38, %v1153_v1  ;;  %vm1152_vm3 = vcmp.eq.f32.partialorder %v1151_v60, 8.507059e+37 }
0x115a   :  { %v1131_v38 = vadd.f32 %v4103_v58, %v1130_v29 }
0x115c   :  { %v1135_v41 = vsel %vm1134_vm10, %v4103_v58, %v1131_v38 }
0x115d   :  { %v1140_v42 = vsel %vm1137_vm11, %v1139_v39, %v1135_v41  ;;  %v4107_v5 = vpop.eup %4106 }
0x115e   :  { %v1193_v44 = vmul.f32 %v1189_v40, %v1140_v42  ;;  %v1143_v28 = vmul.f32 %v4107_v5, %v1126_v50  ;;  %vm1148_vm13 = vweird.f32 %v4107_v5  ;;  %v1177_v19 = vsub.f32 1.0, %v1140_v42 }
0x115f   :  { %vm1149_vm15 = vmor %vm1147_vm14, %vm1148_vm13 }
0x1160   :  { %v1144_v55 = vsub.f32 1.0, %v1143_v28 }
0x1162   :  { %v1145_v57 = vmul.f32 %v4107_v5, %v1144_v55 }
0x1164   :  { %v1146_v59 = vadd.f32 %v4107_v5, %v1145_v57 }
0x1166   :  { %v1150_v61 = vsel %vm1149_vm15, %v4107_v5, %v1146_v59 }
0x1167   :  { %v1155_v2 = vsel %vm1152_vm3, %v1154_v62, %v1150_v61 }
0x1168   :  { %v1178_v15 = vsub.f32 1.0, %v1155_v2  ;;  %v1194_v56 = vmul.f32 %v1190_v14, %v1155_v2 }
0x119a   :  { %v1158_v52 = vpop.permute.xlu2 %1157 }
0x119b   :  { %v1163_v53 = vmul.f32 %v1158_v52, %v1140_v42 }
0x119d   :  { %1167 = vrot.lane.b32.xlu1 %v1163_v53, %s4393_s23 }
0x11b0   :  { %v1160_v63 = vpop.permute.xlu0 %1159 }
0x11b1   :  { %v1164_v3 = vmul.f32 %v1160_v63, %v1155_v2 }
0x11b3   :  { %1169 = vrot.lane.b32.xlu2 %v1164_v3, %s4393_s23 }
0x120d   :  { %v1170_v7 = vpop.permute.xlu2 %1169 }
0x120e   :  { %v1174_v4 = vadd.f32 %v1170_v7, %v4824_v30 }
0x120f   :  { %v1168_v6 = vpop.permute.xlu1 %1167 }
0x1210   :  { %4108 = vtanh.f32 %v1174_v4  ;;  %v1173_v8 = vadd.f32 %v1168_v6, %v4829_v45 }
0x1212   :  { %4110 = vtanh.f32 %v1173_v8 }
0x1216   :  { %v4109_v10 = vpop.eup %4108 }
0x1217   :  { %1183 = vrot.lane.b32.xlu1 %v4109_v10, %s4395_s26 }
0x1218   :  { %v4111_v11 = vpop.eup %4110 }
0x1219   :  { %1181 = vrot.lane.b32.xlu0 %v4111_v11, %s4395_s26 }
0x1289   :  { %v1184_v16 = vpop.permute.xlu1 %1183 }
0x128a   :  { %v1188_v18 = vmul.f32 %v1184_v16, %v1178_v15 }
0x128b   :  { %v1182_v24 = vpop.permute.xlu0 %1181 }
0x128c   :  { %v4867_v30 = vadd.f32 %v1194_v56, %v1188_v18  ;;  %v1187_v25 = vmul.f32 %v1182_v24, %v1177_v19 }
0x128e   :  { %v1200_v45 = vperm.slane %v4867_v30, 1  ;;  %v4870_v51 = vadd.f32 %v1193_v44, %v1187_v25  ;;  %v3891_v25 = vrot.slane %v4867_v30, 9 }
0x1290   :  { %v1922_v12 = vsel %vm5594_vm1, %v4848_v43, %v1200_v45  ;;  %v1199_v17 = vperm.slane %v4870_v51, 1  ;;  %v3890_v18 = vrot.slane %v4870_v51, 9 }
0x1291   :  { %1968 = vst [vmem:[#allocation1 + $0x23] ss:$4 sm:$0xff] %v1922_v12  ;;  %v1946_v32 = vrot.slane %v1922_v12, 2  ;;  %v1947_v23 = vrot.slane %v1922_v12, 4  ;;  %v1948_v33 = vrot.slane %v1922_v12, 6 }
0x1292   :  { %v1921_v9 = vsel %vm5595_vm6, %v4843_v13, %v1199_v17  ;;  %v1201_v54 = vsel %vm403_vm8, %v1200_v45, %v1199_v17 }
0x1293   :  { %v1941_v20 = vrot.slane %v1921_v9, 2  ;;  %v1942_v31 = vrot.slane %v1921_v9, 4  ;;  %v1943_v22 = vrot.slane %v1921_v9, 6  ;;  %1954 = vst [vmem:[#allocation1] ss:$4 sm:$0xff] %v1921_v9  ;;  %1202 = vrot.lane.b32.xlu2 %v1201_v54, %s4395_s26 }
0x1295   :  { %1960 = vst [vmem:[#allocation1 + $0x3] ss:$4 sm:$0xff] %v1943_v22 }
0x1296   :  { %1956 = vst [vmem:[#allocation1 + $0x1] ss:$4 sm:$0xff] %v1941_v20 }
0x1297   :  { %1958 = vst [vmem:[#allocation1 + $0x2] ss:$4 sm:$0xff] %v1942_v31 }
0x129e   :  { %v4879_v43 = vld.sshfl [vmem:[#allocation1] sm:$0xff pattern:$0x73625140] }
0x129f   :  { %1971 = vst [vmem:[#allocation1] ss:$4 sm:$0xff] %v1946_v32 }
0x12a0   :  { %1972 = vst [vmem:[#allocation1 + $0x1] ss:$4 sm:$0xff] %v1947_v23 }
0x12a1   :  { %1973 = vst [vmem:[#allocation1 + $0x2] ss:$4 sm:$0xff] %v1948_v33 }
0x12ed   :  { %v1203_v13 = vpop.permute.xlu2 %1202 }
0x12ee   :  { %3887 = vmatmul.msk.f32.vlgmr.msrb.gmra.mxu1 %vm284_vm5, %v1203_v13 }
0x136b   :  { %v1223_v35 = vpop.f32.mrf.mxu1 }
0x136c   :  { %v1224_v58 = vadd.f32 %v4819_v26, %v1223_v35 }
0x136e   :  { %1270 = vrot.lane.b32.xlu0 %v1224_v58, %s4392_s0  ;;  %v1227_v27 = vrot.slane %v1224_v58, 1  ;;  %v1230_v47 = vadd.f32 %v1224_v58, %v4612_v0 }
0x1370   :  { %1272 = vrot.lane.b32.xlu1 %v1227_v27, %s4392_s0  ;;  %v1231_v29 = vadd.f32 %v1227_v27, %v4889_v36  ;;  %v3888_v37 = vmul.f32 -1.442695, %v1230_v47 }
0x1372   :  { %v3889_v38 = vmul.f32 -1.442695, %v1231_v29  ;;  %4112 = vpow2.f32 %v3888_v37 }
0x1374   :  { %4114 = vpow2.f32 %v3889_v38 }
0x1378   :  { %v4113_v39 = vpop.eup %4112 }
0x1379   :  { %v1238_v41 = vadd.f32 1.0, %v4113_v39 }
0x137a   :  { %v4115_v40 = vpop.eup %4114 }
0x137b   :  { %v1239_v42 = vadd.f32 1.0, %v4115_v40  ;;  %4116 = vrcp.f32 %v1238_v41  ;;  %v1251_v28 = vand.u32 2147483648, %v1238_v41  ;;  %vm1245_vm11 = vweird.f32 %v1238_v41 }
0x137c   :  { %v1249_v55 = vand.u32 2147483647, %v1238_v41 }
0x137d   :  { %4118 = vrcp.f32 %v1239_v42  ;;  %v1266_v59 = vand.u32 2147483648, %v1239_v42  ;;  %vm1260_vm15 = vweird.f32 %v1239_v42  ;;  %v1264_v60 = vand.u32 2147483647, %v1239_v42 }
0x137e   :  { %v1252_v61 = vor.u32 1.1754944e-38, %v1251_v28  ;;  %vm1250_vm1 = vcmp.eq.f32.partialorder %v1249_v55, 8.507059e+37 }
0x137f   :  { %v1267_v3 = vor.u32 1.1754944e-38, %v1266_v59  ;;  %vm1265_vm6 = vcmp.eq.f32.partialorder %v1264_v60, 8.507059e+37 }
0x1381   :  { %v4117_v44 = vpop.eup %4116 }
0x1382   :  { %v1241_v48 = vmul.f32 %v4117_v44, %v1238_v41  ;;  %vm1246_vm10 = vweird.f32 %v4117_v44 }
0x1383   :  { %v4119_v46 = vpop.eup %4118  ;;  %vm1247_vm14 = vmor %vm1245_vm11, %vm1246_vm10 }
0x1384   :  { %v1256_v49 = vmul.f32 %v4119_v46, %v1239_v42  ;;  %v1242_v50 = vsub.f32 1.0, %v1241_v48  ;;  %vm1261_vm13 = vweird.f32 %v4119_v46 }
0x1385   :  { %vm1262_vm3 = vmor %vm1260_vm15, %vm1261_vm13 }
0x1386   :  { %v1257_v5 = vsub.f32 1.0, %v1256_v49  ;;  %v1243_v21 = vmul.f32 %v4117_v44, %v1242_v50 }
0x1388   :  { %v1258_v52 = vmul.f32 %v4119_v46, %v1257_v5  ;;  %v1244_v53 = vadd.f32 %v4117_v44, %v1243_v21 }
0x138a   :  { %v1259_v57 = vadd.f32 %v4119_v46, %v1258_v52  ;;  %v1248_v1 = vsel %vm1247_vm14, %v4117_v44, %v1244_v53 }
0x138b   :  { %v1253_v2 = vsel %vm1250_vm1, %v1252_v61, %v1248_v1 }
0x138c   :  { %v1263_v62 = vsel %vm1262_vm3, %v4119_v46, %v1259_v57  ;;  %v1290_v19 = vsub.f32 1.0, %v1253_v2  ;;  %v1308_v45 = vmul.f32 %v3890_v18, %v1253_v2 }
0x138d   :  { %v1268_v6 = vsel %vm1265_vm6, %v1267_v3, %v1263_v62 }
0x138e   :  { %v1291_v17 = vsub.f32 1.0, %v1268_v6  ;;  %v1309_v20 = vmul.f32 %v3891_v25, %v1268_v6 }
0x13e0   :  { %v1271_v63 = vpop.permute.xlu0 %1270 }
0x13e1   :  { %v1276_v7 = vmul.f32 %v1271_v63, %v1253_v2 }
0x13e2   :  { %v1273_v4 = vpop.permute.xlu1 %1272 }
0x13e3   :  { %v1277_v8 = vmul.f32 %v1273_v4, %v1268_v6  ;;  %1280 = vrot.lane.b32.xlu2 %v1276_v7, %s4393_s23 }
0x13e5   :  { %1282 = vrot.lane.b32.xlu0 %v1277_v8, %s4393_s23 }
0x143d   :  { %v1281_v10 = vpop.permute.xlu2 %1280 }
0x143e   :  { %v1286_v11 = vadd.f32 %v1281_v10, %v4612_v0 }
0x1440   :  { %4120 = vtanh.f32 %v1286_v11 }
0x1446   :  { %v4121_v14 = vpop.eup %4120 }
0x1447   :  { %1294 = vrot.lane.b32.xlu1 %v4121_v14, %s4395_s26 }
0x1457   :  { %v1283_v15 = vpop.permute.xlu0 %1282 }
0x1458   :  { %v1287_v16 = vadd.f32 %v1283_v15, %v4889_v36 }
0x145a   :  { %4122 = vtanh.f32 %v1287_v16 }
0x1460   :  { %v4123_v56 = vpop.eup %4122 }
0x1461   :  { %1296 = vrot.lane.b32.xlu2 %v4123_v56, %s4395_s26 }
0x14b9   :  { %v1295_v24 = vpop.permute.xlu1 %1294 }
0x14ba   :  { %v1300_v12 = vmul.f32 %v1295_v24, %v1290_v19 }
0x14bb   :  { %v1297_v9 = vpop.permute.xlu2 %1296 }
0x14bc   :  { %v4900_v54 = vadd.f32 %v1308_v45, %v1300_v12  ;;  %v1301_v31 = vmul.f32 %v1297_v9, %v1291_v17 }
0x14be   :  { %v4902_v22 = vadd.f32 %v1309_v20, %v1301_v31  ;;  %v1314_v32 = vperm.slane %v4900_v54, 0 }
0x14c0   :  { %v1315_v23 = vperm.slane %v4902_v22, 0  ;;  %v1418_v56 = vrot.slane %v4902_v22, 7 }
0x14c2   :  { %v1316_v51 = vsel %vm403_vm8, %v1315_v23, %v1314_v32 }
0x14c3   :  { %1317 = vrot.lane.b32.xlu0 %v1316_v51, %s4395_s26 }
0x1535   :  { %v1318_v33 = vpop.permute.xlu0 %1317 }
0x1536   :  { %3893 = vmatmul.msk.f32.vlgmr.msra.gmra.mxu2 %vm284_vm5, %v1318_v33 }
0x15b9   :  { %v1338_v30 = vpop.f32.mrf.mxu2 }
0x15ba   :  { %v1339_v13 = vadd.f32 %v4819_v26, %v1338_v30  ;;  %v4932_v30 = vrot.slane %v4612_v0, 2 }
0x15bc   :  { %1387 = vrot.lane.b32.xlu2 %v1339_v13, %s4392_s0  ;;  %v1342_v35 = vrot.slane %v1339_v13, 7  ;;  %v1346_v58 = vadd.f32 %v1339_v13, %v4889_v36 }
0x15be   :  { %1385 = vrot.lane.b32.xlu1 %v1342_v35, %s4392_s0  ;;  %v3895_v27 = vmul.f32 -1.442695, %v1346_v58  ;;  %v1345_v37 = vadd.f32 %v1342_v35, %v4612_v0 }
0x15c0   :  { %4124 = vpow2.f32 %v3895_v27  ;;  %v3894_v39 = vmul.f32 -1.442695, %v1345_v37 }
0x15c6   :  { %v4125_v47 = vpop.eup %4124 }
0x15c7   :  { %v1354_v29 = vadd.f32 1.0, %v4125_v47 }
0x15c9   :  { %4126 = vrcp.f32 %v1354_v29  ;;  %v1381_v49 = vand.u32 2147483648, %v1354_v29  ;;  %vm1375_vm11 = vweird.f32 %v1354_v29  ;;  %v1379_v50 = vand.u32 2147483647, %v1354_v29 }
0x15ca   :  { %4128 = vpow2.f32 %v3894_v39 }
0x15cb   :  { %v1382_v21 = vor.u32 1.1754944e-38, %v1381_v49  ;;  %vm1380_vm14 = vcmp.eq.f32.partialorder %v1379_v50, 8.507059e+37 }
0x15cf   :  { %v4127_v38 = vpop.eup %4126 }
0x15d0   :  { %v1371_v40 = vmul.f32 %v4127_v38, %v1354_v29  ;;  %v4129_v44 = vpop.eup %4128  ;;  %vm1376_vm10 = vweird.f32 %v4127_v38 }
0x15d1   :  { %v1353_v48 = vadd.f32 1.0, %v4129_v44  ;;  %vm1377_vm13 = vmor %vm1375_vm11, %vm1376_vm10 }
0x15d2   :  { %v1372_v41 = vsub.f32 1.0, %v1371_v40 }
0x15d3   :  { %4130 = vrcp.f32 %v1353_v48  ;;  %v1366_v61 = vand.u32 2147483648, %v1353_v48  ;;  %vm1360_vm3 = vweird.f32 %v1353_v48  ;;  %v1364_v62 = vand.u32 2147483647, %v1353_v48 }
0x15d4   :  { %v1373_v42 = vmul.f32 %v4127_v38, %v1372_v41 }
0x15d5   :  { %v1367_v2 = vor.u32 1.1754944e-38, %v1366_v61  ;;  %vm1365_vm6 = vcmp.eq.f32.partialorder %v1364_v62, 8.507059e+37 }
0x15d6   :  { %v1374_v46 = vadd.f32 %v4127_v38, %v1373_v42 }
0x15d8   :  { %v1378_v5 = vsel %vm1377_vm13, %v4127_v38, %v1374_v46 }
0x15d9   :  { %v1383_v53 = vsel %vm1380_vm14, %v1382_v21, %v1378_v5  ;;  %v4131_v55 = vpop.eup %4130  ;;  %v4358_v21 = vld [vmem:[%s5568_s5] ss:$0 sm:$0xff] }
0x15da   :  { %v1356_v57 = vmul.f32 %v4131_v55, %v1353_v48  ;;  %vm1361_vm15 = vweird.f32 %v4131_v55  ;;  %v1406_v16 = vsub.f32 1.0, %v1383_v53  ;;  %v1422_v19 = vmul.f32 %v1418_v56, %v1383_v53 }
0x15db   :  { %vm1362_vm1 = vmor %vm1360_vm3, %vm1361_vm15 }
0x15dc   :  { %v1357_v59 = vsub.f32 1.0, %v1356_v57 }
0x15de   :  { %v1358_v1 = vmul.f32 %v4131_v55, %v1357_v59 }
0x15e0   :  { %v1359_v60 = vadd.f32 %v4131_v55, %v1358_v1 }
0x15e2   :  { %v1363_v63 = vsel %vm1362_vm1, %v4131_v55, %v1359_v60 }
0x15e3   :  { %v1368_v7 = vsel %vm1365_vm6, %v1367_v2, %v1363_v63 }
0x15e4   :  { %v1405_v25 = vsub.f32 1.0, %v1368_v7 }
0x1616   :  { %v1388_v52 = vpop.permute.xlu2 %1387 }
0x1617   :  { %v1392_v28 = vmul.f32 %v1388_v52, %v1383_v53  ;;  %v4943_v52 = vadd.f32 %v4358_v21, %v4882_v34 }
0x1619   :  { %1397 = vrot.lane.b32.xlu1 %v1392_v28, %s4393_s23 }
0x1630   :  { %v1386_v3 = vpop.permute.xlu1 %1385 }
0x1631   :  { %v1391_v4 = vmul.f32 %v1386_v3, %v1368_v7 }
0x1633   :  { %1395 = vrot.lane.b32.xlu0 %v1391_v4, %s4393_s23 }
0x168b   :  { %v1398_v6 = vpop.permute.xlu1 %1397 }
0x168c   :  { %v1402_v8 = vadd.f32 %v1398_v6, %v4889_v36  ;;  %v1417_v36 = vrot.slane %v4900_v54, 7 }
0x168e   :  { %4132 = vtanh.f32 %v1402_v8  ;;  %v1421_v17 = vmul.f32 %v1417_v36, %v1368_v7 }
0x1694   :  { %v4133_v10 = vpop.eup %4132 }
0x1695   :  { %1411 = vrot.lane.b32.xlu0 %v4133_v10, %s4395_s26 }
0x16a5   :  { %v1396_v11 = vpop.permute.xlu0 %1395 }
0x16a6   :  { %v1401_v14 = vadd.f32 %v1396_v11, %v4612_v0 }
0x16a8   :  { %4134 = vtanh.f32 %v1401_v14 }
0x16ae   :  { %v4135_v15 = vpop.eup %4134 }
0x16af   :  { %1409 = vrot.lane.b32.xlu2 %v4135_v15, %s4395_s26 }
0x1707   :  { %v1412_v18 = vpop.permute.xlu0 %1411 }
0x1708   :  { %v1416_v24 = vmul.f32 %v1412_v18, %v1406_v16 }
0x1709   :  { %v1410_v45 = vpop.permute.xlu2 %1409 }
0x170a   :  { %v4922_v12 = vadd.f32 %v1422_v19, %v1416_v24  ;;  %v1415_v9 = vmul.f32 %v1410_v45, %v1405_v25 }
0x170c   :  { %v4924_v20 = vadd.f32 %v1421_v17, %v1415_v9  ;;  %v1428_v32 = vperm.slane %v4922_v12, 1  ;;  %v3901_v45 = vrot.slane %v4922_v12, 9 }
0x170e   :  { %v1427_v31 = vperm.slane %v4924_v20, 1  ;;  %v3900_v49 = vrot.slane %v4924_v20, 9 }
0x1710   :  { %v1429_v23 = vsel %vm403_vm8, %v1428_v32, %v1427_v31 }
0x1711   :  { %1430 = vrot.lane.b32.xlu1 %v1429_v23, %s4395_s26 }
0x1783   :  { %v1431_v51 = vpop.permute.xlu1 %1430 }
0x1784   :  { %3897 = vmatmul.msk.f32.vlgmr.msra.gmra.mxu3 %vm284_vm5, %v1431_v51 }
0x1807   :  { %v1451_v33 = vpop.f32.mrf.mxu3 }
0x1808   :  { %v1452_v13 = vadd.f32 %v4819_v26, %v1451_v33  ;;  %v1923_v33 = vsel %vm1905_vm9, %v4900_v54, %v4924_v20 }
0x180a   :  { %v1458_v35 = vadd.f32 %v1452_v13, %v4932_v30  ;;  %1498 = vrot.lane.b32.xlu2 %v1452_v13, %s4392_s0  ;;  %v1455_v58 = vrot.slane %v1452_v13, 1 }
0x180c   :  { %v3898_v27 = vmul.f32 -1.442695, %v1458_v35  ;;  %1500 = vrot.lane.b32.xlu0 %v1455_v58, %s4392_s0  ;;  %v1459_v53 = vadd.f32 %v1455_v58, %v4943_v52  ;;  %v1924_v58 = vsel %vm1905_vm9, %v4902_v22, %v4922_v12 }
0x180e   :  { %4136 = vpow2.f32 %v3898_v27  ;;  %v3899_v28 = vmul.f32 -1.442695, %v1459_v53 }
0x1814   :  { %v4137_v47 = vpop.eup %4136 }
0x1815   :  { %v1466_v29 = vadd.f32 1.0, %v4137_v47 }
0x1817   :  { %4138 = vrcp.f32 %v1466_v29  ;;  %v1479_v40 = vand.u32 2147483648, %v1466_v29  ;;  %v1477_v42 = vand.u32 2147483647, %v1466_v29  ;;  %vm1473_vm11 = vweird.f32 %v1466_v29 }
0x1818   :  { %4140 = vpow2.f32 %v3899_v28 }
0x1819   :  { %v1480_v46 = vor.u32 1.1754944e-38, %v1479_v40  ;;  %vm1478_vm14 = vcmp.eq.f32.partialorder %v1477_v42, 8.507059e+37 }
0x181d   :  { %v4139_v37 = vpop.eup %4138 }
0x181e   :  { %v1469_v38 = vmul.f32 %v4139_v37, %v1466_v29  ;;  %vm1474_vm10 = vweird.f32 %v4139_v37  ;;  %v4141_v55 = vpop.eup %4140 }
0x181f   :  { %vm1475_vm13 = vmor %vm1473_vm11, %vm1474_vm10  ;;  %v1467_v57 = vadd.f32 1.0, %v4141_v55 }
0x1820   :  { %v1470_v39 = vsub.f32 1.0, %v1469_v38 }
0x1821   :  { %4142 = vrcp.f32 %v1467_v57  ;;  %v1494_v3 = vand.u32 2147483648, %v1467_v57  ;;  %vm1488_vm3 = vweird.f32 %v1467_v57  ;;  %v1492_v34 = vand.u32 2147483647, %v1467_v57 }
0x1822   :  { %v1471_v41 = vmul.f32 %v4139_v37, %v1470_v39 }
0x1823   :  { %v1495_v4 = vor.u32 1.1754944e-38, %v1494_v3  ;;  %vm1493_vm6 = vcmp.eq.f32.partialorder %v1492_v34, 8.507059e+37 }
0x1824   :  { %v1472_v44 = vadd.f32 %v4139_v37, %v1471_v41 }
0x1826   :  { %v1476_v48 = vsel %vm1475_vm13, %v4139_v37, %v1472_v44 }
0x1827   :  { %v1481_v50 = vsel %vm1478_vm14, %v1480_v46, %v1476_v48  ;;  %v4143_v60 = vpop.eup %4142 }
0x1828   :  { %v1536_v5 = vmul.f32 %v3900_v49, %v1481_v50  ;;  %v1484_v61 = vmul.f32 %v4143_v60, %v1467_v57  ;;  %vm1489_vm15 = vweird.f32 %v4143_v60  ;;  %v1518_v19 = vsub.f32 1.0, %v1481_v50 }
0x1829   :  { %vm1490_vm1 = vmor %vm1488_vm3, %vm1489_vm15 }
0x182a   :  { %v1485_v62 = vsub.f32 1.0, %v1484_v61 }
0x182c   :  { %v1486_v63 = vmul.f32 %v4143_v60, %v1485_v62 }
0x182e   :  { %v1487_v2 = vadd.f32 %v4143_v60, %v1486_v63 }
0x1830   :  { %v1491_v7 = vsel %vm1490_vm1, %v4143_v60, %v1487_v2 }
0x1831   :  { %v1496_v8 = vsel %vm1493_vm6, %v1495_v4, %v1491_v7 }
0x1832   :  { %v1519_v36 = vsub.f32 1.0, %v1496_v8  ;;  %v1537_v31 = vmul.f32 %v3901_v45, %v1496_v8 }
0x1864   :  { %v1499_v59 = vpop.permute.xlu2 %1498 }
0x1865   :  { %v1504_v1 = vmul.f32 %v1499_v59, %v1481_v50 }
0x1867   :  { %1508 = vrot.lane.b32.xlu1 %v1504_v1, %s4393_s23 }
0x187e   :  { %v1501_v6 = vpop.permute.xlu0 %1500 }
0x187f   :  { %v1505_v10 = vmul.f32 %v1501_v6, %v1496_v8 }
0x1881   :  { %1510 = vrot.lane.b32.xlu2 %v1505_v10, %s4393_s23 }
0x18d9   :  { %v1509_v11 = vpop.permute.xlu1 %1508 }
0x18da   :  { %v1514_v14 = vadd.f32 %v1509_v11, %v4932_v30 }
0x18db   :  { %v1511_v15 = vpop.permute.xlu2 %1510 }
0x18dc   :  { %4144 = vtanh.f32 %v1514_v14  ;;  %v1515_v16 = vadd.f32 %v1511_v15, %v4943_v52 }
0x18de   :  { %4146 = vtanh.f32 %v1515_v16 }
0x18e2   :  { %v4145_v56 = vpop.eup %4144 }
0x18e3   :  { %1522 = vrot.lane.b32.xlu0 %v4145_v56, %s4395_s26 }
0x18e4   :  { %v4147_v18 = vpop.eup %4146 }
0x18e5   :  { %1524 = vrot.lane.b32.xlu1 %v4147_v18, %s4395_s26 }
0x1955   :  { %v1523_v24 = vpop.permute.xlu0 %1522 }
0x1956   :  { %v1528_v25 = vmul.f32 %v1523_v24, %v1518_v19 }
0x1957   :  { %v1525_v17 = vpop.permute.xlu1 %1524 }
0x1958   :  { %v4953_v9 = vadd.f32 %v1536_v5, %v1528_v25  ;;  %v1529_v32 = vmul.f32 %v1525_v17, %v1519_v36 }
0x195a   :  { %v1542_v23 = vperm.slane %v4953_v9, 0  ;;  %v4956_v51 = vadd.f32 %v1537_v31, %v1529_v32  ;;  %v1645_v36 = vrot.slane %v4953_v9, 7 }
0x195c   :  { %v4962_v13 = vsel %vm1908_vm0, %v1923_v33, %v1542_v23  ;;  %v1543_v35 = vperm.slane %v4956_v51, 0  ;;  %v1646_v19 = vrot.slane %v4956_v51, 7 }
0x195e   :  { %v4969_v27 = vsel %vm1908_vm0, %v1924_v58, %v1543_v35  ;;  %v1544_v47 = vsel %vm403_vm8, %v1543_v35, %v1542_v23 }
0x195f   :  { %1545 = vrot.lane.b32.xlu2 %v1544_v47, %s4395_s26 }
0x19b9   :  { %v1546_v29 = vpop.permute.xlu2 %1545 }
0x19ba   :  { %3903 = vmatmul.msk.f32.vlgmr.msra.gmra.mxu1 %vm284_vm5, %v1546_v29 }
0x1a37   :  { %v1566_v54 = vpop.f32.mrf.mxu1 }
0x1a38   :  { %v1567_v20 = vadd.f32 %v4819_v26, %v1566_v54 }
0x1a3a   :  { %1615 = vrot.lane.b32.xlu1 %v1567_v20, %s4392_s0  ;;  %v1570_v37 = vrot.slane %v1567_v20, 7  ;;  %v1574_v22 = vadd.f32 %v1567_v20, %v4943_v52 }
0x1a3c   :  { %1613 = vrot.lane.b32.xlu0 %v1570_v37, %s4392_s0  ;;  %v1573_v12 = vadd.f32 %v1570_v37, %v4932_v30  ;;  %v3905_v38 = vmul.f32 -1.442695, %v1574_v22  ;;  %v5003_v22 = vrot.slane %v4943_v52, 2 }
0x1a3e   :  { %v3904_v39 = vmul.f32 -1.442695, %v1573_v12  ;;  %4148 = vpow2.f32 %v3905_v38 }
0x1a40   :  { %4150 = vpow2.f32 %v3904_v39 }
0x1a44   :  { %v4149_v40 = vpop.eup %4148 }
0x1a45   :  { %v1582_v42 = vadd.f32 1.0, %v4149_v40 }
0x1a46   :  { %v4151_v41 = vpop.eup %4150 }
0x1a47   :  { %v1581_v44 = vadd.f32 1.0, %v4151_v41  ;;  %4152 = vrcp.f32 %v1582_v42  ;;  %v1609_v57 = vand.u32 2147483648, %v1582_v42  ;;  %vm1603_vm10 = vweird.f32 %v1582_v42 }
0x1a48   :  { %v1607_v59 = vand.u32 2147483647, %v1582_v42 }
0x1a49   :  { %4154 = vrcp.f32 %v1581_v44  ;;  %v1594_v60 = vand.u32 2147483648, %v1581_v44  ;;  %vm1588_vm14 = vweird.f32 %v1581_v44  ;;  %v1592_v62 = vand.u32 2147483647, %v1581_v44 }
0x1a4a   :  { %v1610_v63 = vor.u32 1.1754944e-38, %v1609_v57  ;;  %vm1608_vm3 = vcmp.eq.f32.partialorder %v1607_v59, 8.507059e+37 }
0x1a4b   :  { %v1595_v7 = vor.u32 1.1754944e-38, %v1594_v60  ;;  %vm1593_vm1 = vcmp.eq.f32.partialorder %v1592_v62, 8.507059e+37 }
0x1a4d   :  { %v4153_v46 = vpop.eup %4152 }
0x1a4e   :  { %v1599_v49 = vmul.f32 %v4153_v46, %v1582_v42  ;;  %vm1604_vm9 = vweird.f32 %v4153_v46 }
0x1a4f   :  { %v4155_v48 = vpop.eup %4154  ;;  %vm1605_vm13 = vmor %vm1603_vm10, %vm1604_vm9 }
0x1a50   :  { %v1584_v50 = vmul.f32 %v4155_v48, %v1581_v44  ;;  %v1600_v5 = vsub.f32 1.0, %v1599_v49  ;;  %vm1589_vm11 = vweird.f32 %v4155_v48 }
0x1a51   :  { %vm1590_vm15 = vmor %vm1588_vm14, %vm1589_vm11 }
0x1a52   :  { %v1585_v21 = vsub.f32 1.0, %v1584_v50  ;;  %v1601_v53 = vmul.f32 %v4153_v46, %v1600_v5 }
0x1a54   :  { %v1586_v28 = vmul.f32 %v4155_v48, %v1585_v21  ;;  %v1602_v55 = vadd.f32 %v4153_v46, %v1601_v53  ;;  %v5009_v53 = vrot.slane %v4612_v0, 4 }
0x1a56   :  { %v1587_v1 = vadd.f32 %v4155_v48, %v1586_v28  ;;  %v1606_v61 = vsel %vm1605_vm13, %v4153_v46, %v1602_v55 }
0x1a57   :  { %v1611_v34 = vsel %vm1608_vm3, %v1610_v63, %v1606_v61 }
0x1a58   :  { %v1591_v2 = vsel %vm1590_vm15, %v4155_v48, %v1587_v1  ;;  %v1634_v24 = vsub.f32 1.0, %v1611_v34  ;;  %v1650_v45 = vmul.f32 %v1646_v19, %v1611_v34 }
0x1a59   :  { %v1596_v8 = vsel %vm1593_vm1, %v1595_v7, %v1591_v2 }
0x1a5a   :  { %v1649_v23 = vmul.f32 %v1645_v36, %v1596_v8 }
0x1aac   :  { %v1616_v3 = vpop.permute.xlu1 %1615 }
0x1aad   :  { %v1620_v4 = vmul.f32 %v1616_v3, %v1611_v34 }
0x1aae   :  { %v1614_v6 = vpop.permute.xlu0 %1613 }
0x1aaf   :  { %v1619_v10 = vmul.f32 %v1614_v6, %v1596_v8  ;;  %1625 = vrot.lane.b32.xlu0 %v1620_v4, %s4393_s23 }
0x1ab1   :  { %1623 = vrot.lane.b32.xlu2 %v1619_v10, %s4393_s23 }
0x1b0b   :  { %v1624_v11 = vpop.permute.xlu2 %1623 }
0x1b0c   :  { %v1629_v14 = vadd.f32 %v1624_v11, %v4932_v30  ;;  %v1633_v30 = vsub.f32 1.0, %v1596_v8 }
0x1b0e   :  { %4156 = vtanh.f32 %v1629_v14 }
0x1b14   :  { %v4157_v15 = vpop.eup %4156 }
0x1b15   :  { %1637 = vrot.lane.b32.xlu1 %v4157_v15, %s4395_s26 }
0x1b21   :  { %v1626_v16 = vpop.permute.xlu0 %1625 }
0x1b22   :  { %v1630_v56 = vadd.f32 %v1626_v16, %v4943_v52 }
0x1b24   :  { %4158 = vtanh.f32 %v1630_v56 }
0x1b2a   :  { %v4159_v18 = vpop.eup %4158 }
0x1b2b   :  { %1639 = vrot.lane.b32.xlu2 %v4159_v18, %s4395_s26 }
0x1b85   :  { %v1640_v25 = vpop.permute.xlu2 %1639 }
0x1b86   :  { %v1644_v17 = vmul.f32 %v1640_v25, %v1634_v24 }
0x1b87   :  { %v1638_v31 = vpop.permute.xlu1 %1637 }
0x1b88   :  { %v1652_v32 = vadd.f32 %v1650_v45, %v1644_v17  ;;  %v1643_v33 = vmul.f32 %v1638_v31, %v1633_v30 }
0x1b8a   :  { %v1656_v35 = vperm.slane %v1652_v32, 1  ;;  %v4987_v58 = vadd.f32 %v1649_v23, %v1643_v33  ;;  %v3911_v49 = vrot.slane %v1652_v32, 9 }
0x1b8c   :  { %v4991_v47 = vsel %vm1911_vm12, %v4969_v27, %v1656_v35  ;;  %v1655_v51 = vperm.slane %v4987_v58, 1  ;;  %v3910_v19 = vrot.slane %v4987_v58, 9 }
0x1b8e   :  { %v4996_v29 = vsel %vm1911_vm12, %v4962_v13, %v1655_v51  ;;  %v1657_v9 = vsel %vm403_vm8, %v1656_v35, %v1655_v51 }
0x1b8f   :  { %1658 = vrot.lane.b32.xlu0 %v1657_v9, %s4395_s26 }
0x1c01   :  { %v1659_v54 = vpop.permute.xlu0 %1658 }
0x1c02   :  { %3907 = vmatmul.msk.f32.vlgmr.msrb.gmra.mxu2 %vm284_vm5, %v1659_v54 }
0x1c85   :  { %v1679_v20 = vpop.f32.mrf.mxu2 }
0x1c86   :  { %v1680_v37 = vadd.f32 %v4819_v26, %v1679_v20 }
0x1c88   :  { %1726 = vrot.lane.b32.xlu1 %v1680_v37, %s4392_s0  ;;  %v1683_v27 = vrot.slane %v1680_v37, 1  ;;  %v1686_v28 = vadd.f32 %v1680_v37, %v5009_v53  ;;  %v4359_v37 = vld [vmem:[%s5569_s6] ss:$0 sm:$0xff] }
0x1c8a   :  { %1728 = vrot.lane.b32.xlu2 %v1683_v27, %s4392_s0  ;;  %v1687_v13 = vadd.f32 %v1683_v27, %v5003_v22  ;;  %v3908_v55 = vmul.f32 -1.442695, %v1686_v28  ;;  %v1933_v28 = vld [vmem:[%s5570_s7] sm:$0xf] }
0x1c8b   :  { %3916 = vmatpush.msk.msrb.mxu0 %vm288_vm4, %v1933_v28 }
0x1c8c   :  { %v3909_v12 = vmul.f32 -1.442695, %v1687_v13 }
0x1c8e   :  { %4160 = vpow2.f32 %v3909_v12 }
0x1c94   :  { %v4161_v38 = vpop.eup %4160 }
0x1c95   :  { %v1695_v39 = vadd.f32 1.0, %v4161_v38 }
0x1c97   :  { %4162 = vrcp.f32 %v1695_v39  ;;  %v1722_v44 = vand.u32 2147483648, %v1695_v39  ;;  %v1720_v52 = vand.u32 2147483647, %v1695_v39  ;;  %vm1716_vm6 = vweird.f32 %v1695_v39 }
0x1c98   :  { %4164 = vpow2.f32 %v3908_v55 }
0x1c99   :  { %v1723_v48 = vor.u32 1.1754944e-38, %v1722_v44  ;;  %vm1721_vm10 = vcmp.eq.f32.partialorder %v1720_v52, 8.507059e+37 }
0x1c9d   :  { %v4163_v40 = vpop.eup %4162 }
0x1c9e   :  { %v1712_v41 = vmul.f32 %v4163_v40, %v1695_v39  ;;  %vm1717_vm12 = vweird.f32 %v4163_v40  ;;  %v4165_v57 = vpop.eup %4164 }
0x1c9f   :  { %vm1718_vm9 = vmor %vm1716_vm6, %vm1717_vm12  ;;  %v1694_v59 = vadd.f32 1.0, %v4165_v57 }
0x1ca0   :  { %v1713_v42 = vsub.f32 1.0, %v1712_v41 }
0x1ca1   :  { %4166 = vrcp.f32 %v1694_v59  ;;  %v1707_v34 = vand.u32 2147483648, %v1694_v59  ;;  %vm1701_vm13 = vweird.f32 %v1694_v59  ;;  %v1705_v0 = vand.u32 2147483647, %v1694_v59 }
0x1ca2   :  { %v1714_v26 = vmul.f32 %v4163_v40, %v1713_v42 }
0x1ca3   :  { %v1708_v4 = vor.u32 1.1754944e-38, %v1707_v34  ;;  %vm1706_vm15 = vcmp.eq.f32.partialorder %v1705_v0, 8.507059e+37 }
0x1ca4   :  { %v1715_v46 = vadd.f32 %v4163_v40, %v1714_v26 }
0x1ca6   :  { %v1719_v50 = vsel %vm1718_vm9, %v4163_v40, %v1715_v46 }
0x1ca7   :  { %v1724_v5 = vsel %vm1721_vm10, %v1723_v48, %v1719_v50  ;;  %v4167_v1 = vpop.eup %4166 }
0x1ca8   :  { %v1765_v21 = vmul.f32 %v3911_v49, %v1724_v5  ;;  %v1697_v62 = vmul.f32 %v4167_v1, %v1694_v59  ;;  %vm1702_vm11 = vweird.f32 %v4167_v1  ;;  %v1747_v17 = vsub.f32 1.0, %v1724_v5 }
0x1ca9   :  { %vm1703_vm14 = vmor %vm1701_vm13, %vm1702_vm11 }
0x1caa   :  { %v1698_v63 = vsub.f32 1.0, %v1697_v62  ;;  %v5082_v62 = vld [vmem:[%s5573_s10] ss:$0 sm:$0xff] }
0x1cac   :  { %v1699_v2 = vmul.f32 %v4167_v1, %v1698_v63 }
0x1cae   :  { %v1700_v3 = vadd.f32 %v4167_v1, %v1699_v2 }
0x1cb0   :  { %v1704_v7 = vsel %vm1703_vm14, %v4167_v1, %v1700_v3  ;;  %v5089_v3 = vld [vmem:[%s5572_s9] ss:$0 sm:$0xff] }
0x1cb1   :  { %v1709_v8 = vsel %vm1706_vm15, %v1708_v4, %v1704_v7 }
0x1cb2   :  { %v1746_v24 = vsub.f32 1.0, %v1709_v8  ;;  %v1764_v36 = vmul.f32 %v3910_v19, %v1709_v8 }
0x1ce4   :  { %v1729_v60 = vpop.permute.xlu2 %1728 }
0x1ce5   :  { %v1733_v61 = vmul.f32 %v1729_v60, %v1724_v5 }
0x1ce7   :  { %1738 = vrot.lane.b32.xlu1 %v1733_v61, %s4393_s23 }
0x1cfa   :  { %v1727_v6 = vpop.permute.xlu1 %1726 }
0x1cfb   :  { %v1732_v10 = vmul.f32 %v1727_v6, %v1709_v8 }
0x1cfd   :  { %1736 = vrot.lane.b32.xlu0 %v1732_v10, %s4393_s23 }
0x1d59   :  { %v1739_v11 = vpop.permute.xlu1 %1738 }
0x1d5a   :  { %v1743_v14 = vadd.f32 %v1739_v11, %v5003_v22 }
0x1d5c   :  { %4168 = vtanh.f32 %v1743_v14 }
0x1d62   :  { %v4169_v15 = vpop.eup %4168 }
0x1d63   :  { %1752 = vrot.lane.b32.xlu0 %v4169_v15, %s4395_s26 }
0x1d6f   :  { %v1737_v16 = vpop.permute.xlu0 %1736 }
0x1d70   :  { %v1742_v56 = vadd.f32 %v1737_v16, %v5009_v53 }
0x1d72   :  { %4170 = vtanh.f32 %v1742_v56 }
0x1d78   :  { %v4171_v18 = vpop.eup %4170 }
0x1d79   :  { %1750 = vrot.lane.b32.xlu2 %v4171_v18, %s4395_s26 }
0x1dd3   :  { %v1751_v25 = vpop.permute.xlu2 %1750 }
0x1dd4   :  { %v1756_v45 = vmul.f32 %v1751_v25, %v1746_v24 }
0x1dd5   :  { %v1753_v30 = vpop.permute.xlu0 %1752 }
0x1dd6   :  { %v1766_v31 = vadd.f32 %v1764_v36, %v1756_v45  ;;  %v1757_v32 = vmul.f32 %v1753_v30, %v1747_v17 }
0x1dd8   :  { %v1770_v23 = vperm.slane %v1766_v31, 0  ;;  %v5019_v33 = vadd.f32 %v1765_v21, %v1757_v32  ;;  %v1873_v48 = vrot.slane %v1766_v31, 7  ;;  %v5051_v21 = vld [vmem:[%s5574_s11 + $0x2] sm:$0x3] }
0x1dda   :  { %v5023_v35 = vsel %vm288_vm4, %v4996_v29, %v1770_v23  ;;  %v1771_v51 = vperm.slane %v5019_v33, 0 }
0x1ddc   :  { %v5028_v58 = vsel %vm288_vm4, %v4991_v47, %v1771_v51  ;;  %v1772_v9 = vsel %vm403_vm8, %v1771_v51, %v1770_v23 }
0x1ddd   :  { %1773 = vrot.lane.b32.xlu1 %v1772_v9, %s4395_s26 }
0x1e4f   :  { %v1774_v54 = vpop.permute.xlu1 %1773 }
0x1e50   :  { %3913 = vmatmul.msk.f32.vlgmr.msrb.gmra.mxu3 %vm284_vm5, %v1774_v54 }
0x1ed3   :  { %v1794_v20 = vpop.f32.mrf.mxu3 }
0x1ed4   :  { %v5036_v29 = vadd.f32 %v4359_v37, %v1794_v20 }
0x1ed6   :  { %v1798_v27 = vrot.slane %v5036_v29, 7 }
0x1ed8   :  { %1841 = vrot.lane.b32.xlu2 %v1798_v27, %s4392_s0  ;;  %v1801_v47 = vadd.f32 %v1798_v27, %v5009_v53 }
0x1eda   :  { %v3914_v13 = vmul.f32 -1.442695, %v1801_v47 }
0x1edc   :  { %4172 = vpow2.f32 %v3914_v13  ;;  %v2158_v13 = vrot.slane %v5051_v21, 1 }
0x1ee0   :  { %1979 = vrot.lane.b32.xlu2 %v4879_v43, %s4395_s26  ;;  %v5046_v43 = vld [vmem:[%s5571_s8] sm:$0xf] }
0x1ee1   :  { %3922 = vmatpush.msk.msrb.mxu1 %vm288_vm4, %v5046_v43  ;;  %3926 = vmatpush.msk.msra.mxu2 %vm288_vm4, %v5046_v43 }
0x1ee2   :  { %v4173_v12 = vpop.eup %4172  ;;  %3923 = vmatmul.msk.f32.vlgmr.msrb.gmra.mxu1 %vm284_vm5, %v5051_v21  ;;  %3930 = vmatpush.msk.msra.mxu3 %vm288_vm4, %v5046_v43 }
0x1ee3   :  { %v1809_v38 = vadd.f32 1.0, %v4173_v12  ;;  %3936 = vmatpush.msk.msra.mxu1 %vm288_vm4, %v5046_v43  ;;  %3940 = vmatpush.msk.msrb.mxu2 %vm288_vm4, %v5046_v43 }
0x1ee4   :  { %3946 = vmatpush.msk.msrb.mxu3 %vm288_vm4, %v5046_v43  ;;  %3980 = vmatpush.msk.msra.mxu0 %vm288_vm4, %v5046_v43 }
0x1ee5   :  { %4174 = vrcp.f32 %v1809_v38  ;;  %v1822_v42 = vand.u32 2147483648, %v1809_v38  ;;  %v1820_v26 = vand.u32 2147483647, %v1809_v38  ;;  %vm1816_vm1 = vweird.f32 %v1809_v38  ;;  %3950 = vmatpush.msk.msrb.mxu1 %vm288_vm4, %v5046_v43 }
0x1ee7   :  { %v1823_v46 = vor.u32 1.1754944e-38, %v1822_v42  ;;  %vm1821_vm6 = vcmp.eq.f32.partialorder %v1820_v26, 8.507059e+37 }
0x1eeb   :  { %v4175_v39 = vpop.eup %4174 }
0x1eec   :  { %v1812_v40 = vmul.f32 %v4175_v39, %v1809_v38  ;;  %vm1817_vm3 = vweird.f32 %v4175_v39 }
0x1eed   :  { %vm1818_vm12 = vmor %vm1816_vm1, %vm1817_vm3 }
0x1eee   :  { %v1813_v41 = vsub.f32 1.0, %v1812_v40 }
0x1ef0   :  { %v1814_v44 = vmul.f32 %v4175_v39, %v1813_v41 }
0x1ef2   :  { %v1815_v52 = vadd.f32 %v4175_v39, %v1814_v44 }
0x1ef4   :  { %v1819_v49 = vsel %vm1818_vm12, %v4175_v39, %v1815_v52 }
0x1ef5   :  { %v1824_v50 = vsel %vm1821_vm6, %v1823_v46, %v1819_v49 }
0x1ef6   :  { %v1877_v5 = vmul.f32 %v1873_v48, %v1824_v50  ;;  %v1861_v8 = vsub.f32 1.0, %v1824_v50 }
0x1f32   :  { %v1842_v55 = vpop.permute.xlu2 %1841 }
0x1f33   :  { %v1847_v57 = vmul.f32 %v1842_v55, %v1824_v50 }
0x1f35   :  { %1851 = vrot.lane.b32.xlu0 %v1847_v57, %s4393_s23 }
0x1f3a   :  { %v1980_v59 = vpop.permute.xlu2 %1979 }
0x1f3b   :  { %3917 = vmatmul.msk.f32.vlgmr.msrb.gmra.mxu0 %vm284_vm5, %v1980_v59 }
0x1f5f   :  { %v2079_v63 = vpop.f32.mrf.mxu1 }
0x1f60   :  { %v2080_v2 = vadd.f32 %v5082_v62, %v2079_v63 }
0x1f62   :  { %v2083_v54 = vrot.slane %v2080_v2, 1 }
0x1f64   :  { %2128 = vrot.lane.b32.xlu2 %v2083_v54, %s4392_s0 }
0x1fa7   :  { %v1852_v1 = vpop.permute.xlu0 %1851 }
0x1fa8   :  { %v1857_v60 = vadd.f32 %v1852_v1, %v5009_v53 }
0x1faa   :  { %4176 = vtanh.f32 %v1857_v60 }
0x1fb0   :  { %v4177_v61 = vpop.eup %4176 }
0x1fb1   :  { %1865 = vrot.lane.b32.xlu1 %v4177_v61, %s4395_s26 }
0x1fb8   :  { %v2015_v53 = vpop.f32.mrf.mxu0 }
0x1fb9   :  { %2126 = vrot.lane.b32.xlu1 %v2080_v2, %s4392_s0  ;;  %v5092_v34 = vadd.f32 %v5089_v3, %v2015_v53 }
0x1fbb   :  { %v2086_v0 = vadd.f32 %v2080_v2, %v5092_v34 }
0x1fbd   :  { %v3924_v7 = vmul.f32 -1.442695, %v2086_v0 }
0x1fbe   :  { %v2129_v57 = vpop.permute.xlu2 %2128 }
0x1fbf   :  { %4178 = vpow2.f32 %v3924_v7 }
0x1fc5   :  { %v4179_v4 = vpop.eup %4178 }
0x1fc6   :  { %v2094_v6 = vadd.f32 1.0, %v4179_v4 }
0x1fc8   :  { %4180 = vrcp.f32 %v2094_v6  ;;  %v2107_v17 = vand.u32 2147483648, %v2094_v6  ;;  %vm2101_vm10 = vweird.f32 %v2094_v6  ;;  %v2105_v31 = vand.u32 2147483647, %v2094_v6 }
0x1fca   :  { %v2108_v23 = vor.u32 1.1754944e-38, %v2107_v17  ;;  %vm2106_vm13 = vcmp.eq.f32.partialorder %v2105_v31, 8.507059e+37 }
0x1fce   :  { %v4181_v14 = vpop.eup %4180 }
0x1fcf   :  { %v2097_v56 = vmul.f32 %v4181_v14, %v2094_v6  ;;  %vm2102_vm9 = vweird.f32 %v4181_v14 }
0x1fd0   :  { %vm2103_vm11 = vmor %vm2101_vm10, %vm2102_vm9 }
0x1fd1   :  { %v2098_v25 = vsub.f32 1.0, %v2097_v56 }
0x1fd3   :  { %v2099_v36 = vmul.f32 %v4181_v14, %v2098_v25 }
0x1fd5   :  { %v2100_v45 = vadd.f32 %v4181_v14, %v2099_v36 }
0x1fd7   :  { %v2104_v32 = vsel %vm2103_vm11, %v4181_v14, %v2100_v45 }
0x2023   :  { %v1866_v10 = vpop.permute.xlu1 %1865 }
0x2024   :  { %v1871_v11 = vmul.f32 %v1866_v10, %v1861_v8 }
0x2026   :  { %v1879_v15 = vadd.f32 %v1877_v5, %v1871_v11 }
0x2028   :  { %v1901_v16 = vperm.slane %v1879_v15, 1 }
0x202a   :  { %v1931_v18 = vsel %vm1916_vm2, %v5023_v35, %v1901_v16  ;;  %v2109_v35 = vsel %vm2106_vm13, %v2108_v23, %v2104_v32 }
0x202b   :  { %v1944_v19 = vrot.slane %v1931_v18, 2  ;;  %v1945_v24 = vrot.slane %v1931_v18, 4  ;;  %1962 = vst [vmem:[#allocation1 + $0x20] ss:$4 sm:$0xff] %v1931_v18  ;;  %v2127_v51 = vpop.permute.xlu1 %2126  ;;  %v2146_v0 = vsub.f32 1.0, %v2109_v35 }
0x202c   :  { %v2132_v9 = vmul.f32 %v2127_v51, %v2109_v35 }
0x202d   :  { %1964 = vst [vmem:[#allocation1 + $0x21] ss:$4 sm:$0xff] %v1944_v19  ;;  %v1802_v19 = vadd.f32 %v5036_v29, %v5003_v22 }
0x202e   :  { %1966 = vst [vmem:[#allocation1 + $0x22] ss:$4 sm:$0xff] %v1945_v24 }
0x202f   :  { %v3915_v24 = vmul.f32 -1.442695, %v1802_v19 }
0x2035   :  { %v1970_v30 = vld.sshfl [vmem:[#allocation1 + $0x20] sm:$0xff pattern:$0x73625140] }
0x2036   :  { %1981 = vrot.lane.b32.xlu0 %v1970_v30, %s4395_s26 }
0x203e   :  { %2136 = vrot.lane.b32.xlu0 %v2132_v9, %s4393_s23 }
0x20a8   :  { %v1982_v20 = vpop.permute.xlu0 %1981 }
0x20a9   :  { %3918 = vmatmul.msk.f32.gmra.mxu0 %vm284_vm5, %v1982_v20 }
0x20b0   :  { %v2137_v37 = vpop.permute.xlu0 %2136 }
0x20b1   :  { %v2142_v27 = vadd.f32 %v2137_v37, %v5092_v34 }
0x20b3   :  { %4182 = vtanh.f32 %v2142_v27 }
0x20b9   :  { %v4183_v47 = vpop.eup %4182 }
0x20ba   :  { %2150 = vrot.lane.b32.xlu2 %v4183_v47, %s4395_s26 }
0x20c2   :  { %2161 = vrot.lane.b32.xlu2 %v2158_v13, %s4394_s24 }
0x2114   :  { %v2151_v2 = vpop.permute.xlu2 %2150 }
0x2115   :  { %v2156_v6 = vmul.f32 %v2151_v2, %v2146_v0 }
0x211c   :  { %v2162_v4 = vpop.permute.xlu2 %2161 }
0x2126   :  { %v2018_v12 = vpop.f32.mrf.mxu0 }
0x2127   :  { %v5106_v38 = vadd.f32 %v5089_v3, %v2018_v12 }
0x2129   :  { %v5109_v39 = vrot.slane %v5106_v38, 6 }
0x212b   :  { %v2087_v40 = vadd.f32 %v2083_v54, %v5109_v39 }
0x212d   :  { %v3925_v41 = vmul.f32 -1.442695, %v2087_v40 }
0x212f   :  { %4184 = vpow2.f32 %v3925_v41 }
0x2135   :  { %v4185_v42 = vpop.eup %4184 }
0x2136   :  { %v2095_v44 = vadd.f32 1.0, %v4185_v42 }
0x2138   :  { %4186 = vrcp.f32 %v2095_v44  ;;  %v2122_v48 = vand.u32 2147483648, %v2095_v44  ;;  %v2120_v50 = vand.u32 2147483647, %v2095_v44  ;;  %vm2116_vm15 = vweird.f32 %v2095_v44 }
0x213a   :  { %v2123_v28 = vor.u32 1.1754944e-38, %v2122_v48  ;;  %vm2121_vm1 = vcmp.eq.f32.partialorder %v2120_v50, 8.507059e+37 }
0x213e   :  { %v4187_v26 = vpop.eup %4186 }
0x213f   :  { %v2112_v52 = vmul.f32 %v4187_v26, %v2095_v44  ;;  %vm2117_vm14 = vweird.f32 %v4187_v26 }
0x2140   :  { %vm2118_vm3 = vmor %vm2116_vm15, %vm2117_vm14 }
0x2141   :  { %v2113_v46 = vsub.f32 1.0, %v2112_v52 }
0x2143   :  { %v2114_v49 = vmul.f32 %v4187_v26, %v2113_v46 }
0x2145   :  { %v2115_v5 = vadd.f32 %v4187_v26, %v2114_v49 }
0x2147   :  { %v2119_v55 = vsel %vm2118_vm3, %v4187_v26, %v2115_v5 }
0x2148   :  { %v2124_v59 = vsel %vm2121_vm1, %v2123_v28, %v2119_v55 }
0x2149   :  { %v2133_v1 = vmul.f32 %v2129_v57, %v2124_v59  ;;  %v2147_v8 = vsub.f32 1.0, %v2124_v59  ;;  %v2166_v11 = vmul.f32 %v2162_v4, %v2124_v59 }
0x214b   :  { %2138 = vrot.lane.b32.xlu1 %v2133_v1, %s4393_s23 }
0x2153   :  { %2159 = vrot.lane.b32.xlu1 %v5051_v21, %s4394_s24 }
0x21bd   :  { %v2139_v60 = vpop.permute.xlu1 %2138 }
0x21be   :  { %v2143_v61 = vadd.f32 %v2139_v60, %v5109_v39 }
0x21c0   :  { %4188 = vtanh.f32 %v2143_v61 }
0x21c1   :  { %4190 = vpow2.f32 %v3915_v24 }
0x21c5   :  { %v2160_v53 = vpop.permute.xlu1 %2159 }
0x21c6   :  { %v4189_v63 = vpop.eup %4188  ;;  %v2165_v7 = vmul.f32 %v2160_v53, %v2109_v35 }
0x21c7   :  { %2152 = vrot.lane.b32.xlu0 %v4189_v63, %s4395_s26  ;;  %v4191_v25 = vpop.eup %4190 }
0x21c8   :  { %v5117_v14 = vadd.f32 %v2165_v7, %v2156_v6  ;;  %v1810_v36 = vadd.f32 1.0, %v4191_v25 }
0x21ca   :  { %v2171_v16 = vperm.slane %v5117_v14, 0  ;;  %4192 = vrcp.f32 %v1810_v36  ;;  %v1837_v51 = vand.u32 2147483648, %v1810_v36  ;;  %vm1831_vm6 = vweird.f32 %v1810_v36 }
0x21cc   :  { %v1838_v9 = vor.u32 1.1754944e-38, %v1837_v51 }
0x21d0   :  { %v4193_v45 = vpop.eup %4192 }
0x21d1   :  { %v1827_v17 = vmul.f32 %v4193_v45, %v1810_v36  ;;  %vm1832_vm12 = vweird.f32 %v4193_v45 }
0x21d2   :  { %vm1833_vm9 = vmor %vm1831_vm6, %vm1832_vm12 }
0x21d3   :  { %v1828_v30 = vsub.f32 1.0, %v1827_v17 }
0x21d5   :  { %v1829_v31 = vmul.f32 %v4193_v45, %v1828_v30 }
0x21d7   :  { %v1830_v23 = vadd.f32 %v4193_v45, %v1829_v31 }
0x21d9   :  { %v1834_v35 = vsel %vm1833_vm9, %v4193_v45, %v1830_v23 }
0x2239   :  { %v2153_v10 = vpop.permute.xlu0 %2152 }
0x223a   :  { %v2157_v15 = vmul.f32 %v2153_v10, %v2147_v8 }
0x223c   :  { %v5119_v21 = vadd.f32 %v2166_v11, %v2157_v15 }
0x223e   :  { %v2172_v56 = vperm.slane %v5119_v21, 0  ;;  %v2275_v57 = vrot.slane %v5119_v21, 7 }
0x2240   :  { %v2173_v18 = vsel %vm403_vm8, %v2172_v56, %v2171_v16  ;;  %v1874_v16 = vrot.slane %v5019_v33, 7 }
0x2241   :  { %2174 = vrot.lane.b32.xlu0 %v2173_v18, %s4395_s26 }
0x2249   :  { %1843 = vrot.lane.b32.xlu0 %v5036_v29, %s4392_s0  ;;  %v1835_v29 = vand.u32 2147483647, %v1810_v36 }
0x224b   :  { %vm1836_vm10 = vcmp.eq.f32.partialorder %v1835_v29, 8.507059e+37 }
0x224c   :  { %v1839_v54 = vsel %vm1836_vm10, %v1838_v9, %v1834_v35 }
0x224d   :  { %v1862_v56 = vsub.f32 1.0, %v1839_v54  ;;  %v1878_v25 = vmul.f32 %v1874_v16, %v1839_v54 }
0x22b3   :  { %v5129_v32 = vpop.permute.xlu0 %2174 }
0x22b4   :  { %3927 = vmatmul.msk.f32.vlgmr.msra.gmra.mxu2 %vm284_vm5, %v5129_v32 }
0x22b5   :  { %3956 = vmatpush.msk.msra.mxu2 %vm288_vm4, %v5046_v43 }
0x22bb   :  { %v1844_v20 = vpop.permute.xlu0 %1843 }
0x22bc   :  { %v1848_v37 = vmul.f32 %v1844_v20, %v1839_v54 }
0x22be   :  { %1853 = vrot.lane.b32.xlu0 %v1848_v37, %s4393_s23 }
0x2330   :  { %v1854_v27 = vpop.permute.xlu0 %1853 }
0x2331   :  { %v1858_v47 = vadd.f32 %v1854_v27, %v5003_v22 }
0x2333   :  { %4194 = vtanh.f32 %v1858_v47 }
0x2337   :  { %v2195_v13 = vpop.f32.mrf.mxu2 }
0x2338   :  { %v2196_v12 = vadd.f32 %v5082_v62, %v2195_v13 }
0x2339   :  { %v4195_v40 = vpop.eup %4194 }
0x233a   :  { %v2203_v41 = vadd.f32 %v2196_v12, %v5109_v39  ;;  %2244 = vrot.lane.b32.xlu2 %v2196_v12, %s4392_s0  ;;  %1867 = vrot.lane.b32.xlu0 %v4195_v40, %s4395_s26  ;;  %v2199_v42 = vrot.slane %v2196_v12, 7 }
0x233c   :  { %v3929_v44 = vmul.f32 -1.442695, %v2203_v41  ;;  %2242 = vrot.lane.b32.xlu1 %v2199_v42, %s4392_s0  ;;  %v2202_v61 = vadd.f32 %v2199_v42, %v5092_v34  ;;  %v2274_v41 = vrot.slane %v5117_v14, 7 }
0x233e   :  { %4196 = vpow2.f32 %v3929_v44  ;;  %v3928_v63 = vmul.f32 -1.442695, %v2202_v61 }
0x2344   :  { %v4197_v26 = vpop.eup %4196 }
0x2345   :  { %v2211_v52 = vadd.f32 1.0, %v4197_v26 }
0x2347   :  { %4198 = vrcp.f32 %v2211_v52  ;;  %v2238_v49 = vand.u32 2147483648, %v2211_v52  ;;  %v2236_v5 = vand.u32 2147483647, %v2211_v52  ;;  %vm2232_vm13 = vweird.f32 %v2211_v52 }
0x2348   :  { %4200 = vpow2.f32 %v3928_v63 }
0x2349   :  { %v2239_v55 = vor.u32 1.1754944e-38, %v2238_v49  ;;  %vm2237_vm15 = vcmp.eq.f32.partialorder %v2236_v5, 8.507059e+37 }
0x234d   :  { %v4199_v22 = vpop.eup %4198 }
0x234e   :  { %v2228_v46 = vmul.f32 %v4199_v22, %v2211_v52  ;;  %vm2233_vm11 = vweird.f32 %v4199_v22  ;;  %v4201_v2 = vpop.eup %4200 }
0x234f   :  { %vm2234_vm14 = vmor %vm2232_vm13, %vm2233_vm11  ;;  %v2210_v53 = vadd.f32 1.0, %v4201_v2 }
0x2350   :  { %v2229_v48 = vsub.f32 1.0, %v2228_v46 }
0x2351   :  { %4202 = vrcp.f32 %v2210_v53  ;;  %v2223_v15 = vand.u32 2147483648, %v2210_v53  ;;  %vm2217_vm1 = vweird.f32 %v2210_v53  ;;  %v2221_v21 = vand.u32 2147483647, %v2210_v53 }
0x2352   :  { %v2230_v50 = vmul.f32 %v4199_v22, %v2229_v48 }
0x2353   :  { %v2224_v24 = vor.u32 1.1754944e-38, %v2223_v15  ;;  %vm2222_vm6 = vcmp.eq.f32.partialorder %v2221_v21, 8.507059e+37 }
0x2354   :  { %v2231_v28 = vadd.f32 %v4199_v22, %v2230_v50 }
0x2356   :  { %v2235_v59 = vsel %vm2234_vm14, %v4199_v22, %v2231_v28 }
0x2357   :  { %v2240_v1 = vsel %vm2237_vm15, %v2239_v55, %v2235_v59  ;;  %v4203_v4 = vpop.eup %4202 }
0x2358   :  { %v2279_v60 = vmul.f32 %v2275_v57, %v2240_v1  ;;  %v2213_v6 = vmul.f32 %v4203_v4, %v2210_v53  ;;  %vm2218_vm3 = vweird.f32 %v4203_v4  ;;  %v2263_v47 = vsub.f32 1.0, %v2240_v1 }
0x2359   :  { %vm2219_vm12 = vmor %vm2217_vm1, %vm2218_vm3  ;;  %v5174_v57 = vrot.slane %v5092_v34, 2 }
0x235a   :  { %v2214_v8 = vsub.f32 1.0, %v2213_v6 }
0x235c   :  { %v2215_v10 = vmul.f32 %v4203_v4, %v2214_v8 }
0x235e   :  { %v2216_v11 = vadd.f32 %v4203_v4, %v2215_v10 }
0x2360   :  { %v2220_v18 = vsel %vm2219_vm12, %v4203_v4, %v2216_v11 }
0x2361   :  { %v2225_v17 = vsel %vm2222_vm6, %v2224_v24, %v2220_v18 }
0x2362   :  { %v2262_v42 = vsub.f32 1.0, %v2225_v17  ;;  %v2278_v26 = vmul.f32 %v2274_v41, %v2225_v17 }
0x2394   :  { %v2245_v0 = vpop.permute.xlu2 %2244 }
0x2395   :  { %v2249_v7 = vmul.f32 %v2245_v0, %v2240_v1 }
0x2397   :  { %2254 = vrot.lane.b32.xlu2 %v2249_v7, %s4393_s23 }
0x23ac   :  { %v1868_v19 = vpop.permute.xlu0 %1867 }
0x23ad   :  { %v1872_v36 = vmul.f32 %v1868_v19, %v1862_v56 }
0x23ae   :  { %v2243_v45 = vpop.permute.xlu1 %2242 }
0x23af   :  { %v1880_v30 = vadd.f32 %v1878_v25, %v1872_v36  ;;  %v2248_v31 = vmul.f32 %v2243_v45, %v2225_v17 }
0x23b1   :  { %v1902_v23 = vperm.slane %v1880_v30, 1  ;;  %2252 = vrot.lane.b32.xlu1 %v2248_v31, %s4393_s23 }
0x23b3   :  { %v1932_v51 = vsel %vm1916_vm2, %v5028_v58, %v1902_v23 }
0x23b4   :  { %v1949_v29 = vrot.slane %v1932_v51, 2  ;;  %v1950_v35 = vrot.slane %v1932_v51, 4  ;;  %1974 = vst [vmem:[#allocation1 + $0x3] ss:$4 sm:$0xff] %v1932_v51 }
0x23b6   :  { %1975 = vst [vmem:[#allocation1 + $0x20] ss:$4 sm:$0xff] %v1949_v29 }
0x23b7   :  { %1976 = vst [vmem:[#allocation1 + $0x21] ss:$4 sm:$0xff] %v1950_v35 }
0x23bb   :  { %v1977_v20 = vld.sshfl [vmem:[#allocation1] sm:$0xff pattern:$0x73625140] }
0x23f1   :  { %v2255_v33 = vpop.permute.xlu2 %2254 }
0x23f2   :  { %v2259_v9 = vadd.f32 %v2255_v33, %v5109_v39 }
0x23f4   :  { %4204 = vtanh.f32 %v2259_v9 }
0x23fa   :  { %v4205_v54 = vpop.eup %4204 }
0x23fb   :  { %2268 = vrot.lane.b32.xlu2 %v4205_v54, %s4395_s26 }
0x2403   :  { %1983 = vrot.lane.b32.xlu2 %v1977_v20, %s4395_s26 }
0x2423   :  { %v2253_v37 = vpop.permute.xlu1 %2252 }
0x2424   :  { %v2258_v27 = vadd.f32 %v2253_v37, %v5092_v34 }
0x2426   :  { %4206 = vtanh.f32 %v2258_v27 }
0x242c   :  { %v4207_v58 = vpop.eup %4206 }
0x242d   :  { %2266 = vrot.lane.b32.xlu1 %v4207_v58, %s4395_s26 }
0x2455   :  { %v2269_v13 = vpop.permute.xlu2 %2268 }
0x2456   :  { %v2273_v12 = vmul.f32 %v2269_v13, %v2263_v47 }
0x2458   :  { %v5154_v40 = vadd.f32 %v2279_v60, %v2273_v12 }
0x245a   :  { %v2285_v46 = vperm.slane %v5154_v40, 1 }
0x245d   :  { %v1984_v39 = vpop.permute.xlu2 %1983 }
0x245e   :  { %3919 = vmatmul.msk.f32.gmra.mxu0 %vm284_vm5, %v1984_v39  ;;  %v3935_v39 = vrot.slane %v5154_v40, 9 }
0x249f   :  { %v2267_v44 = vpop.permute.xlu1 %2266 }
0x24a0   :  { %v2272_v52 = vmul.f32 %v2267_v44, %v2262_v42 }
0x24a2   :  { %v5158_v22 = vadd.f32 %v2278_v26, %v2272_v52 }
0x24a4   :  { %v2284_v48 = vperm.slane %v5158_v22, 1  ;;  %v3934_v47 = vrot.slane %v5158_v22, 9 }
0x24a6   :  { %v5163_v49 = vsel %vm403_vm8, %v2285_v46, %v2284_v48 }
0x24a7   :  { %2287 = vrot.lane.b32.xlu1 %v5163_v49, %s4395_s26 }
0x24db   :  { %v2021_v55 = vpop.f32.mrf.mxu0 }
0x24dc   :  { %v5177_v59 = vadd.f32 %v5089_v3, %v2021_v55 }
0x2519   :  { %v2288_v50 = vpop.permute.xlu1 %2287 }
0x251a   :  { %3931 = vmatmul.msk.f32.vlgmr.msra.gmra.mxu3 %vm284_vm5, %v2288_v50 }
0x251b   :  { %3960 = vmatpush.msk.msra.mxu3 %vm288_vm4, %v5046_v43 }
0x259d   :  { %v2308_v14 = vpop.f32.mrf.mxu3 }
0x259e   :  { %v2309_v5 = vadd.f32 %v5082_v62, %v2308_v14 }
0x25a0   :  { %2355 = vrot.lane.b32.xlu0 %v2309_v5, %s4392_s0  ;;  %v2312_v28 = vrot.slane %v2309_v5, 1  ;;  %v2315_v1 = vadd.f32 %v2309_v5, %v5174_v57 }
0x25a2   :  { %2357 = vrot.lane.b32.xlu1 %v2312_v28, %s4392_s0  ;;  %v2316_v60 = vadd.f32 %v2312_v28, %v5177_v59  ;;  %v3932_v61 = vmul.f32 -1.442695, %v2315_v1 }
0x25a4   :  { %v3933_v63 = vmul.f32 -1.442695, %v2316_v60  ;;  %4208 = vpow2.f32 %v3932_v61 }
0x25a6   :  { %4210 = vpow2.f32 %v3933_v63 }
0x25aa   :  { %v4209_v2 = vpop.eup %4208 }
0x25ab   :  { %v2323_v0 = vadd.f32 1.0, %v4209_v2 }
0x25ac   :  { %v4211_v53 = vpop.eup %4210 }
0x25ad   :  { %v2324_v7 = vadd.f32 1.0, %v4211_v53  ;;  %4212 = vrcp.f32 %v2323_v0  ;;  %v2336_v56 = vand.u32 2147483648, %v2323_v0  ;;  %vm2330_vm9 = vweird.f32 %v2323_v0 }
0x25ae   :  { %v2334_v18 = vand.u32 2147483647, %v2323_v0 }
0x25af   :  { %4214 = vrcp.f32 %v2324_v7  ;;  %v2351_v24 = vand.u32 2147483648, %v2324_v7  ;;  %vm2345_vm13 = vweird.f32 %v2324_v7  ;;  %v2349_v36 = vand.u32 2147483647, %v2324_v7 }
0x25b0   :  { %v2337_v45 = vor.u32 1.1754944e-38, %v2336_v56  ;;  %vm2335_vm15 = vcmp.eq.f32.partialorder %v2334_v18, 8.507059e+37 }
0x25b1   :  { %v2352_v23 = vor.u32 1.1754944e-38, %v2351_v24  ;;  %vm2350_vm3 = vcmp.eq.f32.partialorder %v2349_v36, 8.507059e+37 }
0x25b3   :  { %v4213_v4 = vpop.eup %4212 }
0x25b4   :  { %v2326_v8 = vmul.f32 %v4213_v4, %v2323_v0  ;;  %vm2331_vm2 = vweird.f32 %v4213_v4 }
0x25b5   :  { %v4215_v6 = vpop.eup %4214  ;;  %vm2332_vm11 = vmor %vm2330_vm9, %vm2331_vm2 }
0x25b6   :  { %v2341_v10 = vmul.f32 %v4215_v6, %v2324_v7  ;;  %v2327_v3 = vsub.f32 1.0, %v2326_v8  ;;  %vm2346_vm10 = vweird.f32 %v4215_v6 }
0x25b7   :  { %vm2347_vm14 = vmor %vm2345_vm13, %vm2346_vm10 }
0x25b8   :  { %v2342_v11 = vsub.f32 1.0, %v2341_v10  ;;  %v2328_v15 = vmul.f32 %v4213_v4, %v2327_v3 }
0x25ba   :  { %v2343_v21 = vmul.f32 %v4215_v6, %v2342_v11  ;;  %v2329_v16 = vadd.f32 %v4213_v4, %v2328_v15 }
0x25bc   :  { %v2344_v19 = vadd.f32 %v4215_v6, %v2343_v21  ;;  %v2333_v25 = vsel %vm2332_vm11, %v4213_v4, %v2329_v16 }
0x25bd   :  { %v2338_v30 = vsel %vm2335_vm15, %v2337_v45, %v2333_v25 }
0x25be   :  { %v2348_v17 = vsel %vm2347_vm14, %v4215_v6, %v2344_v19  ;;  %v2375_v13 = vsub.f32 1.0, %v2338_v30  ;;  %v2393_v41 = vmul.f32 %v3934_v47, %v2338_v30 }
0x25bf   :  { %v2353_v35 = vsel %vm2350_vm3, %v2352_v23, %v2348_v17 }
0x25c0   :  { %v2376_v44 = vsub.f32 1.0, %v2353_v35  ;;  %v2394_v46 = vmul.f32 %v3935_v39, %v2353_v35 }
0x2612   :  { %v2356_v31 = vpop.permute.xlu0 %2355 }
0x2613   :  { %v2361_v51 = vmul.f32 %v2356_v31, %v2338_v30 }
0x2614   :  { %v2358_v29 = vpop.permute.xlu1 %2357 }
0x2615   :  { %v2362_v33 = vmul.f32 %v2358_v29, %v2353_v35  ;;  %2365 = vrot.lane.b32.xlu2 %v2361_v51, %s4393_s23 }
0x2617   :  { %2367 = vrot.lane.b32.xlu0 %v2362_v33, %s4393_s23 }
0x266f   :  { %v2366_v9 = vpop.permute.xlu2 %2365 }
0x2670   :  { %v2371_v54 = vadd.f32 %v2366_v9, %v5174_v57 }
0x2672   :  { %4216 = vtanh.f32 %v2371_v54 }
0x2678   :  { %v4217_v20 = vpop.eup %4216 }
0x2679   :  { %2379 = vrot.lane.b32.xlu1 %v4217_v20, %s4395_s26 }
0x2689   :  { %v2368_v37 = vpop.permute.xlu0 %2367 }
0x268a   :  { %v2372_v27 = vadd.f32 %v2368_v37, %v5177_v59 }
0x268c   :  { %4218 = vtanh.f32 %v2372_v27 }
0x2692   :  { %v4219_v58 = vpop.eup %4218 }
0x2693   :  { %2381 = vrot.lane.b32.xlu2 %v4219_v58, %s4395_s26 }
0x26eb   :  { %v2380_v12 = vpop.permute.xlu1 %2379 }
0x26ec   :  { %v2385_v42 = vmul.f32 %v2380_v12, %v2375_v13 }
0x26ed   :  { %v2382_v26 = vpop.permute.xlu2 %2381 }
0x26ee   :  { %v5189_v52 = vadd.f32 %v2393_v41, %v2385_v42  ;;  %v2386_v48 = vmul.f32 %v2382_v26, %v2376_v44 }
0x26f0   :  { %v2396_v50 = vadd.f32 %v2394_v46, %v2386_v48  ;;  %v2399_v14 = vperm.slane %v5189_v52, 0  ;;  %v2502_v42 = vrot.slane %v5189_v52, 7 }
0x26f2   :  { %v2400_v5 = vperm.slane %v2396_v50, 0  ;;  %v2503_v11 = vrot.slane %v2396_v50, 7 }
0x26f4   :  { %v5193_v28 = vsel %vm403_vm8, %v2400_v5, %v2399_v14 }
0x26f5   :  { %2402 = vrot.lane.b32.xlu0 %v5193_v28, %s4395_s26 }
0x2767   :  { %v2403_v22 = vpop.permute.xlu0 %2402 }
0x2768   :  { %3937 = vmatmul.msk.f32.vlgmr.msra.gmra.mxu1 %vm284_vm5, %v2403_v22 }
0x2769   :  { %3966 = vmatpush.msk.msra.mxu1 %vm288_vm4, %v5046_v43 }
0x27e5   :  { %v2423_v40 = vpop.f32.mrf.mxu1 }
0x27e6   :  { %v2424_v55 = vadd.f32 %v5082_v62, %v2423_v40 }
0x27e8   :  { %v2431_v1 = vadd.f32 %v2424_v55, %v5177_v59  ;;  %2472 = vrot.lane.b32.xlu2 %v2424_v55, %s4392_s0  ;;  %v2427_v60 = vrot.slane %v2424_v55, 7 }
0x27ea   :  { %v3939_v61 = vmul.f32 -1.442695, %v2431_v1  ;;  %2470 = vrot.lane.b32.xlu1 %v2427_v60, %s4392_s0  ;;  %v2430_v56 = vadd.f32 %v2427_v60, %v5174_v57  ;;  %v5224_v1 = vrot.slane %v5092_v34, 4 }
0x27ec   :  { %4220 = vpow2.f32 %v3939_v61  ;;  %v3938_v18 = vmul.f32 -1.442695, %v2430_v56 }
0x27f2   :  { %v4221_v63 = vpop.eup %4220 }
0x27f3   :  { %v2439_v2 = vadd.f32 1.0, %v4221_v63 }
0x27f5   :  { %4222 = vrcp.f32 %v2439_v2  ;;  %v2466_v4 = vand.u32 2147483648, %v2439_v2  ;;  %v2464_v8 = vand.u32 2147483647, %v2439_v2  ;;  %vm2460_vm12 = vweird.f32 %v2439_v2 }
0x27f6   :  { %4224 = vpow2.f32 %v3938_v18 }
0x27f7   :  { %v2467_v3 = vor.u32 1.1754944e-38, %v2466_v4  ;;  %vm2465_vm2 = vcmp.eq.f32.partialorder %v2464_v8, 8.507059e+37 }
0x27fb   :  { %v4223_v53 = vpop.eup %4222 }
0x27fc   :  { %v2456_v0 = vmul.f32 %v4223_v53, %v2439_v2  ;;  %vm2461_vm1 = vweird.f32 %v4223_v53  ;;  %v4225_v19 = vpop.eup %4224 }
0x27fd   :  { %vm2462_vm6 = vmor %vm2460_vm12, %vm2461_vm1  ;;  %v2438_v24 = vadd.f32 1.0, %v4225_v19  ;;  %v5231_v19 = vrot.slane %v5177_v59, 2 }
0x27fe   :  { %v2457_v7 = vsub.f32 1.0, %v2456_v0 }
0x27ff   :  { %4226 = vrcp.f32 %v2438_v24  ;;  %v2451_v51 = vand.u32 2147483648, %v2438_v24  ;;  %vm2445_vm10 = vweird.f32 %v2438_v24  ;;  %v2449_v29 = vand.u32 2147483647, %v2438_v24 }
0x2800   :  { %v2458_v6 = vmul.f32 %v4223_v53, %v2457_v7 }
0x2801   :  { %v2452_v33 = vor.u32 1.1754944e-38, %v2451_v51  ;;  %vm2450_vm13 = vcmp.eq.f32.partialorder %v2449_v29, 8.507059e+37 }
0x2802   :  { %v2459_v10 = vadd.f32 %v4223_v53, %v2458_v6 }
0x2804   :  { %v2463_v15 = vsel %vm2462_vm6, %v4223_v53, %v2459_v10 }
0x2805   :  { %v2468_v21 = vsel %vm2465_vm2, %v2467_v3, %v2463_v15  ;;  %v4227_v45 = vpop.eup %4226 }
0x2806   :  { %v2507_v16 = vmul.f32 %v2503_v11, %v2468_v21  ;;  %v2441_v17 = vmul.f32 %v4227_v45, %v2438_v24  ;;  %vm2446_vm9 = vweird.f32 %v4227_v45  ;;  %v2491_v39 = vsub.f32 1.0, %v2468_v21 }
0x2807   :  { %vm2447_vm11 = vmor %vm2445_vm10, %vm2446_vm9 }
0x2808   :  { %v2442_v30 = vsub.f32 1.0, %v2441_v17 }
0x280a   :  { %v2443_v31 = vmul.f32 %v4227_v45, %v2442_v30 }
0x280c   :  { %v2444_v23 = vadd.f32 %v4227_v45, %v2443_v31 }
0x280e   :  { %v2448_v35 = vsel %vm2447_vm11, %v4227_v45, %v2444_v23 }
0x280f   :  { %v2453_v54 = vsel %vm2450_vm13, %v2452_v33, %v2448_v35 }
0x2810   :  { %v2490_v26 = vsub.f32 1.0, %v2453_v54  ;;  %v2506_v50 = vmul.f32 %v2502_v42, %v2453_v54 }
0x2842   :  { %v2473_v25 = vpop.permute.xlu2 %2472 }
0x2843   :  { %v2477_v36 = vmul.f32 %v2473_v25, %v2468_v21 }
0x2845   :  { %2482 = vrot.lane.b32.xlu1 %v2477_v36, %s4393_s23 }
0x285c   :  { %v2471_v9 = vpop.permute.xlu1 %2470 }
0x285d   :  { %v2476_v20 = vmul.f32 %v2471_v9, %v2453_v54 }
0x285f   :  { %2480 = vrot.lane.b32.xlu0 %v2476_v20, %s4393_s23 }
0x28b7   :  { %v2483_v37 = vpop.permute.xlu1 %2482 }
0x28b8   :  { %v2487_v27 = vadd.f32 %v2483_v37, %v5177_v59 }
0x28ba   :  { %4228 = vtanh.f32 %v2487_v27 }
0x28c0   :  { %v4229_v58 = vpop.eup %4228 }
0x28c1   :  { %2496 = vrot.lane.b32.xlu0 %v4229_v58, %s4395_s26 }
0x28d1   :  { %v2481_v47 = vpop.permute.xlu0 %2480 }
0x28d2   :  { %v2486_v13 = vadd.f32 %v2481_v47, %v5174_v57 }
0x28d4   :  { %4230 = vtanh.f32 %v2486_v13 }
0x28da   :  { %v4231_v12 = vpop.eup %4230 }
0x28db   :  { %2494 = vrot.lane.b32.xlu2 %v4231_v12, %s4395_s26 }
0x2933   :  { %v2497_v41 = vpop.permute.xlu0 %2496 }
0x2934   :  { %v2501_v44 = vmul.f32 %v2497_v41, %v2491_v39 }
0x2935   :  { %v2495_v46 = vpop.permute.xlu2 %2494 }
0x2936   :  { %v5212_v48 = vadd.f32 %v2507_v16, %v2501_v44  ;;  %v2500_v14 = vmul.f32 %v2495_v46, %v2490_v26 }
0x2938   :  { %v2508_v5 = vadd.f32 %v2506_v50, %v2500_v14  ;;  %v2513_v22 = vperm.slane %v5212_v48, 1  ;;  %v3945_v46 = vrot.slane %v5212_v48, 9 }
0x293a   :  { %v2512_v40 = vperm.slane %v2508_v5, 1  ;;  %v3944_v21 = vrot.slane %v2508_v5, 9 }
0x293c   :  { %v5216_v57 = vsel %vm403_vm8, %v2513_v22, %v2512_v40 }
0x293d   :  { %2515 = vrot.lane.b32.xlu1 %v5216_v57, %s4395_s26 }
0x29af   :  { %v2516_v55 = vpop.permute.xlu1 %2515 }
0x29b0   :  { %3941 = vmatmul.msk.f32.vlgmr.msrb.gmra.mxu2 %vm284_vm5, %v2516_v55 }
0x29b1   :  { %3970 = vmatpush.msk.msrb.mxu2 %vm288_vm4, %v5046_v43 }
0x2a33   :  { %v2536_v52 = vpop.f32.mrf.mxu2 }
0x2a34   :  { %v2537_v60 = vadd.f32 %v5082_v62, %v2536_v52 }
0x2a36   :  { %v2543_v61 = vadd.f32 %v2537_v60, %v5224_v1  ;;  %2583 = vrot.lane.b32.xlu2 %v2537_v60, %s4392_s0  ;;  %v2540_v63 = vrot.slane %v2537_v60, 1 }
0x2a38   :  { %v3942_v2 = vmul.f32 -1.442695, %v2543_v61  ;;  %2585 = vrot.lane.b32.xlu0 %v2540_v63, %s4392_s0  ;;  %v2544_v24 = vadd.f32 %v2540_v63, %v5231_v19 }
0x2a3a   :  { %4232 = vpow2.f32 %v3942_v2  ;;  %v3943_v25 = vmul.f32 -1.442695, %v2544_v24 }
0x2a40   :  { %v4233_v53 = vpop.eup %4232 }
0x2a41   :  { %v2551_v0 = vadd.f32 1.0, %v4233_v53 }
0x2a43   :  { %4234 = vrcp.f32 %v2551_v0  ;;  %v2564_v8 = vand.u32 2147483648, %v2551_v0  ;;  %v2562_v3 = vand.u32 2147483647, %v2551_v0  ;;  %vm2558_vm15 = vweird.f32 %v2551_v0 }
0x2a44   :  { %4236 = vpow2.f32 %v3943_v25 }
0x2a45   :  { %v2565_v15 = vor.u32 1.1754944e-38, %v2564_v8  ;;  %vm2563_vm1 = vcmp.eq.f32.partialorder %v2562_v3, 8.507059e+37 }
0x2a49   :  { %v4235_v7 = vpop.eup %4234 }
0x2a4a   :  { %v2554_v4 = vmul.f32 %v4235_v7, %v2551_v0  ;;  %vm2559_vm14 = vweird.f32 %v4235_v7  ;;  %v4237_v36 = vpop.eup %4236 }
0x2a4b   :  { %vm2560_vm3 = vmor %vm2558_vm15, %vm2559_vm14  ;;  %v2552_v45 = vadd.f32 1.0, %v4237_v36 }
0x2a4c   :  { %v2555_v6 = vsub.f32 1.0, %v2554_v4 }
0x2a4d   :  { %4238 = vrcp.f32 %v2552_v45  ;;  %v2579_v33 = vand.u32 2147483648, %v2552_v45  ;;  %vm2573_vm6 = vweird.f32 %v2552_v45  ;;  %v2577_v9 = vand.u32 2147483647, %v2552_v45 }
0x2a4e   :  { %v2556_v10 = vmul.f32 %v4235_v7, %v2555_v6 }
0x2a4f   :  { %v2580_v20 = vor.u32 1.1754944e-38, %v2579_v33  ;;  %vm2578_vm9 = vcmp.eq.f32.partialorder %v2577_v9, 8.507059e+37 }
0x2a50   :  { %v2557_v11 = vadd.f32 %v4235_v7, %v2556_v10 }
0x2a52   :  { %v2561_v16 = vsel %vm2560_vm3, %v4235_v7, %v2557_v11 }
0x2a53   :  { %v2566_v56 = vsel %vm2563_vm1, %v2565_v15, %v2561_v16  ;;  %v4239_v31 = vpop.eup %4238 }
0x2a54   :  { %v2621_v18 = vmul.f32 %v3944_v21, %v2566_v56  ;;  %v2569_v23 = vmul.f32 %v4239_v31, %v2552_v45  ;;  %vm2574_vm12 = vweird.f32 %v4239_v31  ;;  %v2603_v44 = vsub.f32 1.0, %v2566_v56 }
0x2a55   :  { %vm2575_vm2 = vmor %vm2573_vm6, %vm2574_vm12 }
0x2a56   :  { %v2570_v51 = vsub.f32 1.0, %v2569_v23 }
0x2a58   :  { %v2571_v29 = vmul.f32 %v4239_v31, %v2570_v51 }
0x2a5a   :  { %v2572_v35 = vadd.f32 %v4239_v31, %v2571_v29 }
0x2a5c   :  { %v2576_v54 = vsel %vm2575_vm2, %v4239_v31, %v2572_v35 }
0x2a5d   :  { %v2581_v27 = vsel %vm2578_vm9, %v2580_v20, %v2576_v54 }
0x2a5e   :  { %v2604_v14 = vsub.f32 1.0, %v2581_v27  ;;  %v2622_v40 = vmul.f32 %v3945_v46, %v2581_v27 }
0x2a90   :  { %v2584_v17 = vpop.permute.xlu2 %2583 }
0x2a91   :  { %v2589_v30 = vmul.f32 %v2584_v17, %v2566_v56 }
0x2a93   :  { %2593 = vrot.lane.b32.xlu1 %v2589_v30, %s4393_s23 }
0x2aaa   :  { %v2586_v37 = vpop.permute.xlu0 %2585 }
0x2aab   :  { %v2590_v58 = vmul.f32 %v2586_v37, %v2581_v27 }
0x2aad   :  { %2595 = vrot.lane.b32.xlu2 %v2590_v58, %s4393_s23 }
0x2b05   :  { %v2594_v47 = vpop.permute.xlu1 %2593 }
0x2b06   :  { %v2599_v13 = vadd.f32 %v2594_v47, %v5224_v1 }
0x2b07   :  { %v2596_v12 = vpop.permute.xlu2 %2595 }
0x2b08   :  { %4240 = vtanh.f32 %v2599_v13  ;;  %v2600_v39 = vadd.f32 %v2596_v12, %v5231_v19 }
0x2b0a   :  { %4242 = vtanh.f32 %v2600_v39 }
0x2b0e   :  { %v4241_v41 = vpop.eup %4240 }
0x2b0f   :  { %2607 = vrot.lane.b32.xlu0 %v4241_v41, %s4395_s26 }
0x2b10   :  { %v4243_v42 = vpop.eup %4242 }
0x2b11   :  { %2609 = vrot.lane.b32.xlu1 %v4243_v42, %s4395_s26 }
0x2b81   :  { %v2608_v26 = vpop.permute.xlu0 %2607 }
0x2b82   :  { %v2613_v50 = vmul.f32 %v2608_v26, %v2603_v44 }
0x2b83   :  { %v2610_v5 = vpop.permute.xlu1 %2609 }
0x2b84   :  { %v5241_v22 = vadd.f32 %v2621_v18, %v2613_v50  ;;  %v2614_v55 = vmul.f32 %v2610_v5, %v2604_v14 }
0x2b86   :  { %v5243_v52 = vadd.f32 %v2622_v40, %v2614_v55  ;;  %v2627_v60 = vperm.slane %v5241_v22, 0  ;;  %v2730_v50 = vrot.slane %v5241_v22, 7  ;;  %v4360_v22 = vld [vmem:[%s5571_s8] sm:$0xf] }
0x2b88   :  { %v2628_v61 = vperm.slane %v5243_v52, 0  ;;  %v2731_v44 = vrot.slane %v5243_v52, 7 }
0x2b8a   :  { %v5248_v63 = vsel %vm403_vm8, %v2628_v61, %v2627_v60 }
0x2b8b   :  { %2630 = vrot.lane.b32.xlu2 %v5248_v63, %s4395_s26 }
0x2be5   :  { %v2631_v48 = vpop.permute.xlu2 %2630 }
0x2be6   :  { %3947 = vmatmul.msk.f32.vlgmr.msrb.gmra.mxu3 %vm284_vm5, %v2631_v48 }
0x2be7   :  { %3976 = vmatpush.msk.msrb.mxu3 %vm288_vm4, %v5046_v43 }
0x2c69   :  { %v2651_v2 = vpop.f32.mrf.mxu3 }
0x2c6a   :  { %v2652_v53 = vadd.f32 %v5082_v62, %v2651_v2 }
0x2c6c   :  { %v2655_v0 = vrot.slane %v2652_v53, 7  ;;  %2700 = vrot.lane.b32.xlu1 %v2652_v53, %s4392_s0  ;;  %v2659_v7 = vadd.f32 %v2652_v53, %v5231_v19 }
0x2c6e   :  { %2698 = vrot.lane.b32.xlu0 %v2655_v0, %s4392_s0  ;;  %v2658_v4 = vadd.f32 %v2655_v0, %v5224_v1  ;;  %v3949_v6 = vmul.f32 -1.442695, %v2659_v7  ;;  %v5284_v7 = vld [vmem:[%s5573_s10] ss:$0 sm:$0xff] }
0x2c70   :  { %v3948_v8 = vmul.f32 -1.442695, %v2658_v4  ;;  %4244 = vpow2.f32 %v3949_v6  ;;  %v5288_v6 = vrot.slane %v5177_v59, 4 }
0x2c72   :  { %4246 = vpow2.f32 %v3948_v8 }
0x2c76   :  { %v4245_v10 = vpop.eup %4244 }
0x2c77   :  { %v2667_v11 = vadd.f32 1.0, %v4245_v10 }
0x2c78   :  { %v4247_v3 = vpop.eup %4246 }
0x2c79   :  { %v2666_v43 = vadd.f32 1.0, %v4247_v3  ;;  %4248 = vrcp.f32 %v2667_v11  ;;  %v2694_v45 = vand.u32 2147483648, %v2667_v11  ;;  %vm2688_vm11 = vweird.f32 %v2667_v11 }
0x2c7a   :  { %v2692_v17 = vand.u32 2147483647, %v2667_v11 }
0x2c7b   :  { %4250 = vrcp.f32 %v2666_v43  ;;  %v2679_v31 = vand.u32 2147483648, %v2666_v43  ;;  %vm2673_vm15 = vweird.f32 %v2666_v43  ;;  %v2677_v51 = vand.u32 2147483647, %v2666_v43 }
0x2c7c   :  { %v2695_v29 = vor.u32 1.1754944e-38, %v2694_v45  ;;  %vm2693_vm1 = vcmp.eq.f32.partialorder %v2692_v17, 8.507059e+37 }
0x2c7d   :  { %v2680_v54 = vor.u32 1.1754944e-38, %v2679_v31  ;;  %vm2678_vm12 = vcmp.eq.f32.partialorder %v2677_v51, 8.507059e+37  ;;  %v5294_v31 = vrot.slane %v5092_v34, 6 }
0x2c7f   :  { %v4249_v62 = vpop.eup %4248 }
0x2c80   :  { %v2684_v21 = vmul.f32 %v4249_v62, %v2667_v11  ;;  %vm2689_vm10 = vweird.f32 %v4249_v62 }
0x2c81   :  { %v4251_v15 = vpop.eup %4250  ;;  %vm2690_vm14 = vmor %vm2688_vm11, %vm2689_vm10 }
0x2c82   :  { %v2669_v16 = vmul.f32 %v4251_v15, %v2666_v43  ;;  %v2685_v56 = vsub.f32 1.0, %v2684_v21  ;;  %vm2674_vm13 = vweird.f32 %v4251_v15 }
0x2c83   :  { %vm2675_vm3 = vmor %vm2673_vm15, %vm2674_vm13 }
0x2c84   :  { %v2670_v18 = vsub.f32 1.0, %v2669_v16  ;;  %v2686_v24 = vmul.f32 %v4249_v62, %v2685_v56 }
0x2c86   :  { %v2671_v25 = vmul.f32 %v4251_v15, %v2670_v18  ;;  %v2687_v36 = vadd.f32 %v4249_v62, %v2686_v24 }
0x2c88   :  { %v2672_v30 = vadd.f32 %v4251_v15, %v2671_v25  ;;  %v2691_v23 = vsel %vm2690_vm14, %v4249_v62, %v2687_v36 }
0x2c89   :  { %v2696_v9 = vsel %vm2693_vm1, %v2695_v29, %v2691_v23 }
0x2c8a   :  { %v2676_v35 = vsel %vm2675_vm3, %v4251_v15, %v2672_v30  ;;  %v2719_v26 = vsub.f32 1.0, %v2696_v9  ;;  %v2735_v14 = vmul.f32 %v2731_v44, %v2696_v9 }
0x2c8b   :  { %v2681_v27 = vsel %vm2678_vm12, %v2680_v54, %v2676_v35 }
0x2c8c   :  { %v2734_v60 = vmul.f32 %v2730_v50, %v2681_v27 }
0x2cde   :  { %v2701_v33 = vpop.permute.xlu1 %2700 }
0x2cdf   :  { %v2705_v20 = vmul.f32 %v2701_v33, %v2696_v9 }
0x2ce0   :  { %v2699_v37 = vpop.permute.xlu0 %2698 }
0x2ce1   :  { %v2704_v58 = vmul.f32 %v2699_v37, %v2681_v27  ;;  %2710 = vrot.lane.b32.xlu0 %v2705_v20, %s4393_s23 }
0x2ce3   :  { %2708 = vrot.lane.b32.xlu2 %v2704_v58, %s4393_s23 }
0x2d3d   :  { %v2709_v47 = vpop.permute.xlu2 %2708 }
0x2d3e   :  { %v2714_v13 = vadd.f32 %v2709_v47, %v5224_v1  ;;  %v2718_v1 = vsub.f32 1.0, %v2681_v27 }
0x2d40   :  { %4252 = vtanh.f32 %v2714_v13 }
0x2d46   :  { %v4253_v12 = vpop.eup %4252 }
0x2d47   :  { %2722 = vrot.lane.b32.xlu1 %v4253_v12, %s4395_s26 }
0x2d53   :  { %v2711_v39 = vpop.permute.xlu0 %2710 }
0x2d54   :  { %v2715_v41 = vadd.f32 %v2711_v39, %v5231_v19 }
0x2d56   :  { %4254 = vtanh.f32 %v2715_v41 }
0x2d5c   :  { %v4255_v42 = vpop.eup %4254 }
0x2d5d   :  { %2724 = vrot.lane.b32.xlu2 %v4255_v42, %s4395_s26 }
0x2db7   :  { %v2725_v46 = vpop.permute.xlu2 %2724 }
0x2db8   :  { %v2729_v5 = vmul.f32 %v2725_v46, %v2719_v26 }
0x2db9   :  { %v2723_v40 = vpop.permute.xlu1 %2722 }
0x2dba   :  { %v2737_v55 = vadd.f32 %v2735_v14, %v2729_v5  ;;  %v2728_v61 = vmul.f32 %v2723_v40, %v2718_v1 }
0x2dbc   :  { %v5268_v48 = vadd.f32 %v2734_v60, %v2728_v61  ;;  %v2741_v19 = vperm.slane %v2737_v55, 1  ;;  %v3955_v36 = vrot.slane %v2737_v55, 9 }
0x2dbe   :  { %v2740_v2 = vperm.slane %v5268_v48, 1  ;;  %v3954_v1 = vrot.slane %v5268_v48, 9 }
0x2dc0   :  { %v5272_v53 = vsel %vm403_vm8, %v2741_v19, %v2740_v2 }
0x2dc1   :  { %2743 = vrot.lane.b32.xlu0 %v5272_v53, %s4395_s26 }
0x2e33   :  { %v2744_v52 = vpop.permute.xlu0 %2743 }
0x2e34   :  { %3951 = vmatmul.msk.f32.vlgmr.msrb.gmra.mxu1 %vm284_vm5, %v2744_v52 }
0x2e35   :  { %3986 = vmatpush.msk.msrb.mxu1 %vm288_vm4, %v4360_v22 }
0x2eb1   :  { %v2764_v0 = vpop.f32.mrf.mxu1 }
0x2eb2   :  { %v2765_v4 = vadd.f32 %v5284_v7, %v2764_v0 }
0x2eb4   :  { %v2768_v8 = vrot.slane %v2765_v4, 1  ;;  %2811 = vrot.lane.b32.xlu1 %v2765_v4, %s4392_s0  ;;  %v2771_v23 = vadd.f32 %v2765_v4, %v5294_v31 }
0x2eb6   :  { %v2772_v10 = vadd.f32 %v2768_v8, %v5288_v6  ;;  %2813 = vrot.lane.b32.xlu2 %v2768_v8, %s4392_s0  ;;  %v3952_v51 = vmul.f32 -1.442695, %v2771_v23 }
0x2eb8   :  { %v3953_v3 = vmul.f32 -1.442695, %v2772_v10 }
0x2eba   :  { %4256 = vpow2.f32 %v3953_v3 }
0x2ec0   :  { %v4257_v11 = vpop.eup %4256 }
0x2ec1   :  { %v2780_v43 = vadd.f32 1.0, %v4257_v11 }
0x2ec3   :  { %4258 = vrcp.f32 %v2780_v43  ;;  %v2807_v16 = vand.u32 2147483648, %v2780_v43  ;;  %v2805_v18 = vand.u32 2147483647, %v2780_v43  ;;  %vm2801_vm6 = vweird.f32 %v2780_v43 }
0x2ec4   :  { %4260 = vpow2.f32 %v3952_v51 }
0x2ec5   :  { %v2808_v25 = vor.u32 1.1754944e-38, %v2807_v16  ;;  %vm2806_vm9 = vcmp.eq.f32.partialorder %v2805_v18, 8.507059e+37 }
0x2ec9   :  { %v4259_v62 = vpop.eup %4258 }
0x2eca   :  { %v2797_v15 = vmul.f32 %v4259_v62, %v2780_v43  ;;  %vm2802_vm4 = vweird.f32 %v4259_v62  ;;  %v4261_v29 = vpop.eup %4260 }
0x2ecb   :  { %vm2803_vm2 = vmor %vm2801_vm6, %vm2802_vm4  ;;  %v2779_v35 = vadd.f32 1.0, %v4261_v29 }
0x2ecc   :  { %v2798_v21 = vsub.f32 1.0, %v2797_v15 }
0x2ecd   :  { %4262 = vrcp.f32 %v2779_v35  ;;  %v2792_v47 = vand.u32 2147483648, %v2779_v35  ;;  %vm2786_vm11 = vweird.f32 %v2779_v35  ;;  %v2790_v34 = vand.u32 2147483647, %v2779_v35 }
0x2ece   :  { %v2799_v56 = vmul.f32 %v4259_v62, %v2798_v21 }
0x2ecf   :  { %v2793_v12 = vor.u32 1.1754944e-38, %v2792_v47  ;;  %vm2791_vm14 = vcmp.eq.f32.partialorder %v2790_v34, 8.507059e+37 }
0x2ed0   :  { %v2800_v24 = vadd.f32 %v4259_v62, %v2799_v56 }
0x2ed2   :  { %v2804_v45 = vsel %vm2803_vm2, %v4259_v62, %v2800_v24 }
0x2ed3   :  { %v2809_v17 = vsel %vm2806_vm9, %v2808_v25, %v2804_v45  ;;  %v4263_v33 = vpop.eup %4262 }
0x2ed4   :  { %v2850_v30 = vmul.f32 %v3955_v36, %v2809_v17  ;;  %v2782_v20 = vmul.f32 %v4263_v33, %v2779_v35  ;;  %vm2787_vm10 = vweird.f32 %v4263_v33  ;;  %v2832_v19 = vsub.f32 1.0, %v2809_v17 }
0x2ed5   :  { %vm2788_vm13 = vmor %vm2786_vm11, %vm2787_vm10 }
0x2ed6   :  { %v2783_v37 = vsub.f32 1.0, %v2782_v20 }
0x2ed8   :  { %v2784_v27 = vmul.f32 %v4263_v33, %v2783_v37 }
0x2eda   :  { %v2785_v58 = vadd.f32 %v4263_v33, %v2784_v27 }
0x2edc   :  { %v2789_v13 = vsel %vm2788_vm13, %v4263_v33, %v2785_v58 }
0x2edd   :  { %v2794_v41 = vsel %vm2791_vm14, %v2793_v12, %v2789_v13 }
0x2ede   :  { %v2831_v40 = vsub.f32 1.0, %v2794_v41  ;;  %v2849_v60 = vmul.f32 %v3954_v1, %v2794_v41 }
0x2f10   :  { %v2814_v9 = vpop.permute.xlu2 %2813 }
0x2f11   :  { %v2818_v54 = vmul.f32 %v2814_v9, %v2809_v17 }
0x2f13   :  { %2823 = vrot.lane.b32.xlu1 %v2818_v54, %s4393_s23 }
0x2f26   :  { %v2812_v39 = vpop.permute.xlu1 %2811 }
0x2f27   :  { %v2817_v42 = vmul.f32 %v2812_v39, %v2794_v41 }
0x2f29   :  { %2821 = vrot.lane.b32.xlu0 %v2817_v42, %s4393_s23 }
0x2f85   :  { %v2824_v44 = vpop.permute.xlu1 %2823 }
0x2f86   :  { %v2828_v26 = vadd.f32 %v2824_v44, %v5288_v6 }
0x2f88   :  { %4264 = vtanh.f32 %v2828_v26 }
0x2f8e   :  { %v4265_v46 = vpop.eup %4264 }
0x2f8f   :  { %2837 = vrot.lane.b32.xlu0 %v4265_v46, %s4395_s26 }
0x2f9b   :  { %v2822_v50 = vpop.permute.xlu0 %2821 }
0x2f9c   :  { %v2827_v14 = vadd.f32 %v2822_v50, %v5294_v31 }
0x2f9e   :  { %4266 = vtanh.f32 %v2827_v14 }
0x2fa4   :  { %v4267_v5 = vpop.eup %4266 }
0x2fa5   :  { %2835 = vrot.lane.b32.xlu2 %v4267_v5, %s4395_s26 }
0x2fff   :  { %v2836_v55 = vpop.permute.xlu2 %2835 }
0x3000   :  { %v2841_v61 = vmul.f32 %v2836_v55, %v2831_v40 }
0x3001   :  { %v2838_v2 = vpop.permute.xlu0 %2837 }
0x3002   :  { %v2851_v52 = vadd.f32 %v2849_v60, %v2841_v61  ;;  %v2842_v22 = vmul.f32 %v2838_v2, %v2832_v19 }
0x3004   :  { %v5304_v0 = vadd.f32 %v2850_v30, %v2842_v22  ;;  %v2855_v4 = vperm.slane %v2851_v52, 0  ;;  %v2958_v23 = vrot.slane %v2851_v52, 7 }
0x3006   :  { %v2856_v8 = vperm.slane %v5304_v0, 0  ;;  %v2959_v61 = vrot.slane %v5304_v0, 7 }
0x3008   :  { %v5308_v10 = vsel %vm403_vm8, %v2856_v8, %v2855_v4 }
0x3009   :  { %2858 = vrot.lane.b32.xlu1 %v5308_v10, %s4395_s26 }
0x307b   :  { %v2859_v48 = vpop.permute.xlu1 %2858 }
0x307c   :  { %3957 = vmatmul.msk.f32.vlgmr.msra.gmra.mxu2 %vm284_vm5, %v2859_v48 }
0x30ff   :  { %v2879_v3 = vpop.f32.mrf.mxu2 }
0x3100   :  { %v2880_v11 = vadd.f32 %v5284_v7, %v2879_v3 }
0x3102   :  { %v2883_v43 = vrot.slane %v2880_v11, 7  ;;  %2928 = vrot.lane.b32.xlu0 %v2880_v11, %s4392_s0  ;;  %v2887_v33 = vadd.f32 %v2880_v11, %v5288_v6 }
0x3104   :  { %v2886_v62 = vadd.f32 %v2883_v43, %v5294_v31  ;;  %2926 = vrot.lane.b32.xlu2 %v2883_v43, %s4392_s0  ;;  %v3959_v9 = vmul.f32 -1.442695, %v2887_v33 }
0x3106   :  { %v3958_v15 = vmul.f32 -1.442695, %v2886_v62 }
0x3108   :  { %4268 = vpow2.f32 %v3958_v15 }
0x310e   :  { %v4269_v21 = vpop.eup %4268 }
0x310f   :  { %v2894_v16 = vadd.f32 1.0, %v4269_v21 }
0x3111   :  { %4270 = vrcp.f32 %v2894_v16  ;;  %v2907_v25 = vand.u32 2147483648, %v2894_v16  ;;  %v2905_v45 = vand.u32 2147483647, %v2894_v16  ;;  %vm2901_vm3 = vweird.f32 %v2894_v16 }
0x3112   :  { %4272 = vpow2.f32 %v3959_v9 }
0x3113   :  { %v2908_v30 = vor.u32 1.1754944e-38, %v2907_v25  ;;  %vm2906_vm12 = vcmp.eq.f32.partialorder %v2905_v45, 8.507059e+37 }
0x3117   :  { %v4271_v56 = vpop.eup %4270 }
0x3118   :  { %v2897_v18 = vmul.f32 %v4271_v56, %v2894_v16  ;;  %vm2902_vm15 = vweird.f32 %v4271_v56  ;;  %v4273_v54 = vpop.eup %4272  ;;  %v5341_v16 = vrot.slane %v5177_v59, 6 }
0x3119   :  { %vm2903_vm1 = vmor %vm2901_vm3, %vm2902_vm15  ;;  %v2895_v20 = vadd.f32 1.0, %v4273_v54 }
0x311a   :  { %v2898_v24 = vsub.f32 1.0, %v2897_v18 }
0x311b   :  { %4274 = vrcp.f32 %v2895_v20  ;;  %v2922_v39 = vand.u32 2147483648, %v2895_v20  ;;  %vm2916_vm6 = vweird.f32 %v2895_v20  ;;  %v2920_v41 = vand.u32 2147483647, %v2895_v20 }
0x311c   :  { %v2899_v36 = vmul.f32 %v4271_v56, %v2898_v24 }
0x311d   :  { %v2923_v44 = vor.u32 1.1754944e-38, %v2922_v39  ;;  %vm2921_vm9 = vcmp.eq.f32.partialorder %v2920_v41, 8.507059e+37 }
0x311e   :  { %v2900_v17 = vadd.f32 %v4271_v56, %v2899_v36 }
0x3120   :  { %v2904_v51 = vsel %vm2903_vm1, %v4271_v56, %v2900_v17 }
0x3121   :  { %v2909_v29 = vsel %vm2906_vm12, %v2908_v30, %v2904_v51  ;;  %v4275_v37 = vpop.eup %4274 }
0x3122   :  { %v2962_v35 = vmul.f32 %v2958_v23, %v2909_v29  ;;  %v2912_v47 = vmul.f32 %v4275_v37, %v2895_v20  ;;  %vm2917_vm4 = vweird.f32 %v4275_v37  ;;  %v2946_v4 = vsub.f32 1.0, %v2909_v29 }
0x3123   :  { %vm2918_vm2 = vmor %vm2916_vm6, %vm2917_vm4 }
0x3124   :  { %v2913_v34 = vsub.f32 1.0, %v2912_v47 }
0x3126   :  { %v2914_v13 = vmul.f32 %v4275_v37, %v2913_v34 }
0x3128   :  { %v2915_v12 = vadd.f32 %v4275_v37, %v2914_v13 }
0x312a   :  { %v2919_v42 = vsel %vm2918_vm2, %v4275_v37, %v2915_v12 }
0x312b   :  { %v2924_v46 = vsel %vm2921_vm9, %v2923_v44, %v2919_v42 }
0x312c   :  { %v2947_v19 = vsub.f32 1.0, %v2924_v46  ;;  %v2963_v52 = vmul.f32 %v2959_v61, %v2924_v46 }
0x315e   :  { %v2927_v27 = vpop.permute.xlu2 %2926 }
0x315f   :  { %v2932_v58 = vmul.f32 %v2927_v27, %v2909_v29 }
0x3161   :  { %2936 = vrot.lane.b32.xlu1 %v2932_v58, %s4393_s23 }
0x3174   :  { %v2929_v26 = vpop.permute.xlu0 %2928 }
0x3175   :  { %v2933_v50 = vmul.f32 %v2929_v26, %v2924_v46 }
0x3177   :  { %2938 = vrot.lane.b32.xlu2 %v2933_v50, %s4393_s23 }
0x31d1   :  { %v2939_v14 = vpop.permute.xlu2 %2938 }
0x31d2   :  { %v2943_v5 = vadd.f32 %v2939_v14, %v5288_v6 }
0x31d3   :  { %v2937_v1 = vpop.permute.xlu1 %2936 }
0x31d4   :  { %4276 = vtanh.f32 %v2943_v5  ;;  %v2942_v40 = vadd.f32 %v2937_v1, %v5294_v31 }
0x31d6   :  { %4278 = vtanh.f32 %v2942_v40 }
0x31da   :  { %v4277_v55 = vpop.eup %4276 }
0x31db   :  { %2952 = vrot.lane.b32.xlu1 %v4277_v55, %s4395_s26 }
0x31dc   :  { %v4279_v60 = vpop.eup %4278 }
0x31dd   :  { %2950 = vrot.lane.b32.xlu0 %v4279_v60, %s4395_s26 }
0x324d   :  { %v2953_v2 = vpop.permute.xlu1 %2952 }
0x324e   :  { %v2957_v22 = vmul.f32 %v2953_v2, %v2947_v19 }
0x324f   :  { %v2951_v8 = vpop.permute.xlu0 %2950 }
0x3250   :  { %v5325_v6 = vadd.f32 %v2963_v52, %v2957_v22  ;;  %v2956_v48 = vmul.f32 %v2951_v8, %v2946_v4 }
0x3252   :  { %v5327_v3 = vadd.f32 %v2962_v35, %v2956_v48  ;;  %v2969_v31 = vperm.slane %v5325_v6, 1  ;;  %v3965_v22 = vrot.slane %v5325_v6, 9 }
0x3254   :  { %v2968_v11 = vperm.slane %v5327_v3, 1  ;;  %v3964_v19 = vrot.slane %v5327_v3, 9 }
0x3256   :  { %v5332_v43 = vsel %vm403_vm8, %v2969_v31, %v2968_v11 }
0x3257   :  { %2971 = vrot.lane.b32.xlu2 %v5332_v43, %s4395_s26 }
0x32b1   :  { %v2972_v0 = vpop.permute.xlu2 %2971 }
0x32b2   :  { %3961 = vmatmul.msk.f32.vlgmr.msra.gmra.mxu3 %vm284_vm5, %v2972_v0 }
0x3335   :  { %v2992_v62 = vpop.f32.mrf.mxu3 }
0x3336   :  { %v2993_v15 = vadd.f32 %v5284_v7, %v2992_v62 }
0x3338   :  { %v2996_v21 = vrot.slane %v2993_v15, 1  ;;  %3039 = vrot.lane.b32.xlu0 %v2993_v15, %s4392_s0  ;;  %v2999_v56 = vadd.f32 %v2993_v15, %v5106_v38 }
0x333a   :  { %3041 = vrot.lane.b32.xlu1 %v2996_v21, %s4392_s0  ;;  %v3000_v18 = vadd.f32 %v2996_v21, %v5341_v16  ;;  %v3962_v24 = vmul.f32 -1.442695, %v2999_v56 }
0x333c   :  { %v3963_v25 = vmul.f32 -1.442695, %v3000_v18  ;;  %4280 = vpow2.f32 %v3962_v24 }
0x333e   :  { %4282 = vpow2.f32 %v3963_v25 }
0x3342   :  { %v4281_v36 = vpop.eup %4280 }
0x3343   :  { %v3007_v17 = vadd.f32 1.0, %v4281_v36 }
0x3344   :  { %v4283_v45 = vpop.eup %4282 }
0x3345   :  { %v3008_v30 = vadd.f32 1.0, %v4283_v45  ;;  %4284 = vrcp.f32 %v3007_v17  ;;  %v3020_v37 = vand.u32 2147483648, %v3007_v17  ;;  %vm3014_vm11 = vweird.f32 %v3007_v17 }
0x3346   :  { %v3018_v27 = vand.u32 2147483647, %v3007_v17 }
0x3347   :  { %4286 = vrcp.f32 %v3008_v30  ;;  %v3035_v47 = vand.u32 2147483648, %v3008_v30  ;;  %vm3029_vm15 = vweird.f32 %v3008_v30  ;;  %v3033_v13 = vand.u32 2147483647, %v3008_v30 }
0x3348   :  { %v3021_v12 = vor.u32 1.1754944e-38, %v3020_v37  ;;  %vm3019_vm1 = vcmp.eq.f32.partialorder %v3018_v27, 8.507059e+37 }
0x3349   :  { %v3036_v44 = vor.u32 1.1754944e-38, %v3035_v47  ;;  %vm3034_vm12 = vcmp.eq.f32.partialorder %v3033_v13, 8.507059e+37 }
0x334b   :  { %v4285_v23 = vpop.eup %4284 }
0x334c   :  { %v3010_v29 = vmul.f32 %v4285_v23, %v3007_v17  ;;  %vm3015_vm10 = vweird.f32 %v4285_v23 }
0x334d   :  { %v4287_v51 = vpop.eup %4286  ;;  %vm3016_vm14 = vmor %vm3014_vm11, %vm3015_vm10 }
0x334e   :  { %v3025_v35 = vmul.f32 %v4287_v51, %v3008_v30  ;;  %v3011_v59 = vsub.f32 1.0, %v3010_v29  ;;  %vm3030_vm13 = vweird.f32 %v4287_v51 }
0x334f   :  { %vm3031_vm3 = vmor %vm3029_vm15, %vm3030_vm13 }
0x3350   :  { %v3026_v33 = vsub.f32 1.0, %v3025_v35  ;;  %v3012_v9 = vmul.f32 %v4285_v23, %v3011_v59 }
0x3352   :  { %v3027_v54 = vmul.f32 %v4287_v51, %v3026_v33  ;;  %v3013_v20 = vadd.f32 %v4285_v23, %v3012_v9 }
0x3354   :  { %v3028_v58 = vadd.f32 %v4287_v51, %v3027_v54  ;;  %v3017_v34 = vsel %vm3016_vm14, %v4285_v23, %v3013_v20 }
0x3355   :  { %v3022_v42 = vsel %vm3019_vm1, %v3021_v12, %v3017_v34 }
0x3356   :  { %v3032_v39 = vsel %vm3031_vm3, %v4287_v51, %v3028_v58  ;;  %v3059_v2 = vsub.f32 1.0, %v3022_v42  ;;  %v3077_v4 = vmul.f32 %v3964_v19, %v3022_v42 }
0x3357   :  { %v3037_v50 = vsel %vm3034_vm12, %v3036_v44, %v3032_v39 }
0x3358   :  { %v3060_v48 = vsub.f32 1.0, %v3037_v50  ;;  %v3078_v0 = vmul.f32 %v3965_v22, %v3037_v50 }
0x33aa   :  { %v3040_v41 = vpop.permute.xlu0 %3039 }
0x33ab   :  { %v3045_v26 = vmul.f32 %v3040_v41, %v3022_v42 }
0x33ac   :  { %v3042_v46 = vpop.permute.xlu1 %3041 }
0x33ad   :  { %v3046_v14 = vmul.f32 %v3042_v46, %v3037_v50  ;;  %3049 = vrot.lane.b32.xlu2 %v3045_v26, %s4393_s23 }
0x33af   :  { %3051 = vrot.lane.b32.xlu0 %v3046_v14, %s4393_s23 }
0x3407   :  { %v3050_v5 = vpop.permute.xlu2 %3049 }
0x3408   :  { %v3055_v1 = vadd.f32 %v3050_v5, %v5106_v38 }
0x340a   :  { %4288 = vtanh.f32 %v3055_v1 }
0x3410   :  { %v4289_v40 = vpop.eup %4288 }
0x3411   :  { %3063 = vrot.lane.b32.xlu1 %v4289_v40, %s4395_s26 }
0x3421   :  { %v3052_v55 = vpop.permute.xlu0 %3051 }
0x3422   :  { %v3056_v60 = vadd.f32 %v3052_v55, %v5341_v16 }
0x3424   :  { %4290 = vtanh.f32 %v3056_v60 }
0x342a   :  { %v4291_v61 = vpop.eup %4290 }
0x342b   :  { %3065 = vrot.lane.b32.xlu2 %v4291_v61, %s4395_s26 }
0x3483   :  { %v3064_v52 = vpop.permute.xlu1 %3063 }
0x3484   :  { %v3069_v8 = vmul.f32 %v3064_v52, %v3059_v2 }
0x3485   :  { %v3066_v31 = vpop.permute.xlu2 %3065 }
0x3486   :  { %v5353_v11 = vadd.f32 %v3077_v4, %v3069_v8  ;;  %v3070_v62 = vmul.f32 %v3066_v31, %v3060_v48  ;;  %v1978_v48 = vld.sshfl [vmem:[#allocation1 + $0x20] sm:$0xff pattern:$0x73625140] }
0x3488   :  { %v3080_v15 = vadd.f32 %v3078_v0, %v3070_v62  ;;  %v3083_v21 = vperm.slane %v5353_v11, 0  ;;  %v3186_v62 = vrot.slane %v5353_v11, 7 }
0x348a   :  { %v3084_v56 = vperm.slane %v3080_v15, 0  ;;  %v3187_v20 = vrot.slane %v3080_v15, 7 }
0x348c   :  { %v5357_v18 = vsel %vm403_vm8, %v3084_v56, %v3083_v21 }
0x348d   :  { %3086 = vrot.lane.b32.xlu0 %v5357_v18, %s4395_s26 }
0x34ff   :  { %v3087_v3 = vpop.permute.xlu0 %3086 }
0x3500   :  { %3967 = vmatmul.msk.f32.vlgmr.msra.gmra.mxu1 %vm284_vm5, %v3087_v3 }
0x357d   :  { %v3107_v6 = vpop.f32.mrf.mxu1 }
0x357e   :  { %v3108_v24 = vadd.f32 %v5284_v7, %v3107_v6 }
0x3580   :  { %v3111_v25 = vrot.slane %v3108_v24, 7  ;;  %v3115_v36 = vadd.f32 %v3108_v24, %v5341_v16  ;;  %3156 = vrot.lane.b32.xlu2 %v3108_v24, %s4392_s0 }
0x3582   :  { %v3969_v45 = vmul.f32 -1.442695, %v3115_v36  ;;  %3154 = vrot.lane.b32.xlu1 %v3111_v25, %s4392_s0  ;;  %v3114_v47 = vadd.f32 %v3111_v25, %v5106_v38 }
0x3584   :  { %4292 = vpow2.f32 %v3969_v45  ;;  %v3968_v34 = vmul.f32 -1.442695, %v3114_v47 }
0x358a   :  { %v4293_v17 = vpop.eup %4292 }
0x358b   :  { %v3123_v30 = vadd.f32 1.0, %v4293_v17 }
0x358d   :  { %4294 = vrcp.f32 %v3123_v30  ;;  %v3150_v35 = vand.u32 2147483648, %v3123_v30  ;;  %v3148_v33 = vand.u32 2147483647, %v3123_v30  ;;  %vm3144_vm6 = vweird.f32 %v3123_v30 }
0x358e   :  { %4296 = vpow2.f32 %v3968_v34 }
0x358f   :  { %v3151_v54 = vor.u32 1.1754944e-38, %v3150_v35  ;;  %vm3149_vm9 = vcmp.eq.f32.partialorder %v3148_v33, 8.507059e+37  ;;  %v5392_v35 = vrot.slane %v5106_v38, 2 }
0x3593   :  { %v4295_v23 = vpop.eup %4294 }
0x3594   :  { %v3140_v51 = vmul.f32 %v4295_v23, %v3123_v30  ;;  %vm3145_vm4 = vweird.f32 %v4295_v23  ;;  %v4297_v13 = vpop.eup %4296 }
0x3595   :  { %vm3146_vm2 = vmor %vm3144_vm6, %vm3145_vm4  ;;  %v3122_v12 = vadd.f32 1.0, %v4297_v13 }
0x3596   :  { %v3141_v29 = vsub.f32 1.0, %v3140_v51 }
0x3597   :  { %4298 = vrcp.f32 %v3122_v12  ;;  %v3135_v14 = vand.u32 2147483648, %v3122_v12  ;;  %vm3129_vm11 = vweird.f32 %v3122_v12  ;;  %v3133_v5 = vand.u32 2147483647, %v3122_v12 }
0x3598   :  { %v3142_v59 = vmul.f32 %v4295_v23, %v3141_v29 }
0x3599   :  { %v3136_v40 = vor.u32 1.1754944e-38, %v3135_v14  ;;  %vm3134_vm14 = vcmp.eq.f32.partialorder %v3133_v5, 8.507059e+37 }
0x359a   :  { %v3143_v9 = vadd.f32 %v4295_v23, %v3142_v59  ;;  %v4362_v59 = vld [vmem:[%s5572_s9] ss:$0 sm:$0xff] }
0x359c   :  { %v3147_v37 = vsel %vm3146_vm2, %v4295_v23, %v3143_v9 }
0x359d   :  { %v3152_v27 = vsel %vm3149_vm9, %v3151_v54, %v3147_v37  ;;  %v4299_v42 = vpop.eup %4298 }
0x359e   :  { %v3191_v58 = vmul.f32 %v3187_v20, %v3152_v27  ;;  %v3125_v44 = vmul.f32 %v4299_v42, %v3122_v12  ;;  %vm3130_vm10 = vweird.f32 %v4299_v42  ;;  %v3175_v31 = vsub.f32 1.0, %v3152_v27 }
0x359f   :  { %vm3131_vm13 = vmor %vm3129_vm11, %vm3130_vm10 }
0x35a0   :  { %v3126_v26 = vsub.f32 1.0, %v3125_v44 }
0x35a2   :  { %v3127_v46 = vmul.f32 %v4299_v42, %v3126_v26 }
0x35a4   :  { %v3128_v50 = vadd.f32 %v4299_v42, %v3127_v46 }
0x35a6   :  { %v3132_v1 = vsel %vm3131_vm13, %v4299_v42, %v3128_v50 }
0x35a7   :  { %v3137_v60 = vsel %vm3134_vm14, %v3136_v40, %v3132_v1 }
0x35a8   :  { %v3190_v3 = vmul.f32 %v3186_v62, %v3137_v60 }
0x35da   :  { %v3157_v39 = vpop.permute.xlu2 %3156 }
0x35db   :  { %v3161_v41 = vmul.f32 %v3157_v39, %v3152_v27 }
0x35dd   :  { %3166 = vrot.lane.b32.xlu1 %v3161_v41, %s4393_s23 }
0x35f4   :  { %v3155_v55 = vpop.permute.xlu1 %3154 }
0x35f5   :  { %v3160_v61 = vmul.f32 %v3155_v55, %v3137_v60 }
0x35f7   :  { %3164 = vrot.lane.b32.xlu0 %v3160_v61, %s4393_s23 }
0x364f   :  { %v3167_v19 = vpop.permute.xlu1 %3166 }
0x3650   :  { %v3171_v2 = vadd.f32 %v3167_v19, %v5341_v16  ;;  %v3174_v16 = vsub.f32 1.0, %v3137_v60 }
0x3652   :  { %4300 = vtanh.f32 %v3171_v2 }
0x3658   :  { %v4301_v52 = vpop.eup %4300 }
0x3659   :  { %3180 = vrot.lane.b32.xlu0 %v4301_v52, %s4395_s26 }
0x3669   :  { %v3165_v22 = vpop.permute.xlu0 %3164 }
0x366a   :  { %v3170_v4 = vadd.f32 %v3165_v22, %v5106_v38 }
0x366c   :  { %4302 = vtanh.f32 %v3170_v4 }
0x3672   :  { %v4303_v8 = vpop.eup %4302 }
0x3673   :  { %3178 = vrot.lane.b32.xlu2 %v4303_v8, %s4395_s26 }
0x367b   :  { %1985 = vrot.lane.b32.xlu2 %v1978_v48, %s4395_s26 }
0x36cb   :  { %v3181_v0 = vpop.permute.xlu0 %3180 }
0x36cc   :  { %v3185_v15 = vmul.f32 %v3181_v0, %v3175_v31 }
0x36cd   :  { %v3179_v21 = vpop.permute.xlu2 %3178 }
0x36ce   :  { %v5375_v56 = vadd.f32 %v3191_v58, %v3185_v15  ;;  %v3184_v6 = vmul.f32 %v3179_v21, %v3174_v16 }
0x36d0   :  { %v5377_v24 = vadd.f32 %v3190_v3, %v3184_v6  ;;  %v3197_v25 = vperm.slane %v5375_v56, 1 }
0x36d2   :  { %v3196_v36 = vperm.slane %v5377_v24, 1  ;;  %v3974_v6 = vrot.slane %v5377_v24, 9 }
0x36d4   :  { %v5382_v45 = vsel %vm403_vm8, %v3197_v25, %v3196_v36 }
0x36d5   :  { %v1986_v17 = vpop.permute.xlu2 %1985  ;;  %3199 = vrot.lane.b32.xlu1 %v5382_v45, %s4395_s26 }
0x36d6   :  { %3920 = vmatmul.msk.f32.gmra.mxu0 %vm284_vm5, %v1986_v17  ;;  %v3975_v17 = vrot.slane %v5375_v56, 9 }
0x3747   :  { %v3200_v11 = vpop.permute.xlu1 %3199 }
0x3748   :  { %3971 = vmatmul.msk.f32.vlgmr.msrb.gmra.mxu2 %vm284_vm5, %v3200_v11 }
0x3753   :  { %v2024_v29 = vpop.f32.mrf.mxu0 }
0x3754   :  { %v5397_v33 = vadd.f32 %v4362_v59, %v2024_v29 }
0x37cb   :  { %v3220_v30 = vpop.f32.mrf.mxu2 }
0x37cc   :  { %v3221_v23 = vadd.f32 %v5284_v7, %v3220_v30 }
0x37ce   :  { %v3224_v51 = vrot.slane %v3221_v23, 1  ;;  %3267 = vrot.lane.b32.xlu0 %v3221_v23, %s4392_s0  ;;  %v3227_v9 = vadd.f32 %v3221_v23, %v5392_v35 }
0x37d0   :  { %3269 = vrot.lane.b32.xlu1 %v3224_v51, %s4392_s0  ;;  %v3228_v54 = vadd.f32 %v3224_v51, %v5397_v33  ;;  %v3972_v20 = vmul.f32 -1.442695, %v3227_v9 }
0x37d2   :  { %v3973_v37 = vmul.f32 -1.442695, %v3228_v54  ;;  %4304 = vpow2.f32 %v3972_v20 }
0x37d4   :  { %4306 = vpow2.f32 %v3973_v37 }
0x37d8   :  { %v4305_v27 = vpop.eup %4304 }
0x37d9   :  { %v3235_v47 = vadd.f32 1.0, %v4305_v27 }
0x37da   :  { %v4307_v58 = vpop.eup %4306 }
0x37db   :  { %v3236_v34 = vadd.f32 1.0, %v4307_v58  ;;  %4308 = vrcp.f32 %v3235_v47  ;;  %v3248_v14 = vand.u32 2147483648, %v3235_v47  ;;  %vm3242_vm3 = vweird.f32 %v3235_v47 }
0x37dc   :  { %v3246_v5 = vand.u32 2147483647, %v3235_v47 }
0x37dd   :  { %4310 = vrcp.f32 %v3236_v34  ;;  %v3263_v40 = vand.u32 2147483648, %v3236_v34  ;;  %vm3257_vm4 = vweird.f32 %v3236_v34  ;;  %v3261_v60 = vand.u32 2147483647, %v3236_v34 }
0x37de   :  { %v3249_v61 = vor.u32 1.1754944e-38, %v3248_v14  ;;  %vm3247_vm2 = vcmp.eq.f32.partialorder %v3246_v5, 8.507059e+37 }
0x37df   :  { %v3264_v22 = vor.u32 1.1754944e-38, %v3263_v40  ;;  %vm3262_vm9 = vcmp.eq.f32.partialorder %v3261_v60, 8.507059e+37 }
0x37e1   :  { %v4309_v13 = vpop.eup %4308 }
0x37e2   :  { %v3238_v39 = vmul.f32 %v4309_v13, %v3235_v47  ;;  %vm3243_vm15 = vweird.f32 %v4309_v13 }
0x37e3   :  { %v4311_v12 = vpop.eup %4310  ;;  %vm3244_vm12 = vmor %vm3242_vm3, %vm3243_vm15 }
0x37e4   :  { %v3253_v41 = vmul.f32 %v4311_v12, %v3236_v34  ;;  %v3239_v42 = vsub.f32 1.0, %v3238_v39  ;;  %vm3258_vm1 = vweird.f32 %v4311_v12 }
0x37e5   :  { %vm3259_vm6 = vmor %vm3257_vm4, %vm3258_vm1 }
0x37e6   :  { %v3254_v44 = vsub.f32 1.0, %v3253_v41  ;;  %v3240_v26 = vmul.f32 %v4309_v13, %v3239_v42 }
0x37e8   :  { %v3255_v46 = vmul.f32 %v4311_v12, %v3254_v44  ;;  %v3241_v50 = vadd.f32 %v4309_v13, %v3240_v26 }
0x37ea   :  { %v3256_v1 = vadd.f32 %v4311_v12, %v3255_v46  ;;  %v3245_v55 = vsel %vm3244_vm12, %v4309_v13, %v3241_v50 }
0x37eb   :  { %v3250_v52 = vsel %vm3247_vm2, %v3249_v61, %v3245_v55 }
0x37ec   :  { %v3260_v19 = vsel %vm3259_vm6, %v4311_v12, %v3256_v1  ;;  %v3287_v25 = vsub.f32 1.0, %v3250_v52  ;;  %v3305_v11 = vmul.f32 %v3974_v6, %v3250_v52 }
0x37ed   :  { %v3265_v48 = vsel %vm3262_vm9, %v3264_v22, %v3260_v19 }
0x37ee   :  { %v3288_v23 = vsub.f32 1.0, %v3265_v48  ;;  %v3306_v59 = vmul.f32 %v3975_v17, %v3265_v48 }
0x3840   :  { %v3268_v2 = vpop.permute.xlu0 %3267 }
0x3841   :  { %v3273_v4 = vmul.f32 %v3268_v2, %v3250_v52 }
0x3842   :  { %v3270_v8 = vpop.permute.xlu1 %3269 }
0x3843   :  { %v3274_v31 = vmul.f32 %v3270_v8, %v3265_v48  ;;  %3277 = vrot.lane.b32.xlu2 %v3273_v4, %s4393_s23 }
0x3845   :  { %3279 = vrot.lane.b32.xlu0 %v3274_v31, %s4393_s23 }
0x389d   :  { %v3278_v0 = vpop.permute.xlu2 %3277 }
0x389e   :  { %v3283_v62 = vadd.f32 %v3278_v0, %v5392_v35 }
0x38a0   :  { %4312 = vtanh.f32 %v3283_v62 }
0x38a6   :  { %v4313_v15 = vpop.eup %4312 }
0x38a7   :  { %3291 = vrot.lane.b32.xlu1 %v4313_v15, %s4395_s26 }
0x38b7   :  { %v3280_v16 = vpop.permute.xlu0 %3279 }
0x38b8   :  { %v3284_v21 = vadd.f32 %v3280_v16, %v5397_v33 }
0x38ba   :  { %4314 = vtanh.f32 %v3284_v21 }
0x38c0   :  { %v4315_v3 = vpop.eup %4314 }
0x38c1   :  { %3293 = vrot.lane.b32.xlu2 %v4315_v3, %s4395_s26 }
0x3919   :  { %v3292_v36 = vpop.permute.xlu1 %3291 }
0x391a   :  { %v3297_v30 = vmul.f32 %v3292_v36, %v3287_v25 }
0x391b   :  { %v3294_v51 = vpop.permute.xlu2 %3293 }
0x391c   :  { %v5409_v29 = vadd.f32 %v3305_v11, %v3297_v30  ;;  %v3298_v9 = vmul.f32 %v3294_v51, %v3288_v23 }
0x391e   :  { %v3308_v54 = vadd.f32 %v3306_v59, %v3298_v9  ;;  %v3311_v20 = vperm.slane %v5409_v29, 0 }
0x3920   :  { %v3312_v37 = vperm.slane %v3308_v54, 0  ;;  %v3415_v1 = vrot.slane %v3308_v54, 7 }
0x3922   :  { %v5413_v27 = vsel %vm403_vm8, %v3312_v37, %v3311_v20  ;;  %v3414_v20 = vrot.slane %v5409_v29, 7 }
0x3923   :  { %3314 = vrot.lane.b32.xlu0 %v5413_v27, %s4395_s26 }
0x3995   :  { %v3315_v24 = vpop.permute.xlu0 %3314 }
0x3996   :  { %3977 = vmatmul.msk.f32.vlgmr.msrb.gmra.mxu3 %vm284_vm5, %v3315_v24 }
0x3a19   :  { %v3335_v56 = vpop.f32.mrf.mxu3 }
0x3a1a   :  { %v3336_v58 = vadd.f32 %v5284_v7, %v3335_v56 }
0x3a1c   :  { %v3339_v47 = vrot.slane %v3336_v58, 7  ;;  %v3343_v34 = vadd.f32 %v3336_v58, %v5397_v33  ;;  %3384 = vrot.lane.b32.xlu2 %v3336_v58, %s4392_s0 }
0x3a1e   :  { %v3979_v13 = vmul.f32 -1.442695, %v3343_v34  ;;  %3382 = vrot.lane.b32.xlu1 %v3339_v47, %s4392_s0  ;;  %v3342_v61 = vadd.f32 %v3339_v47, %v5392_v35 }
0x3a20   :  { %4316 = vpow2.f32 %v3979_v13  ;;  %v3978_v19 = vmul.f32 -1.442695, %v3342_v61 }
0x3a26   :  { %v4317_v12 = vpop.eup %4316 }
0x3a27   :  { %v3351_v39 = vadd.f32 1.0, %v4317_v12 }
0x3a29   :  { %4318 = vrcp.f32 %v3351_v39  ;;  %v3378_v26 = vand.u32 2147483648, %v3351_v39  ;;  %v3376_v50 = vand.u32 2147483647, %v3351_v39  ;;  %vm3372_vm11 = vweird.f32 %v3351_v39 }
0x3a2a   :  { %4320 = vpow2.f32 %v3978_v19 }
0x3a2b   :  { %v3379_v5 = vor.u32 1.1754944e-38, %v3378_v26  ;;  %vm3377_vm14 = vcmp.eq.f32.partialorder %v3376_v50, 8.507059e+37 }
0x3a2f   :  { %v4319_v41 = vpop.eup %4318 }
0x3a30   :  { %v3368_v42 = vmul.f32 %v4319_v41, %v3351_v39  ;;  %vm3373_vm10 = vweird.f32 %v4319_v41  ;;  %v4321_v2 = vpop.eup %4320 }
0x3a31   :  { %vm3374_vm13 = vmor %vm3372_vm11, %vm3373_vm10  ;;  %v3350_v52 = vadd.f32 1.0, %v4321_v2 }
0x3a32   :  { %v3369_v44 = vsub.f32 1.0, %v3368_v42  ;;  %v5440_v42 = vrot.slane %v5106_v38, 4 }
0x3a33   :  { %4322 = vrcp.f32 %v3350_v52  ;;  %v3363_v15 = vand.u32 2147483648, %v3350_v52  ;;  %vm3357_vm3 = vweird.f32 %v3350_v52  ;;  %v3361_v16 = vand.u32 2147483647, %v3350_v52 }
0x3a34   :  { %v3370_v46 = vmul.f32 %v4319_v41, %v3369_v44 }
0x3a35   :  { %v3364_v3 = vor.u32 1.1754944e-38, %v3363_v15  ;;  %vm3362_vm12 = vcmp.eq.f32.partialorder %v3361_v16, 8.507059e+37 }
0x3a36   :  { %v3371_v14 = vadd.f32 %v4319_v41, %v3370_v46 }
0x3a38   :  { %v3375_v40 = vsel %vm3374_vm13, %v4319_v41, %v3371_v14 }
0x3a39   :  { %v3380_v55 = vsel %vm3377_vm14, %v3379_v5, %v3375_v40  ;;  %v4323_v8 = vpop.eup %4322 }
0x3a3a   :  { %v3419_v60 = vmul.f32 %v3415_v1, %v3380_v55  ;;  %v3353_v48 = vmul.f32 %v4323_v8, %v3350_v52  ;;  %vm3358_vm15 = vweird.f32 %v4323_v8  ;;  %v3403_v9 = vsub.f32 1.0, %v3380_v55 }
0x3a3b   :  { %vm3359_vm1 = vmor %vm3357_vm3, %vm3358_vm15 }
0x3a3c   :  { %v3354_v31 = vsub.f32 1.0, %v3353_v48 }
0x3a3e   :  { %v3355_v0 = vmul.f32 %v4323_v8, %v3354_v31 }
0x3a40   :  { %v3356_v62 = vadd.f32 %v4323_v8, %v3355_v0 }
0x3a42   :  { %v3360_v21 = vsel %vm3359_vm1, %v4323_v8, %v3356_v62  ;;  %v5447_v8 = vrot.slane %v5397_v33, 2 }
0x3a43   :  { %v3365_v25 = vsel %vm3362_vm12, %v3364_v3, %v3360_v21 }
0x3a44   :  { %v3402_v24 = vsub.f32 1.0, %v3365_v25  ;;  %v3418_v47 = vmul.f32 %v3414_v20, %v3365_v25 }
0x3a76   :  { %v3385_v22 = vpop.permute.xlu2 %3384 }
0x3a77   :  { %v3389_v4 = vmul.f32 %v3385_v22, %v3380_v55 }
0x3a79   :  { %3394 = vrot.lane.b32.xlu1 %v3389_v4, %s4393_s23 }
0x3a90   :  { %v3383_v6 = vpop.permute.xlu1 %3382 }
0x3a91   :  { %v3388_v36 = vmul.f32 %v3383_v6, %v3365_v25 }
0x3a93   :  { %3392 = vrot.lane.b32.xlu0 %v3388_v36, %s4393_s23 }
0x3aeb   :  { %v3395_v17 = vpop.permute.xlu1 %3394 }
0x3aec   :  { %v3399_v11 = vadd.f32 %v3395_v17, %v5397_v33 }
0x3aee   :  { %4324 = vtanh.f32 %v3399_v11 }
0x3af4   :  { %v4325_v30 = vpop.eup %4324 }
0x3af5   :  { %3408 = vrot.lane.b32.xlu0 %v4325_v30, %s4395_s26 }
0x3b05   :  { %v3393_v23 = vpop.permute.xlu0 %3392 }
0x3b06   :  { %v3398_v51 = vadd.f32 %v3393_v23, %v5392_v35 }
0x3b08   :  { %4326 = vtanh.f32 %v3398_v51 }
0x3b0e   :  { %v4327_v59 = vpop.eup %4326 }
0x3b0f   :  { %3406 = vrot.lane.b32.xlu2 %v4327_v59, %s4395_s26 }
0x3b67   :  { %v3409_v54 = vpop.permute.xlu0 %3408 }
0x3b68   :  { %v3413_v37 = vmul.f32 %v3409_v54, %v3403_v9 }
0x3b69   :  { %v3407_v56 = vpop.permute.xlu2 %3406 }
0x3b6a   :  { %v5430_v58 = vadd.f32 %v3419_v60, %v3413_v37  ;;  %v3412_v34 = vmul.f32 %v3407_v56, %v3402_v24 }
0x3b6c   :  { %v3420_v13 = vadd.f32 %v3418_v47, %v3412_v34  ;;  %v3425_v12 = vperm.slane %v5430_v58, 1 }
0x3b6e   :  { %v3424_v39 = vperm.slane %v3420_v13, 1  ;;  %v3984_v2 = vrot.slane %v3420_v13, 9  ;;  %v3985_v13 = vrot.slane %v5430_v58, 9 }
0x3b70   :  { %v5434_v35 = vsel %vm403_vm8, %v3425_v12, %v3424_v39 }
0x3b71   :  { %3427 = vrot.lane.b32.xlu1 %v5434_v35, %s4395_s26 }
0x3be3   :  { %v3428_v41 = vpop.permute.xlu1 %3427 }
0x3be4   :  { %3981 = vmatmul.msk.f32.vlgmr.msra.gmra.mxu0 %vm284_vm5, %v3428_v41 }
0x3c61   :  { %v3448_v29 = vpop.f32.mrf.mxu0 }
0x3c62   :  { %v3449_v44 = vadd.f32 %v5284_v7, %v3448_v29 }
0x3c64   :  { %v3452_v26 = vrot.slane %v3449_v44, 1  ;;  %v3455_v46 = vadd.f32 %v3449_v44, %v5440_v42  ;;  %3495 = vrot.lane.b32.xlu2 %v3449_v44, %s4392_s0 }
0x3c66   :  { %v3982_v50 = vmul.f32 -1.442695, %v3455_v46  ;;  %3497 = vrot.lane.b32.xlu0 %v3452_v26, %s4392_s0  ;;  %v3456_v48 = vadd.f32 %v3452_v26, %v5447_v8 }
0x3c68   :  { %4328 = vpow2.f32 %v3982_v50  ;;  %v3983_v31 = vmul.f32 -1.442695, %v3456_v48 }
0x3c6e   :  { %v4329_v14 = vpop.eup %4328 }
0x3c6f   :  { %v3463_v5 = vadd.f32 1.0, %v4329_v14 }
0x3c71   :  { %4330 = vrcp.f32 %v3463_v5  ;;  %v3476_v60 = vand.u32 2147483648, %v3463_v5  ;;  %v3474_v61 = vand.u32 2147483647, %v3463_v5  ;;  %vm3470_vm6 = vweird.f32 %v3463_v5 }
0x3c72   :  { %4332 = vpow2.f32 %v3983_v31 }
0x3c73   :  { %v3477_v19 = vor.u32 1.1754944e-38, %v3476_v60  ;;  %vm3475_vm9 = vcmp.eq.f32.partialorder %v3474_v61, 8.507059e+37 }
0x3c77   :  { %v4331_v1 = vpop.eup %4330 }
0x3c78   :  { %v3466_v40 = vmul.f32 %v4331_v1, %v3463_v5  ;;  %vm3471_vm4 = vweird.f32 %v4331_v1  ;;  %v4333_v0 = vpop.eup %4332 }
0x3c79   :  { %vm3472_vm2 = vmor %vm3470_vm6, %vm3471_vm4  ;;  %v3464_v62 = vadd.f32 1.0, %v4333_v0 }
0x3c7a   :  { %v3467_v55 = vsub.f32 1.0, %v3466_v40  ;;  %v4363_v40 = vld [vmem:[%s5573_s10] ss:$0 sm:$0xff]  ;;  %s4396_s10 = smov 28  }
0x3c7b   :  { %4334 = vrcp.f32 %v3464_v62  ;;  %v3491_v17 = vand.u32 2147483648, %v3464_v62  ;;  %vm3485_vm11 = vweird.f32 %v3464_v62  ;;  %v3489_v33 = vand.u32 2147483647, %v3464_v62 }
0x3c7c   :  { %v3468_v38 = vmul.f32 %v4331_v1, %v3467_v55 }
0x3c7d   :  { %v3492_v30 = vor.u32 1.1754944e-38, %v3491_v17  ;;  %vm3490_vm14 = vcmp.eq.f32.partialorder %v3489_v33, 8.507059e+37 }
0x3c7e   :  { %v3469_v7 = vadd.f32 %v4331_v1, %v3468_v38 }
0x3c80   :  { %v3473_v52 = vsel %vm3472_vm2, %v4331_v1, %v3469_v7 }
0x3c81   :  { %v3478_v22 = vsel %vm3475_vm9, %v3477_v19, %v3473_v52  ;;  %v4335_v21 = vpop.eup %4334 }
0x3c82   :  { %v3533_v4 = vmul.f32 %v3984_v2, %v3478_v22  ;;  %v3481_v3 = vmul.f32 %v4335_v21, %v3464_v62  ;;  %vm3486_vm10 = vweird.f32 %v4335_v21  ;;  %v3515_v47 = vsub.f32 1.0, %v3478_v22 }
0x3c83   :  { %vm3487_vm13 = vmor %vm3485_vm11, %vm3486_vm10  ;;  %vm5596_vm10 = vcmask 130048   ;;  %vm3698_vm11 = vcmask 162816  }
0x3c84   :  { %v3482_v6 = vsub.f32 1.0, %v3481_v3 }
0x3c86   :  { %v3483_v25 = vmul.f32 %v4335_v21, %v3482_v6 }
0x3c88   :  { %v3484_v36 = vadd.f32 %v4335_v21, %v3483_v25 }
0x3c8a   :  { %v3488_v11 = vsel %vm3487_vm13, %v4335_v21, %v3484_v36  ;;  %vm3700_vm13 = vcmask 195584  }
0x3c8b   :  { %v3493_v51 = vsel %vm3490_vm14, %v3492_v30, %v3488_v11  ;;  %vm3702_vm14 = vcmask 228352  }
0x3c8c   :  { %v3516_v39 = vsub.f32 1.0, %v3493_v51  ;;  %v3534_v44 = vmul.f32 %v3985_v13, %v3493_v51 }
0x3cbe   :  { %v3496_v15 = vpop.permute.xlu2 %3495 }
0x3cbf   :  { %v3501_v16 = vmul.f32 %v3496_v15, %v3478_v22 }
0x3cc1   :  { %3505 = vrot.lane.b32.xlu1 %v3501_v16, %s4393_s23 }
0x3cd8   :  { %v3498_v23 = vpop.permute.xlu0 %3497 }
0x3cd9   :  { %v3502_v59 = vmul.f32 %v3498_v23, %v3493_v51 }
0x3cdb   :  { %3507 = vrot.lane.b32.xlu2 %v3502_v59, %s4393_s23 }
0x3d33   :  { %v3506_v9 = vpop.permute.xlu1 %3505 }
0x3d34   :  { %v3511_v54 = vadd.f32 %v3506_v9, %v5440_v42 }
0x3d35   :  { %v3508_v20 = vpop.permute.xlu2 %3507 }
0x3d36   :  { %4336 = vtanh.f32 %v3511_v54  ;;  %v3512_v37 = vadd.f32 %v3508_v20, %v5447_v8 }
0x3d38   :  { %4338 = vtanh.f32 %v3512_v37 }
0x3d3c   :  { %v4337_v24 = vpop.eup %4336 }
0x3d3d   :  { %3519 = vrot.lane.b32.xlu0 %v4337_v24, %s4395_s26 }
0x3d3e   :  { %v4339_v56 = vpop.eup %4338 }
0x3d3f   :  { %3521 = vrot.lane.b32.xlu1 %v4339_v56, %s4395_s26 }
0x3daf   :  { %v3520_v34 = vpop.permute.xlu0 %3519 }
0x3db0   :  { %v3525_v12 = vmul.f32 %v3520_v34, %v3515_v47 }
0x3db1   :  { %v3522_v41 = vpop.permute.xlu1 %3521 }
0x3db2   :  { %v5457_v29 = vadd.f32 %v3533_v4, %v3525_v12  ;;  %v3526_v26 = vmul.f32 %v3522_v41, %v3516_v39 }
0x3db4   :  { %v5459_v46 = vadd.f32 %v3534_v44, %v3526_v26  ;;  %v3539_v50 = vperm.slane %v5457_v29, 0 }
0x3db6   :  { %v3540_v14 = vperm.slane %v5459_v46, 0 }
0x3db8   :  { %v5464_v5 = vsel %vm403_vm8, %v3540_v14, %v3539_v50 }
0x3db9   :  { %3542 = vrot.lane.b32.xlu2 %v5464_v5, %s4395_s26 }
0x3e13   :  { %v3543_v58 = vpop.permute.xlu2 %3542 }
0x3e14   :  { %3987 = vmatmul.msk.f32.vlgmr.msrb.gmra.mxu1 %vm284_vm5, %v3543_v58 }
0x3e91   :  { %v3563_v1 = vpop.f32.mrf.mxu1 }
0x3e92   :  { %v3564_v55 = vadd.f32 %v4363_v40, %v3563_v1  ;;  %v3717_v1 = vld [vmem:[%s5576_s13 + $0x10] sm:$0xff]  ;;  %v3716_v40 = vld [vmem:[%s5576_s13 + $0x8] sm:$0xff] }
0x3e94   :  { %v3567_v60 = vrot.slane %v3564_v55, 7  ;;  %3612 = vrot.lane.b32.xlu1 %v3564_v55, %s4392_s0  ;;  %v3571_v38 = vadd.f32 %v3564_v55, %v5447_v8 }
0x3e96   :  { %3610 = vrot.lane.b32.xlu0 %v3567_v60, %s4392_s0  ;;  %v3570_v61 = vadd.f32 %v3567_v60, %v5440_v42  ;;  %v3989_v7 = vmul.f32 -1.442695, %v3571_v38  ;;  %s4397_s0 = smov 40   ;;  %v3715_v38 = vld [vmem:[%s5576_s13] sm:$0xff] }
0x3e98   :  { %v3988_v19 = vmul.f32 -1.442695, %v3570_v61  ;;  %4340 = vpow2.f32 %v3989_v7  ;;  %v3714_v61 = vld [vmem:[%s5575_s12] sm:$0x3] }
0x3e99   :  { %v3779_v7 = vld [vmem:[%s5579_s16 + $0x20] sm:$0x3] }
0x3e9a   :  { %4342 = vpow2.f32 %v3988_v19  ;;  %v3778_v19 = vld [vmem:[%s5579_s16 + $0x18] sm:$0xff]  ;;  %3992 = vmatpush.msk.msrb.mxu0 %vm1908_vm0, %v3779_v7  ;;  %vm3705_vm0 = vcmask 293888  }
0x3e9c   :  { %3803 = vmatpush.msrb.mxu0 %v3778_v19 }
0x3e9e   :  { %v4341_v2 = vpop.eup %4340 }
0x3e9f   :  { %v3579_v22 = vadd.f32 1.0, %v4341_v2 }
0x3ea0   :  { %v4343_v52 = vpop.eup %4342 }
0x3ea1   :  { %v3578_v4 = vadd.f32 1.0, %v4343_v52  ;;  %4344 = vrcp.f32 %v3579_v22  ;;  %v3606_v25 = vand.u32 2147483648, %v3579_v22  ;;  %vm3600_vm3 = vweird.f32 %v3579_v22 }
0x3ea2   :  { %v3604_v36 = vand.u32 2147483647, %v3579_v22  ;;  %v3693_v52 = vsel %vm284_vm5, %v5129_v32, %v5163_v49  ;;  %vm3707_vm5 = vcmask 326656  }
0x3ea3   :  { %4346 = vrcp.f32 %v3578_v4  ;;  %v3591_v33 = vand.u32 2147483648, %v3578_v4  ;;  %vm3585_vm4 = vweird.f32 %v3578_v4  ;;  %v3589_v30 = vand.u32 2147483647, %v3578_v4 }
0x3ea4   :  { %v3607_v23 = vor.u32 1.1754944e-38, %v3606_v25  ;;  %vm3605_vm2 = vcmp.eq.f32.partialorder %v3604_v36, 8.507059e+37 }
0x3ea5   :  { %v3592_v54 = vor.u32 1.1754944e-38, %v3591_v33  ;;  %vm3590_vm9 = vcmp.eq.f32.partialorder %v3589_v30, 8.507059e+37 }
0x3ea7   :  { %v4345_v48 = vpop.eup %4344 }
0x3ea8   :  { %v3596_v0 = vmul.f32 %v4345_v48, %v3579_v22  ;;  %vm3601_vm15 = vweird.f32 %v4345_v48 }
0x3ea9   :  { %v4347_v31 = vpop.eup %4346  ;;  %vm3602_vm12 = vmor %vm3600_vm3, %vm3601_vm15  ;;  %vm5597_vm15 = vcmask 261120   ;;  %vm3712_vm3 = vcmask 424960  }
0x3eaa   :  { %v3581_v62 = vmul.f32 %v4347_v31, %v3578_v4  ;;  %v3597_v15 = vsub.f32 1.0, %v3596_v0  ;;  %vm3586_vm1 = vweird.f32 %v4347_v31 }
0x3eab   :  { %vm3587_vm6 = vmor %vm3585_vm4, %vm3586_vm1  ;;  %vm3746_vm1 = vcmask 457728   ;;  %vm3784_vm4 = vcmask 277504  }
0x3eac   :  { %v3582_v16 = vsub.f32 1.0, %v3581_v62  ;;  %v3598_v21 = vmul.f32 %v4345_v48, %v3597_v15 }
0x3eae   :  { %v3583_v3 = vmul.f32 %v4347_v31, %v3582_v16  ;;  %v3599_v6 = vadd.f32 %v4345_v48, %v3598_v21 }
0x3eb0   :  { %v3584_v17 = vadd.f32 %v4347_v31, %v3583_v3  ;;  %v3603_v11 = vsel %vm3602_vm12, %v4345_v48, %v3599_v6  ;;  %vm5598_vm12 = vcmask 392192  }
0x3eb1   :  { %v3608_v9 = vsel %vm3605_vm2, %v3607_v23, %v3603_v11 }
0x3eb2   :  { %v3588_v51 = vsel %vm3587_vm6, %v4347_v31, %v3584_v17  ;;  %vm3811_vm6 = vcmask 25600  }
0x3eb3   :  { %v3593_v24 = vsel %vm3590_vm9, %v3592_v54, %v3588_v51  ;;  %v3775_v54 = vld [vmem:[%s5579_s16] sm:$0xff] }
0x3f06   :  { %v3613_v59 = vpop.permute.xlu1 %3612 }
0x3f07   :  { %v3617_v20 = vmul.f32 %v3613_v59, %v3608_v9  ;;  %v3777_v59 = vld [vmem:[%s5579_s16 + $0x10] sm:$0xff] }
0x3f08   :  { %v3611_v37 = vpop.permute.xlu0 %3610  ;;  %3804 = vmatpush.msrb.mxu0 %v3777_v59 }
0x3f09   :  { %v3616_v56 = vmul.f32 %v3611_v37, %v3593_v24  ;;  %3622 = vrot.lane.b32.xlu0 %v3617_v20, %s4393_s23  ;;  %v4014_v37 = vld [vmem:[%s5578_s15] ss:$0 sm:$0xff]  ;;  %s4404_s15 = smov [#allocation2]  }
0x3f0b   :  { %3620 = vrot.lane.b32.xlu2 %v3616_v56, %s4393_s23 }
0x3f11   :  { %3652 = vrot.lane.b32.xlu0 %v5193_v28, %s4394_s24  ;;  %s4399_s24 = smov 12  }
0x3f19   :  { %3661 = vrot.lane.b32.xlu0 %v5272_v53, %s4390_s22  ;;  %s4398_s22 = smov 20  }
0x3f21   :  { %3670 = vrot.lane.b32.xlu0 %v5357_v18, %s4396_s10 }
0x3f29   :  { %3679 = vrot.lane.b32.xlu0 %v5434_v35, %s4397_s0  ;;  %v3642_v35 = vrot.slane %v5457_v29, 7  ;;  %v3722_v29 = vld [vmem:[%s5577_s14] sm:$0xff]  ;;  %s4403_s14 = smov 48  }
0x3f2a   :  { %3741 = vmatpush.msra.mxu2 %v3722_v29 }
0x3f2b   :  { %v3646_v41 = vmul.f32 %v3642_v35, %v3593_v24  ;;  %3990 = vmatmul.msk.f32.vlgmr.msra.gmra.mxu2 %vm214_vm7, %v3714_v61 }
0x3f65   :  { %v3621_v47 = vpop.permute.xlu2 %3620 }
0x3f66   :  { %v3626_v34 = vadd.f32 %v3621_v47, %v5440_v42 }
0x3f68   :  { %4348 = vtanh.f32 %v3626_v34  ;;  %v4015_v34 = vld [vmem:[%s5580_s17] ss:$0 sm:$0xff] }
0x3f6e   :  { %v4349_v13 = vpop.eup %4348 }
0x3f6f   :  { %3634 = vrot.lane.b32.xlu1 %v4349_v13, %s4395_s26 }
0x3f77   :  { %3655 = vrot.lane.b32.xlu1 %v5216_v57, %s4393_s23  ;;  %s4401_s23 = smov 24   ;;  %v3643_v57 = vrot.slane %v5459_v46, 7  ;;  %v3719_v46 = vld [vmem:[%s5576_s13 + $0x20] sm:$0xff] }
0x3f79   :  { %v3647_v42 = vmul.f32 %v3643_v57, %v3608_v9 }
0x3f7b   :  { %v3623_v28 = vpop.permute.xlu0 %3622 }
0x3f7c   :  { %v3627_v12 = vadd.f32 %v3623_v28, %v5447_v8  ;;  %v3630_v8 = vsub.f32 1.0, %v3593_v24 }
0x3f7e   :  { %4350 = vtanh.f32 %v3627_v12 }
0x3f7f   :  { %3664 = vrot.lane.b32.xlu1 %v5308_v10, %s4398_s22  ;;  %v3631_v10 = vsub.f32 1.0, %v3608_v9  ;;  %v3776_v9 = vld [vmem:[%s5579_s16 + $0x8] sm:$0xff]  ;;  %s3829_s16 = sshll.u32 %s4404_s15, 4  ;;  %s3830_s16 = int_to_ptr.vmem [resolvable:$true] %s3829_s16 }
0x3f80   :  { %3805 = vmatpush.msrb.mxu0 %v3776_v9 }
0x3f82   :  { %3806 = vmatpush.msrb.mxu0 %v3775_v54 }
0x3f83   :  { %v3653_v60 = vpop.permute.xlu0 %3652 }
0x3f84   :  { %v4351_v53 = vpop.eup %4350  ;;  %v3694_v4 = vsel %vm214_vm7, %v3693_v52, %v3653_v60  ;;  %vm3709_vm7 = vcmask 359424  }
0x3f85   :  { %3636 = vrot.lane.b32.xlu2 %v4351_v53, %s4395_s26 }
0x3f87   :  { %3673 = vrot.lane.b32.xlu1 %v5382_v45, %s4391_s2 }
0x3f8b   :  { %v3662_v48 = vpop.permute.xlu0 %3661 }
0x3f8d   :  { %3658 = vrot.lane.b32.xlu2 %v5248_v63, %s4399_s24 }
0x3f8f   :  { %3682 = vrot.lane.b32.xlu1 %v5464_v5, %s4400_s3  ;;  %v3718_v5 = vld [vmem:[%s5576_s13 + $0x18] sm:$0xff] }
0x3f93   :  { %v3671_v3 = vpop.permute.xlu0 %3670 }
0x3f95   :  { %3667 = vrot.lane.b32.xlu2 %v5332_v43, %s4401_s23  ;;  %v3721_v43 = vld [vmem:[%s5576_s13 + $0x30] sm:$0xff] }
0x3f96   :  { %3759 = vmatpush.msra.mxu3 %v3721_v43 }
0x3f9b   :  { %v3680_v33 = vpop.permute.xlu0 %3679 }
0x3f9d   :  { %3676 = vrot.lane.b32.xlu2 %v5413_v27, %s4402_s1  ;;  %v3720_v27 = vld [vmem:[%s5576_s13 + $0x28] sm:$0xff] }
0x3f9e   :  { %3760 = vmatpush.msra.mxu3 %v3720_v27 }
0x3fa0   :  { %3761 = vmatpush.msra.mxu3 %v3719_v46 }
0x3fa2   :  { %3762 = vmatpush.msra.mxu3 %v3718_v5 }
0x3fa4   :  { %3763 = vmatpush.msra.mxu3 %v3717_v1 }
0x3fa6   :  { %3764 = vmatpush.msra.mxu3 %v3716_v40 }
0x3fa8   :  { %3765 = vmatpush.msra.mxu3 %v3715_v38 }
0x3fae   :  { %v3743_v20 = vpop.f32.mrf.mxu2 }
0x3fdf   :  { %v3637_v18 = vpop.permute.xlu2 %3636 }
0x3fe0   :  { %v3641_v45 = vmul.f32 %v3637_v18, %v3631_v10 }
0x3fe1   :  { %v3635_v39 = vpop.permute.xlu1 %3634 }
0x3fe2   :  { %v3649_v63 = vadd.f32 %v3647_v42, %v3641_v45  ;;  %v3640_v44 = vmul.f32 %v3635_v39, %v3630_v8 }
0x3fe4   :  { %v3648_v26 = vadd.f32 %v3646_v41, %v3640_v44  ;;  %v3688_v50 = vperm.slane %v3649_v63, 1 }
0x3fe6   :  { %v3687_v14 = vperm.slane %v3648_v26, 1 }
0x3fe7   :  { %v3659_v2 = vpop.permute.xlu2 %3658 }
0x3fe8   :  { %v3689_v58 = vsel %vm403_vm8, %v3688_v50, %v3687_v14  ;;  %vm3695_vm8 = vcmask 97280  }
0x3fe9   :  { %3690 = vrot.lane.b32.xlu2 %v3689_v58, %s4403_s14  ;;  %v3656_v55 = vpop.permute.xlu1 %3655 }
0x3fea   :  { %v3696_v31 = vsel %vm3695_vm8, %v3694_v4, %v3656_v55 }
0x3feb   :  { %v3697_v0 = vsel %vm5596_vm10, %v3696_v31, %v3659_v2 }
0x3fec   :  { %v3699_v15 = vsel %vm3698_vm11, %v3697_v0, %v3662_v48 }
0x3fef   :  { %v3668_v62 = vpop.permute.xlu2 %3667 }
0x3ff1   :  { %v3665_v22 = vpop.permute.xlu1 %3664 }
0x3ff2   :  { %v3701_v16 = vsel %vm3700_vm13, %v3699_v15, %v3665_v22 }
0x3ff3   :  { %v3703_v6 = vsel %vm3702_vm14, %v3701_v16, %v3668_v62 }
0x3ff4   :  { %v3704_v32 = vsel %vm5597_vm15, %v3703_v6, %v3671_v3 }
0x3ff7   :  { %v3677_v25 = vpop.permute.xlu2 %3676 }
0x3ff9   :  { %v3674_v21 = vpop.permute.xlu1 %3673 }
0x3ffa   :  { %v3706_v49 = vsel %vm3705_vm0, %v3704_v32, %v3674_v21 }
0x3ffb   :  { %v3708_v36 = vsel %vm3707_vm5, %v3706_v49, %v3677_v25 }
0x3ffc   :  { %v3710_v11 = vsel %vm3709_vm7, %v3708_v36, %v3680_v33 }
0x4001   :  { %v3683_v17 = vpop.permute.xlu1 %3682 }
0x4002   :  { %v3711_v30 = vsel %vm5598_vm12, %v3710_v11, %v3683_v17 }
0x4043   :  { %v3691_v23 = vpop.permute.xlu2 %3690 }
0x4044   :  { %v3713_v51 = vsel %vm3712_vm3, %v3711_v30, %v3691_v23 }
0x4045   :  { %3991 = vmatmul.msk.f32.vlgmr.msra.gmra.mxu3 %vm3746_vm1, %v3713_v51 }
0x40c8   :  { %v3767_v24 = vpop.f32.mrf.mxu3 }
0x40c9   :  { %v3768_v56 = vadd.f32 %v3767_v24, %v3743_v20 }
0x40cb   :  { %v3774_v47 = vadd.f32 %v4014_v37, %v3768_v56 }
0x40cd   :  { %3993 = vmatmul.msk.f32.vlgmr.msrb.gmra.mxu0 %vm3784_vm4, %v3774_v47 }
0x414a   :  { %v3808_v13 = vpop.f32.mrf.mxu0 }
0x414b   :  { %v3809_v28 = vadd.f32 %v4015_v34, %v3808_v13 }
0x414d   :  { %v3812_v12 = vsel %vm3811_vm6, %v3809_v28, -inf }
0x414e   :  { %3813 = vmax.xlane.f32.xlu0 %v3812_v12 }
0x41c1   :  { %v3814_v53 = vpop.xlane.xlu0 %3813 }
0x41c2   :  { %v3815_v57 = vsub.f32 %v3809_v28, %v3814_v53 }
0x41c4   :  { %v3816_v10 = vmul.f32 1.442695, %v3815_v57 }
0x41c6   :  { %4352 = vpow2.f32 %v3816_v10 }
0x41cc   :  { %v4353_v18 = vpop.eup %4352 }
0x41cd   :  { %v3818_v35 = vsel %vm3811_vm6, %v4353_v18, 0.0 }
0x41ce   :  { %3819 = vadd.xlane.f32.xlu1 %v3818_v35 }
0x4241   :  { %v3820_v42 = vpop.xlane.xlu1 %3819 }
0x4242   :  { %4354 = vrcp.f32 %v3820_v42 }
0x4248   :  { %v4355_v45 = vpop.eup %4354 }
0x4249   :  { %v3822_v8 = vmul.f32 %v4355_v45, %v4353_v18 }
0x424b   :  { %3823 = vst.msk [vmem:[#allocation2] sm:$0x3] %vm3811_vm6, %v3822_v8 }
0x424c   :  { %3834 = dma.vmem_to_hbm [thread:$0]  %s3830_s16, 32, %s3832_s25, [#allocation3]  }
0x424d   :  { %4388 = dma.done.wait [#allocation3], 32  }
0x424e   :  { %4389 = vsyncadd [#allocation3], 4294967264 }
0x424f   :  { %3839 = vsyncpa [#allocation3], 1 }

</bundles_post_ra>
